<compile_context>
chip_gen: v7x
topology: tpu7x:2x2x1
jax: 0.10.0
libtpu: 0.0.40
codegen_flags: <defaults>
</compile_context>

<pallas_src>
import jax
import jax.numpy as jnp
from jax import lax
from jax.experimental import pallas as pl
from jax.experimental.pallas import tpu as pltpu


def _time_mixing_kernel(
    x_ref, lastx_ref, num0_ref, den0_ref, bonus_ref, decayf_ref, dpow_ref,
    wkvr_ref, bkvr_ref, wout_ref, bout_ref,
    y_ref, num_ref, den_ref,
    carry_ref,
):
    TT, S = x_ref.shape
    f32 = jnp.float32
    bf16 = jnp.bfloat16

    # Seed the VMEM-resident state (num/den output blocks + previous-token
    # carry row) on the first grid step.
    @pl.when(pl.program_id(0) == 0)
    def _():
        num_ref[...] = num0_ref[...]
        den_ref[...] = den0_ref[...]
        carry_ref[...] = lastx_ref[...]

    x = x_ref[...]                                       # (TT, S) f32
    row = lax.broadcasted_iota(jnp.int32, (TT, S), 0)    # token index per row

    # --- Token shift built in-kernel (no x_prev stream from HBM). ---
    # xp[t] = x[t-1] inside the tile; xp[0] = last row of the previous tile.
    xp = jnp.where(row == 0, carry_ref[...], pltpu.roll(x, shift=1, axis=0))
    carry_ref[...] = x[TT - 1:TT, :]                     # carry for next tile

    # --- Fused K/V/R projection: one MXU matmul, mixing folded into weights.
    lhs = jnp.concatenate([x.astype(bf16), xp.astype(bf16)], axis=1)  # (TT,2S)
    kvr = jnp.dot(lhs, wkvr_ref[...], preferred_element_type=f32) + bkvr_ref[...]
    k = kvr[:, 0:S]
    v = kvr[:, S:2 * S]
    r = kvr[:, 2 * S:3 * S]

    eb = jnp.exp(bonus_ref[...] + k)       # exp(bonus + k)      (TT, S)
    ebv = eb * v                           # exp(bonus + k) * v  (TT, S)
    sig_r = jax.nn.sigmoid(r)

    # --- wkv recurrence as a log2(TT)-depth decay-weighted inclusive scan:
    #   s_t = sum_{j<=t} d^(t-j) * u_j     (u = ebv / eb)
    # Hillis-Steele doubling on whole (TT,S) tiles: rolls go to the XLU,
    # FMAs to the VPU; coefficient d^(2^k) is squared each step.
    d = decayf_ref[...]                    # exp(-exp(decay)), (1, S)
    s_num = ebv
    s_den = eb
    dk = d
    offset = 1
    while offset < TT:                     # static python loop (unrolled)
        shift_num = jnp.where(row >= offset,
                              pltpu.roll(s_num, shift=offset, axis=0), 0.0)
        shift_den = jnp.where(row >= offset,
                              pltpu.roll(s_den, shift=offset, axis=0), 0.0)
        s_num = s_num + dk * shift_num
        s_den = s_den + dk * shift_den
        dk = dk * dk
        offset *= 2

    # State *before* token t: prev_t = d^t * state_in + s_{t-1}  (s_{-1}=0).
    # d^t (precomputed (TT,S) input, d < 1 so no overflow direction).
    dpow = dpow_ref[...]
    s_num_prev = jnp.where(row >= 1, pltpu.roll(s_num, shift=1, axis=0), 0.0)
    s_den_prev = jnp.where(row >= 1, pltpu.roll(s_den, shift=1, axis=0), 0.0)
    prev_num = dpow * num_ref[...] + s_num_prev
    prev_den = dpow * den_ref[...] + s_den_prev

    # wkv / rwkv for the whole tile; one EUP reciprocal (vrcp).
    wkv = (prev_num + ebv) * pl.reciprocal(prev_den + eb, approx=True)
    rwkv = sig_r * wkv

    # Output projection straight from vregs (no scratch round-trip).
    y = jnp.dot(rwkv.astype(bf16), wout_ref[...], preferred_element_type=f32)
    y_ref[...] = (y + bout_ref[...]).astype(y_ref.dtype)

    # Carry the state to the next tile (resident (1, S) output blocks).
    num_ref[...] = d * prev_num[TT - 1:TT, :] + ebv[TT - 1:TT, :]
    den_ref[...] = d * prev_den[TT - 1:TT, :] + eb[TT - 1:TT, :]


def prepare_params(decay, bonus, mix_k, mix_v, mix_r,
                   wk, bk, wv, bv, wr, br, wout, bout):
    """One-time parameter prep (model-load time, NOT per step):
    fold the token-shift mixing into the (transposed) K/V/R weights, fuse them
    into a single (2S, 3S) bf16 matrix, and hoist the per-layer decay
    constants exp(-exp(decay)) / -exp(decay)."""
    f32 = jnp.float32
    bf16 = jnp.bfloat16
    row = lambda a: jnp.asarray(a, f32).reshape(1, -1)

    mk = jnp.asarray(mix_k, f32)[:, None]
    mv = jnp.asarray(mix_v, f32)[:, None]
    mr = jnp.asarray(mix_r, f32)[:, None]
    wkT = jnp.asarray(wk, f32).T           # (in, out)
    wvT = jnp.asarray(wv, f32).T
    wrT = jnp.asarray(wr, f32).T
    w_x = jnp.concatenate([mk * wkT, mv * wvT, mr * wrT], axis=1)            # x part
    w_p = jnp.concatenate([(1 - mk) * wkT, (1 - mv) * wvT, (1 - mr) * wrT], axis=1)
    w_kvr = jnp.concatenate([w_x, w_p], axis=0).astype(bf16)                 # (2S, 3S)
    b_kvr = jnp.concatenate([jnp.asarray(bk, f32), jnp.asarray(bv, f32),
                             jnp.asarray(br, f32)]).reshape(1, -1)           # (1, 3S)

    log_d = -jnp.exp(jnp.asarray(decay, f32)).reshape(1, -1)
    return {
        "log_decay": log_d,
        "decay_factor": jnp.exp(log_d),
        "bonus": row(bonus),
        "w_kvr": w_kvr, "b_kvr": b_kvr,
        "woutT": jnp.asarray(wout, f32).T.astype(bf16), "bout": row(bout),
    }


def time_mixing_sequence(params, x_seq, last_x, last_num, last_den,
                         *, block_tokens=128):
    """Apply TimeMixing.forward to T consecutive tokens in one Pallas call.

    x_seq: (T, S); last_x / last_num / last_den: (S,) initial state.
    Returns (y_seq (T, S), new_last_x (S,), new_num (S,), new_den (S,)).
    """
    f32 = jnp.float32
    x_seq = jnp.asarray(x_seq, f32)
    T, S = x_seq.shape
    TT = min(block_tokens, T)
    if T % TT != 0 or (TT != T and TT % 8 != 0):
        # TODO(synk): pad T up to a multiple of block_tokens and mask the tail.
        raise ValueError(f"T={T} must be a multiple of block_tokens={TT}.")

    last_x = jnp.asarray(last_x, f32).reshape(1, S)
    num0 = jnp.asarray(last_num, f32).reshape(1, S)
    den0 = jnp.asarray(last_den, f32).reshape(1, S)
    # d^t for t = 0..TT-1 (per channel), VMEM-resident constant.
    dpow = jnp.exp(jnp.arange(TT, dtype=f32)[:, None] * params["log_decay"])

    tok = lambda t: (t, 0)      # marches through the sequence
    const = lambda t: (0, 0)    # VMEM-resident across all grid steps
    vec = lambda n: pl.BlockSpec((1, n), const)

    grid_spec = pltpu.PrefetchScalarGridSpec(
        num_scalar_prefetch=0,
        grid=(T // TT,),
        in_specs=[
            pl.BlockSpec((TT, S), tok),              # x tile
            vec(S), vec(S), vec(S),                  # last_x, num0, den0
            vec(S), vec(S),                          # bonus, decay_factor
            pl.BlockSpec((TT, S), const),            # dpow (d^t)
            pl.BlockSpec((2 * S, 3 * S), const),     # fused W_kvr (bf16)
            vec(3 * S),                              # fused bias bk|bv|br
            pl.BlockSpec((S, S), const),             # Wout^T (bf16)
            vec(S),                                  # bout
        ],
        out_specs=(
            pl.BlockSpec((TT, S), tok),              # y
            vec(S),                                  # final num (resident)
            vec(S),                                  # final den (resident)
        ),
        scratch_shapes=[pltpu.VMEM((1, S), f32)],    # previous-token carry row
    )

    y, num, den = pl.pallas_call(
        _time_mixing_kernel,
        grid_spec=grid_spec,
        out_shape=(
            jax.ShapeDtypeStruct((T, S), f32),
            jax.ShapeDtypeStruct((1, S), f32),
            jax.ShapeDtypeStruct((1, S), f32),
        ),
        compiler_params=pltpu.CompilerParams(
            # wkv recurrence is serial across token tiles.
            # TODO(synk): add a leading "parallel" batch/head grid axis so
            # v7x's second TensorCore is used for independent sequences.
            dimension_semantics=("arbitrary",),
            vmem_limit_bytes=32 * 1024 * 1024,
        ),
    )(
        x_seq, last_x, num0, den0,
        params["bonus"], params["decay_factor"], dpow,
        params["w_kvr"], params["b_kvr"], params["woutT"], params["bout"],
    )
    return y, x_seq[-1], num.reshape(S), den.reshape(S)


def _reference_sequence(x_seq, last_x, last_num, last_den,
                        decay, bonus, mix_k, mix_v, mix_r,
                        wk, bk, wv, bv, wr, br, wout, bout,
                        emulate_kernel=False):
    """Pure-JAX per-token scan mirroring TimeMixing.forward with the state
    carried forward between tokens.  If emulate_kernel, use the kernel's
    decomposition (mix folded into bf16 weights, bf16 matmul operands)."""
    f32 = jnp.float32
    bf16 = jnp.bfloat16
    q = (lambda a: a.astype(bf16).astype(f32)) if emulate_kernel else (lambda a: a)

    wkT = jnp.asarray(wk, f32).T
    wvT = jnp.asarray(wv, f32).T
    wrT = jnp.asarray(wr, f32).T
    woutT = q(jnp.asarray(wout, f32).T)
    d = jnp.exp(-jnp.exp(jnp.asarray(decay, f32)))
    S = x_seq.shape[1]

    if emulate_kernel:
        mk, mv, mr = mix_k[:, None], mix_v[:, None], mix_r[:, None]
        w_x = jnp.concatenate([mk * wkT, mv * wvT, mr * wrT], axis=1)
        w_p = jnp.concatenate([(1 - mk) * wkT, (1 - mv) * wvT, (1 - mr) * wrT], axis=1)
        w2 = q(jnp.concatenate([w_x, w_p], axis=0))
        b3 = jnp.concatenate([jnp.asarray(bk, f32), jnp.asarray(bv, f32),
                              jnp.asarray(br, f32)])

    def step(state, x):
        lx, num, den = state
        if emulate_kernel:
            kvr = q(jnp.concatenate([x, lx])) @ w2 + b3
            k, v, r = kvr[:S], kvr[S:2 * S], kvr[2 * S:]
        else:
            k = (x * mix_k + lx * (1 - mix_k)) @ wkT + bk
            v = (x * mix_v + lx * (1 - mix_v)) @ wvT + bv
            r = (x * mix_r + lx * (1 - mix_r)) @ wrT + br
        eb = jnp.exp(bonus + k)
        wkv = (num + eb * v) / (den + eb)
        rwkv = jax.nn.sigmoid(r) * wkv
        y = q(rwkv) @ woutT + bout
        return (x, d * num + eb * v, d * den + eb), y

    init = (jnp.asarray(last_x, f32), jnp.asarray(last_num, f32),
            jnp.asarray(last_den, f32))
    (lx, num, den), ys = jax.lax.scan(step, init, jnp.asarray(x_seq, f32))
    return ys, lx, num, den


if __name__ == "__main__":
    SIZE = 128   # channel dim (one TPU lane tile)
    SEQ = 256    # tokens per pallas_call (2 grid steps of 128)
    key = jax.random.PRNGKey(0)
    keys = jax.random.split(key, 17)

    x_seq = jax.random.normal(keys[0], (SEQ, SIZE), jnp.float32)
    last_x = jax.random.normal(keys[1], (SIZE,), jnp.float32)
    last_num = jax.random.uniform(keys[2], (SIZE,), jnp.float32)
    last_den = jax.random.uniform(keys[3], (SIZE,), jnp.float32) + 1.0
    decay = 0.1 * jax.random.normal(keys[4], (SIZE,), jnp.float32)
    bonus = 0.1 * jax.random.normal(keys[5], (SIZE,), jnp.float32)
    mix_k = jax.random.uniform(keys[6], (SIZE,), jnp.float32)
    mix_v = jax.random.uniform(keys[7], (SIZE,), jnp.float32)
    mix_r = jax.random.uniform(keys[8], (SIZE,), jnp.float32)

    scale = 1.0 / jnp.sqrt(SIZE)
    wk = jax.random.normal(keys[9], (SIZE, SIZE), jnp.float32) * scale
    bk = jax.random.normal(keys[10], (SIZE,), jnp.float32) * scale
    wv = jax.random.normal(keys[11], (SIZE, SIZE), jnp.float32) * scale
    bv = jax.random.normal(keys[12], (SIZE,), jnp.float32) * scale
    wr = jax.random.normal(keys[13], (SIZE, SIZE), jnp.float32) * scale
    br = jax.random.normal(keys[14], (SIZE,), jnp.float32) * scale
    wout = jax.random.normal(keys[15], (SIZE, SIZE), jnp.float32) * scale
    bout = jax.random.normal(keys[16], (SIZE,), jnp.float32) * scale

    params = prepare_params(decay, bonus, mix_k, mix_v, mix_r,
                            wk, bk, wv, bv, wr, br, wout, bout)

    y, new_last_x, new_num, new_den = time_mixing_sequence(
        params, x_seq, last_x, last_num, last_den, block_tokens=128)
    jax.block_until_ready((y, new_last_x, new_num, new_den))

    # Tight check against a reference that emulates the kernel's bf16 matmul
    # operands and weight-folded decomposition (approx reciprocal + scan
    # reassociation are the only other numerical differences).
    ref_y, ref_lx, ref_num, ref_den = _reference_sequence(
        x_seq, last_x, last_num, last_den, decay, bonus, mix_k, mix_v, mix_r,
        wk, bk, wv, bv, wr, br, wout, bout, emulate_kernel=True)
    assert jnp.allclose(y, ref_y, atol=3e-2, rtol=3e-2), \
        float(jnp.max(jnp.abs(y - ref_y)))
    assert jnp.allclose(new_num, ref_num, atol=3e-2, rtol=3e-2)
    assert jnp.allclose(new_den, ref_den, atol=3e-2, rtol=3e-2)
    assert jnp.allclose(new_last_x, ref_lx)

    # Loose sanity check against the pure-f32 per-token transcription of the
    # PyTorch module (bounds the effect of bf16 quantisation of the weights).
    f32_y, _, f32_num, f32_den = _reference_sequence(
        x_seq, last_x, last_num, last_den, decay, bonus, mix_k, mix_v, mix_r,
        wk, bk, wv, bv, wr, br, wout, bout, emulate_kernel=False)
    assert jnp.allclose(y, f32_y, atol=2e-1, rtol=2e-1)
    assert jnp.allclose(new_num, f32_num, atol=2e-1, rtol=2e-1)
    assert jnp.allclose(new_den, f32_den, atol=2e-1, rtol=2e-1)

    print("KERNEL_OK")
</pallas_src>

<mosaic_0001>
module attributes {stable_mosaic.version = 11 : i64} {
  func.func @_time_mixing_kernel(%arg0: i32, %arg1: memref<128x128xf32, #tpu.memory_space<vmem>>, %arg2: memref<1x128xf32, #tpu.memory_space<vmem>>, %arg3: memref<1x128xf32, #tpu.memory_space<vmem>>, %arg4: memref<1x128xf32, #tpu.memory_space<vmem>>, %arg5: memref<1x128xf32, #tpu.memory_space<vmem>>, %arg6: memref<1x128xf32, #tpu.memory_space<vmem>>, %arg7: memref<128x128xf32, #tpu.memory_space<vmem>>, %arg8: memref<256x384xbf16, #tpu.memory_space<vmem>>, %arg9: memref<1x384xf32, #tpu.memory_space<vmem>>, %arg10: memref<128x128xbf16, #tpu.memory_space<vmem>>, %arg11: memref<1x128xf32, #tpu.memory_space<vmem>>, %arg12: memref<128x128xf32, #tpu.memory_space<vmem>>, %arg13: memref<1x128xf32, #tpu.memory_space<vmem>>, %arg14: memref<1x128xf32, #tpu.memory_space<vmem>>, %arg15: memref<1x128xf32, #tpu.memory_space<vmem>>) attributes {dimension_semantics = [#tpu.dimension_semantics<arbitrary>], iteration_bounds = array<i64: 2>, scalar_prefetch = 0 : i64, scratch_operands = 1 : i64, tpu.core_type = #tpu.core_type<tc>, window_params = [{transform_indices = @transform_0, window_bounds = array<i64: 128, 128>}, {pipeline_mode = #tpu.pipeline_mode<synchronous>, transform_indices = @transform_1, window_bounds = array<i64: 1, 128>}, {pipeline_mode = #tpu.pipeline_mode<synchronous>, transform_indices = @transform_2, window_bounds = array<i64: 1, 128>}, {pipeline_mode = #tpu.pipeline_mode<synchronous>, transform_indices = @transform_3, window_bounds = array<i64: 1, 128>}, {pipeline_mode = #tpu.pipeline_mode<synchronous>, transform_indices = @transform_4, window_bounds = array<i64: 1, 128>}, {pipeline_mode = #tpu.pipeline_mode<synchronous>, transform_indices = @transform_5, window_bounds = array<i64: 1, 128>}, {pipeline_mode = #tpu.pipeline_mode<synchronous>, transform_indices = @transform_6, window_bounds = array<i64: 128, 128>}, {pipeline_mode = #tpu.pipeline_mode<synchronous>, transform_indices = @transform_7, window_bounds = array<i64: 256, 384>}, {pipeline_mode = #tpu.pipeline_mode<synchronous>, transform_indices = @transform_8, window_bounds = array<i64: 1, 384>}, {pipeline_mode = #tpu.pipeline_mode<synchronous>, transform_indices = @transform_9, window_bounds = array<i64: 128, 128>}, {pipeline_mode = #tpu.pipeline_mode<synchronous>, transform_indices = @transform_10, window_bounds = array<i64: 1, 128>}, {transform_indices = @transform_11, window_bounds = array<i64: 128, 128>}, {pipeline_mode = #tpu.pipeline_mode<synchronous>, transform_indices = @transform_12, window_bounds = array<i64: 1, 128>}, {pipeline_mode = #tpu.pipeline_mode<synchronous>, transform_indices = @transform_13, window_bounds = array<i64: 1, 128>}]} {
    %c0_i32 = arith.constant 0 : i32
    %0 = arith.cmpi eq, %arg0, %c0_i32 : i32
    %1 = arith.extui %0 : i1 to i32
    %c0_i32_0 = arith.constant 0 : i32
    %2 = arith.cmpi ne, %1, %c0_i32_0 : i32
    scf.if %2 {
      %c0_75 = arith.constant 0 : index
      %c0_76 = arith.constant 0 : index
      %195 = vector.load %arg3[%c0_75, %c0_76] : memref<1x128xf32, #tpu.memory_space<vmem>>, vector<1x128xf32>
      %c0_77 = arith.constant 0 : index
      %c0_78 = arith.constant 0 : index
      %196 = vector.load %arg13[%c0_77, %c0_78] : memref<1x128xf32, #tpu.memory_space<vmem>>, vector<1x128xf32>
      tpu.vector_store %arg13[%c0_77, %c0_78], %195 {strides = array<i32>} : memref<1x128xf32, #tpu.memory_space<vmem>>, vector<1x128xf32>,
      %c0_79 = arith.constant 0 : index
      %c0_80 = arith.constant 0 : index
      %197 = vector.load %arg4[%c0_79, %c0_80] : memref<1x128xf32, #tpu.memory_space<vmem>>, vector<1x128xf32>
      %c0_81 = arith.constant 0 : index
      %c0_82 = arith.constant 0 : index
      %198 = vector.load %arg14[%c0_81, %c0_82] : memref<1x128xf32, #tpu.memory_space<vmem>>, vector<1x128xf32>
      tpu.vector_store %arg14[%c0_81, %c0_82], %197 {strides = array<i32>} : memref<1x128xf32, #tpu.memory_space<vmem>>, vector<1x128xf32>,
      %c0_83 = arith.constant 0 : index
      %c0_84 = arith.constant 0 : index
      %199 = vector.load %arg2[%c0_83, %c0_84] : memref<1x128xf32, #tpu.memory_space<vmem>>, vector<1x128xf32>
      %c0_85 = arith.constant 0 : index
      %c0_86 = arith.constant 0 : index
      %200 = vector.load %arg15[%c0_85, %c0_86] : memref<1x128xf32, #tpu.memory_space<vmem>>, vector<1x128xf32>
      tpu.vector_store %arg15[%c0_85, %c0_86], %199 {strides = array<i32>} : memref<1x128xf32, #tpu.memory_space<vmem>>, vector<1x128xf32>,
    } else {
    }
    %c0 = arith.constant 0 : index
    %c0_1 = arith.constant 0 : index
    %3 = vector.load %arg1[%c0, %c0_1] : memref<128x128xf32, #tpu.memory_space<vmem>>, vector<128x128xf32>
    %4 = tpu.iota {dimensions = array<i32: 0>} : vector<128x128xi32>
    %c0_i32_2 = arith.constant 0 : i32
    %5 = vector.broadcast %c0_i32_2 : i32 to vector<128x128xi32>
    %6 = arith.cmpi eq, %4, %5 : vector<128x128xi32>
    %c0_3 = arith.constant 0 : index
    %c0_4 = arith.constant 0 : index
    %7 = vector.load %arg15[%c0_3, %c0_4] : memref<1x128xf32, #tpu.memory_space<vmem>>, vector<1x128xf32>
    %c1_i32 = arith.constant 1 : i32
    %8 = tpu.dynamic_rotate %3 by %c1_i32 dim 0 : vector<128x128xf32>, i32 -> vector<128x128xf32>
    %9 = vector.shape_cast %7 : vector<1x128xf32> to vector<1x128xf32>
    %10 = vector.broadcast %9 : vector<1x128xf32> to vector<128x128xf32>
    %11 = arith.select %6, %10, %8 : vector<128x128xi1>, vector<128x128xf32>
    %12 = vector.extract_strided_slice %3 {offsets = [127, 0], sizes = [1, 128], strides = [1, 1]} : vector<128x128xf32> to vector<1x128xf32>
    %c0_5 = arith.constant 0 : index
    %c0_6 = arith.constant 0 : index
    %13 = vector.load %arg15[%c0_5, %c0_6] : memref<1x128xf32, #tpu.memory_space<vmem>>, vector<1x128xf32>
    tpu.vector_store %arg15[%c0_5, %c0_6], %12 {strides = array<i32>} : memref<1x128xf32, #tpu.memory_space<vmem>>, vector<1x128xf32>,
    %14 = arith.truncf %3 : vector<128x128xf32> to vector<128x128xbf16>
    %15 = arith.truncf %11 : vector<128x128xf32> to vector<128x128xbf16>
    %16 = tpu.concatenate %14, %15 in 1 : vector<128x128xbf16>, vector<128x128xbf16> -> vector<128x256xbf16>
    %c0_7 = arith.constant 0 : index
    %c0_8 = arith.constant 0 : index
    %17 = vector.load %arg8[%c0_7, %c0_8] : memref<256x384xbf16, #tpu.memory_space<vmem>>, vector<256x384xbf16>
    %cst = arith.constant dense<0.000000e+00> : vector<128x384xf32>
    %18 = tpu.matmul %16, %17, %cst {dimension_numbers = #tpu.dot_dimension_numbers<[1], [0], [0], [1], [0, 0, 1, 1], [], []>} : vector<128x256xbf16>, vector<256x384xbf16>, vector<128x384xf32> -> vector<128x384xf32>
    %c0_9 = arith.constant 0 : index
    %c0_10 = arith.constant 0 : index
    %19 = vector.load %arg9[%c0_9, %c0_10] : memref<1x384xf32, #tpu.memory_space<vmem>>, vector<1x384xf32>
    %20 = vector.broadcast %19 : vector<1x384xf32> to vector<128x384xf32>
    %21 = arith.addf %18, %20 : vector<128x384xf32>
    %22 = vector.extract_strided_slice %21 {offsets = [0, 0], sizes = [128, 128], strides = [1, 1]} : vector<128x384xf32> to vector<128x128xf32>
    %23 = vector.extract_strided_slice %21 {offsets = [0, 128], sizes = [128, 128], strides = [1, 1]} : vector<128x384xf32> to vector<128x128xf32>
    %24 = vector.extract_strided_slice %21 {offsets = [0, 256], sizes = [128, 128], strides = [1, 1]} : vector<128x384xf32> to vector<128x128xf32>
    %c0_11 = arith.constant 0 : index
    %c0_12 = arith.constant 0 : index
    %25 = vector.load %arg5[%c0_11, %c0_12] : memref<1x128xf32, #tpu.memory_space<vmem>>, vector<1x128xf32>
    %26 = vector.broadcast %25 : vector<1x128xf32> to vector<128x128xf32>
    %27 = arith.addf %26, %22 : vector<128x128xf32>
    %28 = math.exp %27 : vector<128x128xf32>
    %29 = arith.mulf %28, %23 : vector<128x128xf32>
    %30 = arith.negf %24 : vector<128x128xf32>
    %31 = math.exp %30 : vector<128x128xf32>
    %cst_13 = arith.constant 1.000000e+00 : f32
    %32 = vector.broadcast %cst_13 : f32 to vector<128x128xf32>
    %33 = arith.addf %32, %31 : vector<128x128xf32>
    %34 = arith.divf %32, %33 : vector<128x128xf32>
    %c0_14 = arith.constant 0 : index
    %c0_15 = arith.constant 0 : index
    %35 = vector.load %arg6[%c0_14, %c0_15] : memref<1x128xf32, #tpu.memory_space<vmem>>, vector<1x128xf32>
    %c1_i32_16 = arith.constant 1 : i32
    %36 = vector.broadcast %c1_i32_16 : i32 to vector<128x128xi32>
    %37 = arith.cmpi sge, %4, %36 : vector<128x128xi32>
    %c1_i32_17 = arith.constant 1 : i32
    %38 = tpu.dynamic_rotate %29 by %c1_i32_17 dim 0 : vector<128x128xf32>, i32 -> vector<128x128xf32>
    %cst_18 = arith.constant 0.000000e+00 : f32
    %39 = vector.broadcast %cst_18 : f32 to vector<128x128xf32>
    %40 = arith.select %37, %38, %39 : vector<128x128xi1>, vector<128x128xf32>
    %c1_i32_19 = arith.constant 1 : i32
    %41 = vector.broadcast %c1_i32_19 : i32 to vector<128x128xi32>
    %42 = arith.cmpi sge, %4, %41 : vector<128x128xi32>
    %c1_i32_20 = arith.constant 1 : i32
    %43 = tpu.dynamic_rotate %28 by %c1_i32_20 dim 0 : vector<128x128xf32>, i32 -> vector<128x128xf32>
    %cst_21 = arith.constant 0.000000e+00 : f32
    %44 = vector.broadcast %cst_21 : f32 to vector<128x128xf32>
    %45 = arith.select %42, %43, %44 : vector<128x128xi1>, vector<128x128xf32>
    %46 = vector.broadcast %35 : vector<1x128xf32> to vector<128x128xf32>
    %47 = arith.mulf %46, %40 : vector<128x128xf32>
    %48 = arith.addf %29, %47 : vector<128x128xf32>
    %49 = vector.broadcast %35 : vector<1x128xf32> to vector<128x128xf32>
    %50 = arith.mulf %49, %45 : vector<128x128xf32>
    %51 = arith.addf %28, %50 : vector<128x128xf32>
    %52 = arith.mulf %35, %35 : vector<1x128xf32>
    %c2_i32 = arith.constant 2 : i32
    %53 = vector.broadcast %c2_i32 : i32 to vector<128x128xi32>
    %54 = arith.cmpi sge, %4, %53 : vector<128x128xi32>
    %c2_i32_22 = arith.constant 2 : i32
    %55 = tpu.dynamic_rotate %48 by %c2_i32_22 dim 0 : vector<128x128xf32>, i32 -> vector<128x128xf32>
    %cst_23 = arith.constant 0.000000e+00 : f32
    %56 = vector.broadcast %cst_23 : f32 to vector<128x128xf32>
    %57 = arith.select %54, %55, %56 : vector<128x128xi1>, vector<128x128xf32>
    %c2_i32_24 = arith.constant 2 : i32
    %58 = vector.broadcast %c2_i32_24 : i32 to vector<128x128xi32>
    %59 = arith.cmpi sge, %4, %58 : vector<128x128xi32>
    %c2_i32_25 = arith.constant 2 : i32
    %60 = tpu.dynamic_rotate %51 by %c2_i32_25 dim 0 : vector<128x128xf32>, i32 -> vector<128x128xf32>
    %cst_26 = arith.constant 0.000000e+00 : f32
    %61 = vector.broadcast %cst_26 : f32 to vector<128x128xf32>
    %62 = arith.select %59, %60, %61 : vector<128x128xi1>, vector<128x128xf32>
    %63 = vector.broadcast %52 : vector<1x128xf32> to vector<128x128xf32>
    %64 = arith.mulf %63, %57 : vector<128x128xf32>
    %65 = arith.addf %48, %64 : vector<128x128xf32>
    %66 = vector.broadcast %52 : vector<1x128xf32> to vector<128x128xf32>
    %67 = arith.mulf %66, %62 : vector<128x128xf32>
    %68 = arith.addf %51, %67 : vector<128x128xf32>
    %69 = arith.mulf %52, %52 : vector<1x128xf32>
    %c4_i32 = arith.constant 4 : i32
    %70 = vector.broadcast %c4_i32 : i32 to vector<128x128xi32>
    %71 = arith.cmpi sge, %4, %70 : vector<128x128xi32>
    %c4_i32_27 = arith.constant 4 : i32
    %72 = tpu.dynamic_rotate %65 by %c4_i32_27 dim 0 : vector<128x128xf32>, i32 -> vector<128x128xf32>
    %cst_28 = arith.constant 0.000000e+00 : f32
    %73 = vector.broadcast %cst_28 : f32 to vector<128x128xf32>
    %74 = arith.select %71, %72, %73 : vector<128x128xi1>, vector<128x128xf32>
    %c4_i32_29 = arith.constant 4 : i32
    %75 = vector.broadcast %c4_i32_29 : i32 to vector<128x128xi32>
    %76 = arith.cmpi sge, %4, %75 : vector<128x128xi32>
    %c4_i32_30 = arith.constant 4 : i32
    %77 = tpu.dynamic_rotate %68 by %c4_i32_30 dim 0 : vector<128x128xf32>, i32 -> vector<128x128xf32>
    %cst_31 = arith.constant 0.000000e+00 : f32
    %78 = vector.broadcast %cst_31 : f32 to vector<128x128xf32>
    %79 = arith.select %76, %77, %78 : vector<128x128xi1>, vector<128x128xf32>
    %80 = vector.broadcast %69 : vector<1x128xf32> to vector<128x128xf32>
    %81 = arith.mulf %80, %74 : vector<128x128xf32>
    %82 = arith.addf %65, %81 : vector<128x128xf32>
    %83 = vector.broadcast %69 : vector<1x128xf32> to vector<128x128xf32>
    %84 = arith.mulf %83, %79 : vector<128x128xf32>
    %85 = arith.addf %68, %84 : vector<128x128xf32>
    %86 = arith.mulf %69, %69 : vector<1x128xf32>
    %c8_i32 = arith.constant 8 : i32
    %87 = vector.broadcast %c8_i32 : i32 to vector<128x128xi32>
    %88 = arith.cmpi sge, %4, %87 : vector<128x128xi32>
    %c8_i32_32 = arith.constant 8 : i32
    %89 = tpu.dynamic_rotate %82 by %c8_i32_32 dim 0 : vector<128x128xf32>, i32 -> vector<128x128xf32>
    %cst_33 = arith.constant 0.000000e+00 : f32
    %90 = vector.broadcast %cst_33 : f32 to vector<128x128xf32>
    %91 = arith.select %88, %89, %90 : vector<128x128xi1>, vector<128x128xf32>
    %c8_i32_34 = arith.constant 8 : i32
    %92 = vector.broadcast %c8_i32_34 : i32 to vector<128x128xi32>
    %93 = arith.cmpi sge, %4, %92 : vector<128x128xi32>
    %c8_i32_35 = arith.constant 8 : i32
    %94 = tpu.dynamic_rotate %85 by %c8_i32_35 dim 0 : vector<128x128xf32>, i32 -> vector<128x128xf32>
    %cst_36 = arith.constant 0.000000e+00 : f32
    %95 = vector.broadcast %cst_36 : f32 to vector<128x128xf32>
    %96 = arith.select %93, %94, %95 : vector<128x128xi1>, vector<128x128xf32>
    %97 = vector.broadcast %86 : vector<1x128xf32> to vector<128x128xf32>
    %98 = arith.mulf %97, %91 : vector<128x128xf32>
    %99 = arith.addf %82, %98 : vector<128x128xf32>
    %100 = vector.broadcast %86 : vector<1x128xf32> to vector<128x128xf32>
    %101 = arith.mulf %100, %96 : vector<128x128xf32>
    %102 = arith.addf %85, %101 : vector<128x128xf32>
    %103 = arith.mulf %86, %86 : vector<1x128xf32>
    %c16_i32 = arith.constant 16 : i32
    %104 = vector.broadcast %c16_i32 : i32 to vector<128x128xi32>
    %105 = arith.cmpi sge, %4, %104 : vector<128x128xi32>
    %c16_i32_37 = arith.constant 16 : i32
    %106 = tpu.dynamic_rotate %99 by %c16_i32_37 dim 0 : vector<128x128xf32>, i32 -> vector<128x128xf32>
    %cst_38 = arith.constant 0.000000e+00 : f32
    %107 = vector.broadcast %cst_38 : f32 to vector<128x128xf32>
    %108 = arith.select %105, %106, %107 : vector<128x128xi1>, vector<128x128xf32>
    %c16_i32_39 = arith.constant 16 : i32
    %109 = vector.broadcast %c16_i32_39 : i32 to vector<128x128xi32>
    %110 = arith.cmpi sge, %4, %109 : vector<128x128xi32>
    %c16_i32_40 = arith.constant 16 : i32
    %111 = tpu.dynamic_rotate %102 by %c16_i32_40 dim 0 : vector<128x128xf32>, i32 -> vector<128x128xf32>
    %cst_41 = arith.constant 0.000000e+00 : f32
    %112 = vector.broadcast %cst_41 : f32 to vector<128x128xf32>
    %113 = arith.select %110, %111, %112 : vector<128x128xi1>, vector<128x128xf32>
    %114 = vector.broadcast %103 : vector<1x128xf32> to vector<128x128xf32>
    %115 = arith.mulf %114, %108 : vector<128x128xf32>
    %116 = arith.addf %99, %115 : vector<128x128xf32>
    %117 = vector.broadcast %103 : vector<1x128xf32> to vector<128x128xf32>
    %118 = arith.mulf %117, %113 : vector<128x128xf32>
    %119 = arith.addf %102, %118 : vector<128x128xf32>
    %120 = arith.mulf %103, %103 : vector<1x128xf32>
    %c32_i32 = arith.constant 32 : i32
    %121 = vector.broadcast %c32_i32 : i32 to vector<128x128xi32>
    %122 = arith.cmpi sge, %4, %121 : vector<128x128xi32>
    %c32_i32_42 = arith.constant 32 : i32
    %123 = tpu.dynamic_rotate %116 by %c32_i32_42 dim 0 : vector<128x128xf32>, i32 -> vector<128x128xf32>
    %cst_43 = arith.constant 0.000000e+00 : f32
    %124 = vector.broadcast %cst_43 : f32 to vector<128x128xf32>
    %125 = arith.select %122, %123, %124 : vector<128x128xi1>, vector<128x128xf32>
    %c32_i32_44 = arith.constant 32 : i32
    %126 = vector.broadcast %c32_i32_44 : i32 to vector<128x128xi32>
    %127 = arith.cmpi sge, %4, %126 : vector<128x128xi32>
    %c32_i32_45 = arith.constant 32 : i32
    %128 = tpu.dynamic_rotate %119 by %c32_i32_45 dim 0 : vector<128x128xf32>, i32 -> vector<128x128xf32>
    %cst_46 = arith.constant 0.000000e+00 : f32
    %129 = vector.broadcast %cst_46 : f32 to vector<128x128xf32>
    %130 = arith.select %127, %128, %129 : vector<128x128xi1>, vector<128x128xf32>
    %131 = vector.broadcast %120 : vector<1x128xf32> to vector<128x128xf32>
    %132 = arith.mulf %131, %125 : vector<128x128xf32>
    %133 = arith.addf %116, %132 : vector<128x128xf32>
    %134 = vector.broadcast %120 : vector<1x128xf32> to vector<128x128xf32>
    %135 = arith.mulf %134, %130 : vector<128x128xf32>
    %136 = arith.addf %119, %135 : vector<128x128xf32>
    %137 = arith.mulf %120, %120 : vector<1x128xf32>
    %c64_i32 = arith.constant 64 : i32
    %138 = vector.broadcast %c64_i32 : i32 to vector<128x128xi32>
    %139 = arith.cmpi sge, %4, %138 : vector<128x128xi32>
    %c64_i32_47 = arith.constant 64 : i32
    %140 = tpu.dynamic_rotate %133 by %c64_i32_47 dim 0 : vector<128x128xf32>, i32 -> vector<128x128xf32>
    %cst_48 = arith.constant 0.000000e+00 : f32
    %141 = vector.broadcast %cst_48 : f32 to vector<128x128xf32>
    %142 = arith.select %139, %140, %141 : vector<128x128xi1>, vector<128x128xf32>
    %c64_i32_49 = arith.constant 64 : i32
    %143 = vector.broadcast %c64_i32_49 : i32 to vector<128x128xi32>
    %144 = arith.cmpi sge, %4, %143 : vector<128x128xi32>
    %c64_i32_50 = arith.constant 64 : i32
    %145 = tpu.dynamic_rotate %136 by %c64_i32_50 dim 0 : vector<128x128xf32>, i32 -> vector<128x128xf32>
    %cst_51 = arith.constant 0.000000e+00 : f32
    %146 = vector.broadcast %cst_51 : f32 to vector<128x128xf32>
    %147 = arith.select %144, %145, %146 : vector<128x128xi1>, vector<128x128xf32>
    %148 = vector.broadcast %137 : vector<1x128xf32> to vector<128x128xf32>
    %149 = arith.mulf %148, %142 : vector<128x128xf32>
    %150 = arith.addf %133, %149 : vector<128x128xf32>
    %151 = vector.broadcast %137 : vector<1x128xf32> to vector<128x128xf32>
    %152 = arith.mulf %151, %147 : vector<128x128xf32>
    %153 = arith.addf %136, %152 : vector<128x128xf32>
    %c0_52 = arith.constant 0 : index
    %c0_53 = arith.constant 0 : index
    %154 = vector.load %arg7[%c0_52, %c0_53] : memref<128x128xf32, #tpu.memory_space<vmem>>, vector<128x128xf32>
    %c1_i32_54 = arith.constant 1 : i32
    %155 = vector.broadcast %c1_i32_54 : i32 to vector<128x128xi32>
    %156 = arith.cmpi sge, %4, %155 : vector<128x128xi32>
    %c1_i32_55 = arith.constant 1 : i32
    %157 = tpu.dynamic_rotate %150 by %c1_i32_55 dim 0 : vector<128x128xf32>, i32 -> vector<128x128xf32>
    %cst_56 = arith.constant 0.000000e+00 : f32
    %158 = vector.broadcast %cst_56 : f32 to vector<128x128xf32>
    %159 = arith.select %156, %157, %158 : vector<128x128xi1>, vector<128x128xf32>
    %c1_i32_57 = arith.constant 1 : i32
    %160 = vector.broadcast %c1_i32_57 : i32 to vector<128x128xi32>
    %161 = arith.cmpi sge, %4, %160 : vector<128x128xi32>
    %c1_i32_58 = arith.constant 1 : i32
    %162 = tpu.dynamic_rotate %153 by %c1_i32_58 dim 0 : vector<128x128xf32>, i32 -> vector<128x128xf32>
    %cst_59 = arith.constant 0.000000e+00 : f32
    %163 = vector.broadcast %cst_59 : f32 to vector<128x128xf32>
    %164 = arith.select %161, %162, %163 : vector<128x128xi1>, vector<128x128xf32>
    %c0_60 = arith.constant 0 : index
    %c0_61 = arith.constant 0 : index
    %165 = vector.load %arg13[%c0_60, %c0_61] : memref<1x128xf32, #tpu.memory_space<vmem>>, vector<1x128xf32>
    %166 = vector.broadcast %165 : vector<1x128xf32> to vector<128x128xf32>
    %167 = arith.mulf %154, %166 : vector<128x128xf32>
    %168 = arith.addf %167, %159 : vector<128x128xf32>
    %c0_62 = arith.constant 0 : index
    %c0_63 = arith.constant 0 : index
    %169 = vector.load %arg14[%c0_62, %c0_63] : memref<1x128xf32, #tpu.memory_space<vmem>>, vector<1x128xf32>
    %170 = vector.broadcast %169 : vector<1x128xf32> to vector<128x128xf32>
    %171 = arith.mulf %154, %170 : vector<128x128xf32>
    %172 = arith.addf %171, %164 : vector<128x128xf32>
    %173 = arith.addf %168, %29 : vector<128x128xf32>
    %174 = arith.addf %172, %28 : vector<128x128xf32>
    %175 = tpu.reciprocal %174 {approx = true} : vector<128x128xf32> -> vector<128x128xf32>
    %176 = arith.mulf %173, %175 : vector<128x128xf32>
    %177 = arith.mulf %34, %176 : vector<128x128xf32>
    %178 = arith.truncf %177 : vector<128x128xf32> to vector<128x128xbf16>
    %c0_64 = arith.constant 0 : index
    %c0_65 = arith.constant 0 : index
    %179 = vector.load %arg10[%c0_64, %c0_65] : memref<128x128xbf16, #tpu.memory_space<vmem>>, vector<128x128xbf16>
    %cst_66 = arith.constant dense<0.000000e+00> : vector<128x128xf32>
    %180 = tpu.matmul %178, %179, %cst_66 {dimension_numbers = #tpu.dot_dimension_numbers<[1], [0], [0], [1], [0, 0, 1, 1], [], []>} : vector<128x128xbf16>, vector<128x128xbf16>, vector<128x128xf32> -> vector<128x128xf32>
    %c0_67 = arith.constant 0 : index
    %c0_68 = arith.constant 0 : index
    %181 = vector.load %arg11[%c0_67, %c0_68] : memref<1x128xf32, #tpu.memory_space<vmem>>, vector<1x128xf32>
    %182 = vector.broadcast %181 : vector<1x128xf32> to vector<128x128xf32>
    %183 = arith.addf %180, %182 : vector<128x128xf32>
    %c0_69 = arith.constant 0 : index
    %c0_70 = arith.constant 0 : index
    %184 = vector.load %arg12[%c0_69, %c0_70] : memref<128x128xf32, #tpu.memory_space<vmem>>, vector<128x128xf32>
    tpu.vector_store %arg12[%c0_69, %c0_70], %183 {strides = array<i32>} : memref<128x128xf32, #tpu.memory_space<vmem>>, vector<128x128xf32>,
    %185 = vector.extract_strided_slice %168 {offsets = [127, 0], sizes = [1, 128], strides = [1, 1]} : vector<128x128xf32> to vector<1x128xf32>
    %186 = arith.mulf %35, %185 : vector<1x128xf32>
    %187 = vector.extract_strided_slice %29 {offsets = [127, 0], sizes = [1, 128], strides = [1, 1]} : vector<128x128xf32> to vector<1x128xf32>
    %188 = arith.addf %186, %187 : vector<1x128xf32>
    %c0_71 = arith.constant 0 : index
    %c0_72 = arith.constant 0 : index
    %189 = vector.load %arg13[%c0_71, %c0_72] : memref<1x128xf32, #tpu.memory_space<vmem>>, vector<1x128xf32>
    tpu.vector_store %arg13[%c0_71, %c0_72], %188 {strides = array<i32>} : memref<1x128xf32, #tpu.memory_space<vmem>>, vector<1x128xf32>,
    %190 = vector.extract_strided_slice %172 {offsets = [127, 0], sizes = [1, 128], strides = [1, 1]} : vector<128x128xf32> to vector<1x128xf32>
    %191 = arith.mulf %35, %190 : vector<1x128xf32>
    %192 = vector.extract_strided_slice %28 {offsets = [127, 0], sizes = [1, 128], strides = [1, 1]} : vector<128x128xf32> to vector<1x128xf32>
    %193 = arith.addf %191, %192 : vector<1x128xf32>
    %c0_73 = arith.constant 0 : index
    %c0_74 = arith.constant 0 : index
    %194 = vector.load %arg14[%c0_73, %c0_74] : memref<1x128xf32, #tpu.memory_space<vmem>>, vector<1x128xf32>
    tpu.vector_store %arg14[%c0_73, %c0_74], %193 {strides = array<i32>} : memref<1x128xf32, #tpu.memory_space<vmem>>, vector<1x128xf32>,
    return
  }
  func.func @transform_0(%arg0: i32) -> (i32, i32) {
    %c0_i32 = arith.constant 0 : i32
    %c0_i32_0 = arith.constant 0 : i32
    return %arg0, %c0_i32 : i32, i32
  }
  func.func @transform_1(%arg0: i32) -> (i32, i32) {
    %c0_i32 = arith.constant 0 : i32
    %c0_i32_0 = arith.constant 0 : i32
    %c0_i32_1 = arith.constant 0 : i32
    return %c0_i32, %c0_i32_0 : i32, i32
  }
  func.func @transform_2(%arg0: i32) -> (i32, i32) {
    %c0_i32 = arith.constant 0 : i32
    %c0_i32_0 = arith.constant 0 : i32
    %c0_i32_1 = arith.constant 0 : i32
    return %c0_i32, %c0_i32_0 : i32, i32
  }
  func.func @transform_3(%arg0: i32) -> (i32, i32) {
    %c0_i32 = arith.constant 0 : i32
    %c0_i32_0 = arith.constant 0 : i32
    %c0_i32_1 = arith.constant 0 : i32
    return %c0_i32, %c0_i32_0 : i32, i32
  }
  func.func @transform_4(%arg0: i32) -> (i32, i32) {
    %c0_i32 = arith.constant 0 : i32
    %c0_i32_0 = arith.constant 0 : i32
    %c0_i32_1 = arith.constant 0 : i32
    return %c0_i32, %c0_i32_0 : i32, i32
  }
  func.func @transform_5(%arg0: i32) -> (i32, i32) {
    %c0_i32 = arith.constant 0 : i32
    %c0_i32_0 = arith.constant 0 : i32
    %c0_i32_1 = arith.constant 0 : i32
    return %c0_i32, %c0_i32_0 : i32, i32
  }
  func.func @transform_6(%arg0: i32) -> (i32, i32) {
    %c0_i32 = arith.constant 0 : i32
    %c0_i32_0 = arith.constant 0 : i32
    %c0_i32_1 = arith.constant 0 : i32
    return %c0_i32, %c0_i32_0 : i32, i32
  }
  func.func @transform_7(%arg0: i32) -> (i32, i32) {
    %c0_i32 = arith.constant 0 : i32
    %c0_i32_0 = arith.constant 0 : i32
    %c0_i32_1 = arith.constant 0 : i32
    return %c0_i32, %c0_i32_0 : i32, i32
  }
  func.func @transform_8(%arg0: i32) -> (i32, i32) {
    %c0_i32 = arith.constant 0 : i32
    %c0_i32_0 = arith.constant 0 : i32
    %c0_i32_1 = arith.constant 0 : i32
    return %c0_i32, %c0_i32_0 : i32, i32
  }
  func.func @transform_9(%arg0: i32) -> (i32, i32) {
    %c0_i32 = arith.constant 0 : i32
    %c0_i32_0 = arith.constant 0 : i32
    %c0_i32_1 = arith.constant 0 : i32
    return %c0_i32, %c0_i32_0 : i32, i32
  }
  func.func @transform_10(%arg0: i32) -> (i32, i32) {
    %c0_i32 = arith.constant 0 : i32
    %c0_i32_0 = arith.constant 0 : i32
    %c0_i32_1 = arith.constant 0 : i32
    return %c0_i32, %c0_i32_0 : i32, i32
  }
  func.func @transform_11(%arg0: i32) -> (i32, i32) {
    %c0_i32 = arith.constant 0 : i32
    %c0_i32_0 = arith.constant 0 : i32
    return %arg0, %c0_i32 : i32, i32
  }
  func.func @transform_12(%arg0: i32) -> (i32, i32) {
    %c0_i32 = arith.constant 0 : i32
    %c0_i32_0 = arith.constant 0 : i32
    %c0_i32_1 = arith.constant 0 : i32
    return %c0_i32, %c0_i32_0 : i32, i32
  }
  func.func @transform_13(%arg0: i32) -> (i32, i32) {
    %c0_i32 = arith.constant 0 : i32
    %c0_i32_0 = arith.constant 0 : i32
    %c0_i32_1 = arith.constant 0 : i32
    return %c0_i32, %c0_i32_0 : i32, i32
  }
}

</mosaic_0001>

<bundles_post_ra>
// kernel: tpu_custom_call.1
= control target key start
LH: loop header
LB: loop body
LE: loop exit
PB: predicated region body
PF: predicated region fallthrough
CT: control target
= control target key end

     0   :  { %s5831_s0 = inlined_call_operand.hbm [shape: f32[256,128], index: 0, kind: input, shape index: {}]   ;;  %s5832_s1 = inlined_call_operand.vmem [shape: f32[1,128], index: 1, kind: input, shape index: {}]   ;;  %s5833_s2 = inlined_call_operand.vmem [shape: f32[1,128], index: 2, kind: input, shape index: {}]   ;;  %s5834_s3 = inlined_call_operand.vmem [shape: f32[1,128], index: 3, kind: input, shape index: {}]   ;;  %s5835_s4 = inlined_call_operand.vmem [shape: f32[1,128], index: 4, kind: input, shape index: {}]   ;;  %s5836_s5 = inlined_call_operand.vmem [shape: f32[1,128], index: 5, kind: input, shape index: {}]   ;;  %s5837_s6 = inlined_call_operand.hbm [shape: f32[128,128], index: 6, kind: input, shape index: {}]   ;;  %s5838_s7 = inlined_call_operand.hbm [shape: bf16[256,384], index: 7, kind: input, shape index: {}]   ;;  %s5839_s8 = inlined_call_operand.vmem [shape: f32[1,384], index: 8, kind: input, shape index: {}]   ;;  %s5840_s9 = inlined_call_operand.hbm [shape: bf16[128,128], index: 9, kind: input, shape index: {}]   ;;  %s5841_s10 = inlined_call_operand.vmem [shape: f32[1,128], index: 10, kind: input, shape index: {}]   ;;  %s5842_s11 = inlined_call_operand.hbm [shape: f32[256,128], index: 11, kind: output, shape index: {0}]   ;;  %s5843_s12 = inlined_call_operand.hbm [shape: f32[1,128], index: 12, kind: output, shape index: {1}]   ;;  %s5844_s13 = inlined_call_operand.hbm [shape: f32[1,128], index: 13, kind: output, shape index: {2}]  }
   0x1   :  { %5941 = sst [smem:[#allocation96_spill]] %s5837_s6 }
   0x2   :  { %5942 = sst [smem:[#allocation97_spill]] %s5841_s10 }
   0x3   :  { %5943 = sst [smem:[#allocation98_spill]] %s5842_s11 }
   0x4   :  { %5944 = sst [smem:[#allocation99_spill]] %s5843_s12 }
   0x5   :  { %5945 = sst [smem:[#allocation100_spill]] %s5844_s13 }
   0x6   :  { %19 = vsyncpa [#allocation4], 0 }
   0x7   :  { %21 = vsyncpa [#allocation4 + $0x1], 0 }
   0x8   :  { %22 = vsyncpa [#allocation7], 0 }
   0x9   :  { %23 = vsyncpa [#allocation10], 0 }
   0xa   :  { %24 = vsyncpa [#allocation5], 0 }
   0xb   :  { %26 = vsyncpa [#allocation5 + $0x1], 0 }
   0xc   :  { %27 = vsyncpa [#allocation13], 0  ;;  %s3927_s25 = smov 0   ;;  %s3929_s26 = smov 0  }
   0xd   :  { %s3931_s27 = smov 0   ;;  %s3933_s28 = smov 0  }
   0xe LB: > { %5946 = sst [smem:[#allocation20_spill]] %s3827_s25  ;;  %s3948_s29 = sadd.s32 4294967295, %s3839_s28   ;;  %s3839_s28 = sphi %s3933_s28, %s6197_s28   ;;  %s3835_s27 = sphi %s3931_s27, %s6196_s27   ;;  %s3831_s26 = sphi %s3929_s26, %s6195_s26   ;;  %s3827_s25 = sphi %s3927_s25, %s6194_s25  }
   0xf   : > { %s3078_s30 = sadd.s32 4294967294, %s3839_s28   ;;  %p53_p0 = scmp.ne.s32.totalorder %s3831_s26, %s3827_s25 }
  0x10   : > { %p5847_p1 = scmp.eq.s32.totalorder %s3948_s29, 0  ;;  %p293_p3 = scmp.eq.s32.totalorder %s3078_s30, 1 }
  0x11   : > { %p3079_p5 = scmp.ge.s32.totalorder %s3839_s28, 1  ;;  %p342_p7 = scmp.lt.s32.totalorder %s3839_s28, 3 }
  0x12   : > { %p3957_p4 = por %p5847_p1, %p53_p0  ;;  %p3962_p6 = por %p293_p3, %p53_p0 }
  0x13   : > { %p3968_p9 = pnand %p3079_p5, %p342_p7  ;;  %s3841_s17 = smov [#allocation6]  }
  0x14   : > { %s5947_s14 = scalar_select %p3957_p4, 1, 0 }
  0x15   : > { %s5948_s15 = scalar_select %p3962_p6, 1, 0 }
  0x16   : > { %s5950_s16 = scalar_select %p3968_p9, 1, 0 }
  0x17   : > { %5949 = sst [smem:[#allocation21_spill]] %s5948_s15  ;;  %s369_s18 = sshll.u32 %s3841_s17, 4  ;;  %s3972_s18 = int_to_ptr.vmem [resolvable:$true] %s369_s18 }
  0x18   : > { %p3318_p10 = pneg %p3968_p9  ;;  %s3842_s20 = smov [#allocation8]  }
  0x19   : > { %s382_s21 = sshll.u32 %s3842_s20, 4  ;;  %s5952_s6 = sld [smem:[#allocation96_spill]]  ;;  %s3983_s21 = int_to_ptr.vmem [resolvable:$true] %s382_s21 }
  0x1a   : > { %p3979_p12 = pnand %p3318_p10, %p5847_p1 }
  0x1c   : > { %p3993_p0 = pneg %p3979_p12 }
  0x1f   : > { %s3595_s24 = scalar_lea.hbm %s5952_s6, 2048 }
  0x20   : > { %p3596_p13 = scmp.ne.s32.totalorder %s5952_s6, %s3595_s24  ;;  %p3602_p7 = scmp.lt.u32.totalorder %s3595_s24, %s5952_s6 }
  0x22   : > { %p3598_p3 = pnand %p3993_p0, %p3596_p13 }
  0x24   : > { %p3599_p5 = pneg %p3598_p3 }
  0x26   : > { %p3604_p10 = pnand %p3602_p7, %p3599_p5 }
  0x28   : > { %3607 = shalt.err (!%p3604_p10)
}
  0x29   : > { %s3608_s22 = scalar_lea.vmem %s3972_s18, 2048  ;;  %p3616_p2 = scmp.lt.s32.totalorder %s3972_s18, %s3972_s18 }
  0x2a   : > { %p3609_p11 = scmp.ne.s32.totalorder %s3972_s18, %s3608_s22  ;;  %p3617_p6 = scmp.lt.s32.totalorder %s3608_s22, %s3608_s22 }
  0x2c   : > { %p3611_p8 = pnand %p3609_p11, %p3993_p0  ;;  %p3618_p13 = por %p3617_p6, %p3616_p2 }
  0x2e   : > { %p3612_p1 = pneg %p3611_p8 }
  0x30   : > { %p3619_p3 = pnand %p3618_p13, %p3612_p1 }
  0x32   : > { %3622 = shalt.err (!%p3619_p3)
}
  0x33   : > { %s5851_s23 = smov 128   ;;  %s5852_s25 = smov 8  }
  0x34   : > { %3321 = dma.hbm_to_vmem [thread:$0]  (!%p3979_p12), %s5952_s6, 2048, %s3972_s18, [#allocation7], %s5851_s23, %s5851_s23, %s5852_s25  }
  0x35   : > { %s3623_s22 = scalar_lea.hbm %s5838_s7, 6144 }
  0x36   : > { %p3624_p1 = scmp.ne.s32.totalorder %s5838_s7, %s3623_s22  ;;  %p3630_p8 = scmp.lt.u32.totalorder %s3623_s22, %s5838_s7 }
  0x38   : > { %p3626_p2 = pnand %p3624_p1, %p3993_p0 }
  0x3a   : > { %p3627_p6 = pneg %p3626_p2 }
  0x3c   : > { %p3632_p11 = pnand %p3630_p8, %p3627_p6 }
  0x3e   : > { %3635 = shalt.err (!%p3632_p11)
}
  0x3f   : > { %s3636_s18 = scalar_lea.vmem %s3983_s21, 6144  ;;  %p3644_p13 = scmp.lt.s32.totalorder %s3983_s21, %s3983_s21 }
  0x40   : > { %p3637_p5 = scmp.ne.s32.totalorder %s3983_s21, %s3636_s18  ;;  %p3645_p3 = scmp.lt.s32.totalorder %s3636_s18, %s3636_s18 }
  0x42   : > { %p3639_p7 = pnand %p3637_p5, %p3993_p0  ;;  %p3646_p1 = por %p3645_p3, %p3644_p13 }
  0x44   : > { %p3640_p10 = pneg %p3639_p7 }
  0x46   : > { %p3647_p2 = pnand %p3646_p1, %p3640_p10 }
  0x48   : > { %3650 = shalt.err (!%p3647_p2)
}
  0x49   : > { %s3845_s10 = smov 192   ;;  %s3846_s11 = smov 12  }
  0x4a   : > { %3324 = dma.hbm_to_vmem [thread:$0]  (!%p3979_p12), %s5838_s7, 6144, %s3983_s21, [#allocation7], %s3845_s10, %s3845_s10, %s3846_s11  }
  0x4b   : > { %s3847_s24 = smov [#allocation9]   ;;  %s3651_s22 = scalar_lea.hbm %s5840_s9, 1024 }
  0x4c   : > { %s398_s30 = sshll.u32 %s3847_s24, 4  ;;  %p3652_p6 = scmp.ne.s32.totalorder %s5840_s9, %s3651_s22  ;;  %s399_s30 = int_to_ptr.vmem [resolvable:$true] %s398_s30 }
  0x4d   : > { %p3658_p5 = scmp.lt.u32.totalorder %s3651_s22, %s5840_s9 }
  0x4e   : > { %p3654_p8 = pnand %p3652_p6, %p3993_p0 }
  0x50   : > { %p3655_p11 = pneg %p3654_p8 }
  0x52   : > { %p3660_p7 = pnand %p3658_p5, %p3655_p11 }
  0x54   : > { %3663 = shalt.err (!%p3660_p7)
}
  0x55   : > { %s3664_s21 = scalar_lea.vmem %s399_s30, 1024  ;;  %p3672_p1 = scmp.lt.s32.totalorder %s399_s30, %s399_s30 }
  0x56   : > { %p3665_p10 = scmp.ne.s32.totalorder %s399_s30, %s3664_s21  ;;  %p3673_p2 = scmp.lt.s32.totalorder %s3664_s21, %s3664_s21 }
  0x58   : > { %p3667_p13 = pnand %p3665_p10, %p3993_p0  ;;  %p3674_p4 = por %p3673_p2, %p3672_p1 }
  0x5a   : > { %p3668_p3 = pneg %p3667_p13 }
  0x5c   : > { %p3675_p9 = pnand %p3674_p4, %p3668_p3 }
  0x5e   : > { %3678 = shalt.err (!%p3675_p9)
}
  0x5f   : > { %s3848_s23 = smov 64   ;;  %s3849_s6 = smov 4  }
  0x60   : > { %3327 = dma.hbm_to_vmem [thread:$0]  (!%p3979_p12), %s5840_s9, 1024, %s399_s30, [#allocation10], %s3848_s23, %s3848_s23, %s3849_s6  }
  0x61   : > { %s4059_s10 = sadd.s32 1, %s3839_s28   ;;  %s40_s12 = sadd.s32 1, %s3835_s27 }
  0x62   : > { %s37_s11 = ssub.s32 %s3839_s28, %s4059_s10  ;;  %p47_p9 = scmp.ne.s32.totalorder %s3835_s27, %s3831_s26 }
  0x63   : > { %p38_p4 = scmp.eq.s32.totalorder %s37_s11, 0  ;;  %p48_p0 = scmp.eq.s32.totalorder %s3839_s28, 0 }
  0x64   : > { %p3339_p6 = scmp.lt.s32.totalorder %s3839_s28, 2  ;;  %p5954_p11 = scmp.eq.s32.totalorder %s3948_s29, 1 }
  0x65   : > { %s4069_s13 = scalar_select %p38_p4, %s3835_s27, %s40_s12  }
  0x66   : > { %p49_p8 = por %p48_p0, %p47_p9  ;;  %p4073_p5 = por %p5954_p11, %p47_p9 }
  0x67   : > { %s415_s19 = sand.u32 1, %s3835_s27   ;;  %s3180_s17 = sshll.u32 %s3839_s28, 11 }
  0x68   : > { %s3084_s30 = sshll.u32 %s415_s19, 7  ;;  %s4082_s18 = scalar_lea.hbm %s5831_s0, %s3180_s17 }
  0x69   : > { %s419_s21 = scalar_lea.vmem [#allocation3], %s3084_s30  ;;  %p4084_p12 = pnand %p3339_p6, %p49_p8 }
  0x6a   : > { %s426_s23 = sshll.u32 %s419_s21, 4  ;;  %s4090_s15 = scalar_lea.sflag [#allocation4], %s415_s19  ;;  %s4088_s23 = int_to_ptr.vmem [resolvable:$true] %s426_s23 }
  0x6b   : > { %s3679_s25 = scalar_lea.hbm %s4082_s18, 2048  ;;  %p3681_p10 = pneg %p4084_p12 }
  0x6c   : > { %p3680_p7 = scmp.ne.s32.totalorder %s4082_s18, %s3679_s25  ;;  %s3684_s17 = scalar_lea.hbm %s5831_s0, 4096 }
  0x6d   : > { %p3685_p1 = scmp.lt.u32.totalorder %s4082_s18, %s5831_s0  ;;  %p3686_p2 = scmp.lt.u32.totalorder %s3684_s17, %s3679_s25 }
  0x6e   : > { %p3682_p13 = pnand %p3681_p10, %p3680_p7  ;;  %p3688_p9 = scmp.lt.u32.totalorder %s3679_s25, %s4082_s18 }
  0x6f   : > { %p3687_p4 = por %p3686_p2, %p3685_p1 }
  0x70   : > { %p3683_p3 = pneg %p3682_p13 }
  0x71   : > { %p3689_p0 = por %p3688_p9, %p3687_p4 }
  0x73   : > { %p3690_p6 = pnand %p3689_p0, %p3683_p3 }
  0x75   : > { %3693 = shalt.err (!%p3690_p6)
}
  0x76   : > { %s3694_s19 = scalar_lea.vmem %s4088_s23, 2048  ;;  %s3850_s22 = smov [#allocation3]  }
  0x77   : > { %p3695_p8 = scmp.ne.s32.totalorder %s4088_s23, %s3694_s19  ;;  %s3699_s21 = sshll.u32 %s3850_s22, 4  ;;  %s3700_s21 = int_to_ptr.vmem [resolvable:$false] %s3699_s21 }
  0x78   : > { %s3701_s11 = scalar_lea.vmem %s3700_s21, 4096  ;;  %p3702_p13 = scmp.lt.s32.totalorder %s4088_s23, %s3700_s21 }
  0x79   : > { %p3697_p11 = pnand %p3695_p8, %p3681_p10  ;;  %p3703_p1 = scmp.lt.s32.totalorder %s3701_s11, %s3694_s19 }
  0x7b   : > { %p3698_p7 = pneg %p3697_p11  ;;  %p3704_p2 = por %p3703_p1, %p3702_p13 }
  0x7d   : > { %p3705_p4 = pnand %p3704_p2, %p3698_p7 }
  0x7f   : > { %3708 = shalt.err (!%p3705_p4)
}
  0x80   : > { %s5957_s25 = smov 8   ;;  %s5958_s12 = smov 128  }
  0x81   : > { %3331 = dma.hbm_to_vmem [thread:$0]  (!%p4084_p12), %s4082_s18, 2048, %s4088_s23, %s4090_s15, %s5958_s12, %s5958_s12, %s5957_s25  }
  0x82   : > { %p5959_p10 = scmp.ne.s32.totalorder %s5950_s16, 0 }
  0x84   : > { %438 = sbr.rel (%p5959_p10) target bundleno = 963 (0x3c3), region = 64 }
  0x8b   : > { %s4124_s17 = sand.u32 1, %s3831_s26   ;;  %p5960_p3 = scmp.ne.s32.totalorder %s5947_s14, 0 }
  0x8c   : > { %s3088_s30 = sshll.u32 %s4124_s17, 7  ;;  %s441_s20 = scalar_lea.sflag [#allocation4], %s4124_s17 }
  0x8d   : > { %s4128_s19 = scalar_lea.vmem [#allocation3], %s3088_s30 }
  0x8e   : > { %3806 = dma.done.wait (%p5960_p3), %s441_s20, 2048  }
  0x8f   : > { %3808 = vsyncadd (%p5960_p3), %s441_s20, 4294965248  ;;  %p5961_p12 = scmp.eq.s32.totalorder %s3948_s29, 0 }
  0x91   : > { %3810 = dma.done.wait (%p5961_p12), [#allocation7], 8192   ;;  %p5962_p9 = pmov %p5961_p12 }
  0x93   : > { %3812 = vsyncadd (%p5962_p9), [#allocation7], 4294959104  ;;  %p5963_p0 = pmov %p5962_p9 }
  0x95   : > { %3814 = dma.done.wait (%p5963_p0), [#allocation10], 1024   ;;  %p5964_p6 = pmov %p5963_p0 }
  0x96   : > { %s4142_s16 = scalar_lea.vmem [#allocation11], %s3088_s30  ;;  %p5965_p8 = scmp.ne.s32.totalorder %s3948_s29, 0 }
  0x97   : > { %3816 = vsyncadd (%p5964_p6), [#allocation10], 4294966272  ;;  %v506_v0 = vld [vmem:[%s5833_s2] sm:$0x1] (!%p5965_p8) }
  0x98   : > { %505 = sbr.rel (%p5965_p8) target bundleno = 159 (0x9f), region = 84  ;;  %v508_v1 = vld [vmem:[%s5834_s3] sm:$0x1] (!%p5965_p8)  ;;  %507 = vst [vmem:[#allocation12] sm:$0x1] (!%p5965_p8), %v506_v0 }
  0x99   : > { %v510_v2 = vld [vmem:[%s5832_s1] sm:$0x1] (!%p5965_p8)  ;;  %509 = vst [vmem:[#allocation14] sm:$0x1] (!%p5965_p8), %v508_v1 }
  0x9a   : > { %511 = vst [vmem:[#allocation2] sm:$0x1] (!%p5965_p8), %v510_v2 }
  0x9f PF: > { %v3394_v3 = vld [vmem:[#allocation8 + $0x4] ss:$12 sps:$4 sm:$0xff]   ;;  %v3396_v4 = vld [vmem:[#allocation8] ss:$12 sps:$4 sm:$0xff]   ;;  %v3397_v5 = vld [vmem:[#allocation8 + $0x1c] ss:$12 sps:$4 sm:$0xff]   ;;  %v528_v12 = vlaneseq }
  0xa0   : > { %971 = vmatprep.subr.bf16.mxu0 %v3394_v3  ;;  %v3399_v6 = vld [vmem:[#allocation8 + $0x18] ss:$12 sps:$4 sm:$0xff]   ;;  %v3400_v7 = vld [vmem:[#allocation8 + $0x34] ss:$12 sps:$4 sm:$0xff]   ;;  %v3402_v8 = vld [vmem:[#allocation8 + $0x30] ss:$12 sps:$4 sm:$0xff]  }
  0xa1   : > { %972 = vmatpush1.bf16.msra.mxu0 %v3396_v4  ;;  %v3403_v9 = vld [vmem:[#allocation8 + $0x4c] ss:$12 sps:$4 sm:$0xff]   ;;  %v3405_v10 = vld [vmem:[#allocation8 + $0x48] ss:$12 sps:$4 sm:$0xff]   ;;  %v3406_v11 = vld [vmem:[#allocation8 + $0x64] ss:$12 sps:$4 sm:$0xff]  }
  0xa2   : > { %973 = vmatprep.subr.bf16.mxu0 %v3397_v5  ;;  %v3408_v13 = vld [vmem:[#allocation8 + $0x60] ss:$12 sps:$4 sm:$0xff]   ;;  %v3409_v14 = vld [vmem:[#allocation8 + $0x7c] ss:$12 sps:$4 sm:$0xff]   ;;  %v4155_v15 = vshrl.u32 %v528_v12, 7  ;;  %v514_v56 = vld [vmem:[%s4128_s19 + $0x10] sm:$0xff] }
  0xa3   : > { %v3411_v16 = vld [vmem:[#allocation8 + $0x78] ss:$12 sps:$4 sm:$0xff]   ;;  %v3412_v17 = vld [vmem:[#allocation8 + $0x94] ss:$12 sps:$4 sm:$0xff]   ;;  %v4161_v19 = vld [vmem:[%s4128_s19 + $0x8] sm:$0xff]  ;;  %v564_v61 = vrot.slane %v514_v56, 7 }
  0xa4   : > { %v4158_v18 = vld [vmem:[%s4128_s19] sm:$0xff]  ;;  %vm578_vm0 = vcmp.lt.s32.totalorder %v4155_v15, 1  ;;  %v4165_v20 = vld [vmem:[%s4128_s19 + $0x78] sm:$0xff]  ;;  %v563_v23 = vrot.slane %v4161_v19, 7  ;;  %vm545_vm1 = vcmp.eq.s32.totalorder %v4155_v15, 0  ;;  %vm1564_vm2 = vcmp.lt.s32.totalorder %v4155_v15, 2 }
  0xa5   : > { %974 = vmatpush1.bf16.msra.mxu0 %v3399_v6  ;;  %v3094_v21 = vld [vmem:[#allocation2] ss:$0 sm:$0xff]  ;;  %v562_v22 = vrot.slane %v4158_v18, 7  ;;  %v577_v25 = vrot.slane %v4165_v20, 7  ;;  %v3415_v26 = vld [vmem:[#allocation8 + $0xac] ss:$12 sps:$4 sm:$0xff]  }
  0xa6   : > { %975 = vmatprep.subr.bf16.mxu0 %v3400_v7  ;;  %v3414_v24 = vld [vmem:[#allocation8 + $0x90] ss:$12 sps:$4 sm:$0xff]   ;;  %617 = vst [vmem:[#allocation2 - $0x7] sm:$0x80] %v4165_v20  ;;  %v3442_v28 = vld [vmem:[#allocation8 + $0xc8] ss:$12 sps:$4 sm:$0xff]   ;;  %v592_v3 = vsel %vm578_vm0, %v563_v23, %v564_v61  ;;  %v618_v7 = vpack.c.bf16 %v4161_v19, %v4158_v18 }
  0xa7   : > { %v593_v27 = vsel %vm578_vm0, %v562_v22, %v563_v23  ;;  %v3417_v29 = vld [vmem:[#allocation8 + $0xa8] ss:$12 sps:$4 sm:$0xff]   ;;  %v594_v30 = vsel %vm578_vm0, %v577_v25, %v562_v22  ;;  %v3418_v31 = vld [vmem:[#allocation8 + $0xc4] ss:$12 sps:$4 sm:$0xff]   ;;  %3182 = vmatprep.subr.bf16.mxu1 %v3442_v28  ;;  %v3444_v35 = vld [vmem:[#allocation8 + $0xe0] ss:$12 sps:$4 sm:$0xff]  }
  0xa8   : > { %v601_v32 = vsel %vm545_vm1, %v3094_v21, %v594_v30  ;;  %v3443_v33 = vld [vmem:[#allocation8 + $0x8] ss:$12 sps:$4 sm:$0xff]   ;;  %v3445_v36 = vld [vmem:[#allocation8 + $0x20] ss:$12 sps:$4 sm:$0xff]   ;;  %v3446_v37 = vld [vmem:[#allocation8 + $0xf8] ss:$12 sps:$4 sm:$0xff]  }
  0xa9   : > { %976 = vmatpush1.bf16.msra.mxu0 %v3402_v8  ;;  %v626_v34 = vpack.c.bf16 %v593_v27, %v601_v32  ;;  %3183 = vmatpush3.bf16.msra.mxu1 %v3443_v33  ;;  %v3420_v38 = vld [vmem:[#allocation8 + $0xc0] ss:$12 sps:$4 sm:$0xff]   ;;  %v3421_v39 = vld [vmem:[#allocation8 + $0xdc] ss:$12 sps:$4 sm:$0xff]   ;;  %v3447_v40 = vld [vmem:[#allocation8 + $0x38] ss:$12 sps:$4 sm:$0xff]  }
  0xaa   : > { %977 = vmatprep.subr.bf16.mxu0 %v3403_v9  ;;  %3184 = vmatprep.subr.bf16.mxu1 %v3444_v35  ;;  %v3448_v41 = vld [vmem:[#allocation8 + $0x110] ss:$12 sps:$4 sm:$0xff]   ;;  %v3423_v42 = vld [vmem:[#allocation8 + $0xd8] ss:$12 sps:$4 sm:$0xff]   ;;  %v3424_v43 = vld [vmem:[#allocation8 + $0xf4] ss:$12 sps:$4 sm:$0xff]  }
  0xab   : > { %1003 = vmatprep.mubr.bf16.mxu0 %v626_v34  ;;  %1116 = vmatprep.mubr.bf16.mxu1 %v626_v34  ;;  %v3449_v44 = vld [vmem:[#allocation8 + $0x50] ss:$12 sps:$4 sm:$0xff]   ;;  %v3450_v45 = vld [vmem:[#allocation8 + $0x128] ss:$12 sps:$4 sm:$0xff]   ;;  %v3427_v47 = vld [vmem:[#allocation8 + $0x10c] ss:$12 sps:$4 sm:$0xff]  }
  0xac   : > { %v3426_v46 = vld [vmem:[#allocation8 + $0xf0] ss:$12 sps:$4 sm:$0xff]   ;;  %v3451_v48 = vld [vmem:[#allocation8 + $0x68] ss:$12 sps:$4 sm:$0xff]   ;;  %v3452_v49 = vld [vmem:[#allocation8 + $0x140] ss:$12 sps:$4 sm:$0xff]  }
  0xad   : > { %978 = vmatpush1.bf16.msra.mxu0 %v3405_v10  ;;  %3185 = vmatpush3.bf16.msra.mxu1 %v3445_v36  ;;  %v3429_v50 = vld [vmem:[#allocation8 + $0x108] ss:$12 sps:$4 sm:$0xff]   ;;  %v3430_v51 = vld [vmem:[#allocation8 + $0x124] ss:$12 sps:$4 sm:$0xff]   ;;  %v3453_v52 = vld [vmem:[#allocation8 + $0x80] ss:$12 sps:$4 sm:$0xff]  }
  0xae   : > { %979 = vmatprep.subr.bf16.mxu0 %v3406_v11  ;;  %3186 = vmatprep.subr.bf16.mxu1 %v3446_v37  ;;  %v3432_v53 = vld [vmem:[#allocation8 + $0x120] ss:$12 sps:$4 sm:$0xff]   ;;  %v3454_v54 = vld [vmem:[#allocation8 + $0x158] ss:$12 sps:$4 sm:$0xff]   ;;  %v3433_v55 = vld [vmem:[#allocation8 + $0x13c] ss:$12 sps:$4 sm:$0xff]  }
  0xaf   : > { %v515_v57 = vld [vmem:[%s4128_s19 + $0x18] sm:$0xff]  ;;  %v3436_v63 = vld [vmem:[#allocation8 + $0x154] ss:$12 sps:$4 sm:$0xff]   ;;  %v517_v6 = vld [vmem:[%s4128_s19 + $0x28] sm:$0xff]  ;;  %vm1748_vm3 = vcmp.lt.s32.totalorder %v4155_v15, 4  ;;  %vm1349_vm4 = vcmp.ge.s32.totalorder %v4155_v15, 1 }
  0xb0   : > { %v3455_v58 = vld [vmem:[#allocation8 + $0x98] ss:$12 sps:$4 sm:$0xff]   ;;  %v3456_v59 = vld [vmem:[#allocation8 + $0x170] ss:$12 sps:$4 sm:$0xff]   ;;  %v565_v62 = vrot.slane %v515_v57, 7  ;;  %v567_v11 = vrot.slane %v517_v6, 7 }
  0xb1   : > { %980 = vmatpush1.bf16.msra.mxu0 %v3408_v13  ;;  %3187 = vmatpush3.bf16.msra.mxu1 %v3447_v40  ;;  %v3435_v60 = vld [vmem:[#allocation8 + $0x138] ss:$12 sps:$4 sm:$0xff]   ;;  %v3457_v0 = vld [vmem:[#allocation8 + $0xb0] ss:$12 sps:$4 sm:$0xff]   ;;  %v3441_v9 = vld [vmem:[#allocation8 + $0x168] ss:$12 sps:$4 sm:$0xff]  }
  0xb2   : > { %981 = vmatprep.subr.bf16.mxu0 %v3409_v14  ;;  %3188 = vmatprep.subr.bf16.mxu1 %v3448_v41  ;;  %v3438_v1 = vld [vmem:[#allocation8 + $0x150] ss:$12 sps:$4 sm:$0xff]   ;;  %v591_v2 = vsel %vm578_vm0, %v564_v61, %v565_v62  ;;  %v3439_v4 = vld [vmem:[#allocation8 + $0x16c] ss:$12 sps:$4 sm:$0xff]   ;;  %v516_v5 = vld [vmem:[%s4128_s19 + $0x20] sm:$0xff]  ;;  %vm1532_vm5 = vcmp.ge.s32.totalorder %v4155_v15, 2 }
  0xb3   : > { %v627_v8 = vpack.c.bf16 %v591_v2, %v592_v3  ;;  %v566_v10 = vrot.slane %v516_v5, 7  ;;  %v518_v14 = vld [vmem:[%s4128_s19 + $0x30] sm:$0xff]  ;;  %v620_v27 = vpack.c.bf16 %v517_v6, %v516_v5  ;;  %v523_v34 = vld [vmem:[%s4128_s19 + $0x58] sm:$0xff]  ;;  %v524_v41 = vld [vmem:[%s4128_s19 + $0x60] sm:$0xff]  ;;  %vm1716_vm6 = vcmp.ge.s32.totalorder %v4155_v15, 4  ;;  %s3852_s14 = smov [#allocation12]  }
  0xb4   : > { %v568_v19 = vrot.slane %v518_v14, 7  ;;  %v522_v33 = vld [vmem:[%s4128_s19 + $0x50] sm:$0xff]  ;;  %v4245_v6 = vld [vmem:[%s5835_s4] ss:$0 sm:$0xff]  ;;  %s2947_s23 = sshll.u32 %s3852_s14, 4  ;;  %p6180_p7 = scmp.eq.s32.totalorder %s3948_s29, 1  ;;  %s2948_s23 = int_to_ptr.vmem [resolvable:$true] %s2947_s23 }
  0xb5   : > { %982 = vmatpush1.bf16.msra.mxu0 %v3411_v16  ;;  %3189 = vmatpush3.bf16.msra.mxu1 %v3449_v44  ;;  %v589_v12 = vsel %vm578_vm0, %v566_v10, %v567_v11  ;;  %v590_v13 = vsel %vm578_vm0, %v565_v62, %v566_v10  ;;  %v519_v16 = vld [vmem:[%s4128_s19 + $0x38] sm:$0xff]  ;;  %v572_v37 = vrot.slane %v522_v33, 7  ;;  %s3709_s6 = scalar_lea.vmem %s2948_s23, 16  ;;  %s3715_s15 = scalar_lea.vmem %s2948_s23, 32 }
  0xb6   : > { %983 = vmatprep.subr.bf16.mxu0 %v3412_v17  ;;  %3190 = vmatprep.subr.bf16.mxu1 %v3450_v45  ;;  %v619_v17 = vpack.c.bf16 %v515_v57, %v514_v56  ;;  %v628_v18 = vpack.c.bf16 %v589_v12, %v590_v13  ;;  %v569_v21 = vrot.slane %v519_v16, 7  ;;  %v588_v23 = vsel %vm578_vm0, %v567_v11, %v568_v19  ;;  %v3458_v11 = vld [vmem:[#allocation9] sm:$0xff]   ;;  %v3459_v12 = vld [vmem:[#allocation9 + $0x8] sm:$0xff]   ;;  %p3710_p11 = scmp.ne.s32.totalorder %s2948_s23, %s3709_s6  ;;  %p3716_p2 = scmp.lt.s32.totalorder %s2948_s23, %s2948_s23 }
  0xb7   : > { %v621_v35 = vpack.c.bf16 %v519_v16, %v518_v14  ;;  %v574_v45 = vrot.slane %v524_v41, 7  ;;  %p3717_p4 = scmp.lt.s32.totalorder %s3715_s15, %s3709_s6 }
  0xb8   : > { %v587_v22 = vsel %vm578_vm0, %v568_v19, %v569_v21  ;;  %p3711_p13 = pnand %p3710_p11, %p6180_p7 }
  0xb9   : > { %984 = vmatpush1.bf16.msra.mxu0 %v3414_v24  ;;  %3191 = vmatpush3.bf16.msra.mxu1 %v3451_v48  ;;  %v520_v24 = vld [vmem:[%s4128_s19 + $0x40] sm:$0xff]  ;;  %v629_v28 = vpack.c.bf16 %v587_v22, %v588_v23  ;;  %p3718_p10 = por %p3717_p4, %p3716_p2 }
  0xba   : > { %985 = vmatprep.subr.bf16.mxu0 %v3415_v26  ;;  %3192 = vmatprep.subr.bf16.mxu1 %v3452_v49  ;;  %v521_v26 = vld [vmem:[%s4128_s19 + $0x48] sm:$0xff]  ;;  %v526_v49 = vld [vmem:[%s4128_s19 + $0x70] sm:$0xff]  ;;  %p3712_p1 = pneg %p3711_p13 }
  0xbb   : > { %v571_v30 = vrot.slane %v521_v26, 7  ;;  %v625_v57 = vpack.c.bf16 %v4165_v20, %v526_v49 }
  0xbc   : > { %p3719_p3 = pnand %p3718_p10, %p3712_p1 }
  0xbd   : > { %986 = vmatpush1.bf16.msra.mxu0 %v3417_v29  ;;  %3193 = vmatpush3.bf16.msra.mxu1 %v3453_v52  ;;  %v570_v29 = vrot.slane %v520_v24, 7  ;;  %v584_v40 = vsel %vm578_vm0, %v571_v30, %v572_v37  ;;  %v576_v52 = vrot.slane %v526_v49, 7 }
  0xbe   : > { %987 = vmatprep.subr.bf16.mxu0 %v3418_v31  ;;  %3194 = vmatprep.subr.bf16.mxu1 %v3454_v54 }
  0xbf   : > { %v585_v31 = vsel %vm578_vm0, %v570_v29, %v571_v30  ;;  %v586_v32 = vsel %vm578_vm0, %v569_v21, %v570_v29 }
  0xc0   : > { %v630_v36 = vpack.c.bf16 %v585_v31, %v586_v32  ;;  %v3460_v31 = vld [vmem:[#allocation9 + $0x10] sm:$0xff]  }
  0xc1   : > { %988 = vmatpush1.bf16.msra.mxu0 %v3420_v38  ;;  %3195 = vmatpush3.bf16.msra.mxu1 %v3455_v58  ;;  %v573_v38 = vrot.slane %v523_v34, 7  ;;  %v710_v58 = vsub.s32 2, %v4155_v15 }
  0xc2   : > { %989 = vmatprep.subr.bf16.mxu0 %v3421_v39  ;;  %3196 = vmatprep.subr.bf16.mxu1 %v3456_v59  ;;  %v4233_v59 = vsub.s32 0, %v4155_v15 }
  0xc3   : > { %v583_v39 = vsel %vm578_vm0, %v572_v37, %v573_v38  ;;  %v582_v48 = vsel %vm578_vm0, %v573_v38, %v574_v45 }
  0xc4   : > { %v631_v44 = vpack.c.bf16 %v583_v39, %v584_v40  ;;  %5966 = vst [vmem:[#allocation22_spill] sm:$0xff] %v4233_v59 }
  0xc5   : > { %990 = vmatpush1.bf16.msra.mxu0 %v3423_v42  ;;  %3197 = vmatpush3.bf16.msra.mxu1 %v3457_v0  ;;  %v525_v42 = vld [vmem:[%s4128_s19 + $0x68] sm:$0xff] }
  0xc6   : > { %991 = vmatprep.subr.bf16.mxu0 %v3424_v43  ;;  %v622_v43 = vpack.c.bf16 %v521_v26, %v520_v24  ;;  %3262 = vmatprep.subr.bf16.mxu1 %v3458_v11 }
  0xc8   : > { %1117 = vmatmul.mubr.bf16.vlgmr.msra.gmra.mrb[0].mxu1 %v618_v7 }
  0xc9   : > { %992 = vmatpush1.bf16.msra.mxu0 %v3426_v46  ;;  %1124 = vmatprep.mubr.bf16.mxu1 %v627_v8  ;;  %v575_v46 = vrot.slane %v525_v42, 7 }
  0xca   : > { %993 = vmatprep.subr.bf16.mxu0 %v3427_v47  ;;  %3263 = vmatpush3.bf16.msra.mxu1 %v3458_v11 }
  0xcb   : > { %v581_v47 = vsel %vm578_vm0, %v574_v45, %v575_v46  ;;  %v580_v54 = vsel %vm578_vm0, %v575_v46, %v576_v52  ;;  %3264 = vmatprep.subr.bf16.mxu1 %v3459_v12 }
  0xcd   : > { %994 = vmatpush1.bf16.msra.mxu0 %v3429_v50  ;;  %v623_v50 = vpack.c.bf16 %v523_v34, %v522_v33  ;;  %v706_v33 = vsub.s32 1, %v4155_v15 }
  0xce   : > { %995 = vmatprep.subr.bf16.mxu0 %v3430_v51  ;;  %v632_v51 = vpack.c.bf16 %v581_v47, %v582_v48  ;;  %3265 = vmatpush3.bf16.msra.mxu1 %v3459_v12 }
  0xcf   : > { %3266 = vmatprep.subr.bf16.mxu1 %v3460_v31 }
  0xd0   : > { %1125 = vmatmul.mubr.bf16.gmra.mrb[4].mxu1 %v619_v17 }
  0xd1   : > { %996 = vmatpush1.bf16.msra.mxu0 %v3432_v53  ;;  %1132 = vmatprep.mubr.bf16.mxu1 %v628_v18  ;;  %v579_v53 = vsel %vm578_vm0, %v576_v52, %v577_v25  ;;  %v698_v25 = vld [vmem:[%s5839_s8] sm:$0x7] }
  0xd2   : > { %997 = vmatprep.subr.bf16.mxu0 %v3433_v55  ;;  %v624_v55 = vpack.c.bf16 %v525_v42, %v524_v41  ;;  %v633_v56 = vpack.c.bf16 %v579_v53, %v580_v54  ;;  %v4235_v61 = vrot.slane %v698_v25, %v710_v58  ;;  %v4266_v49 = vrot.slane %v698_v25, %v706_v33 }
  0xd3   : > { %3267 = vmatpush3.bf16.msra.mxu1 %v3460_v31 }
  0xd5   : > { %998 = vmatpush1.bf16.msra.mxu0 %v3435_v60 }
  0xd6   : > { %999 = vmatprep.subr.bf16.mxu0 %v3436_v63 }
  0xd8   : > { %1133 = vmatmul.mubr.bf16.gmra.mrb[8].mxu1 %v620_v27 }
  0xd9   : > { %1000 = vmatpush1.bf16.msra.mxu0 %v3438_v1  ;;  %1140 = vmatprep.mubr.bf16.mxu1 %v629_v28  ;;  %v4238_v1 = vrot.slane %v698_v25, %v4233_v59 }
  0xda   : > { %1001 = vmatprep.subr.bf16.mxu0 %v3439_v4 }
  0xdd   : > { %1002 = vmatpush1.bf16.msra.mxu0 %v3441_v9 }
  0xe0   : > { %1004 = vmatmul.mubr.bf16.vlgmr.msra.gmra.mrb[0].mxu0 %v618_v7  ;;  %1141 = vmatmul.mubr.bf16.gmra.mrb[12].mxu1 %v621_v35 }
  0xe1   : > { %1013 = vmatprep.mubr.bf16.mxu0 %v627_v8  ;;  %1148 = vmatprep.mubr.bf16.mxu1 %v630_v36 }
  0xe8   : > { %1014 = vmatmul.mubr.bf16.gmra.mrb[4].mxu0 %v619_v17  ;;  %1149 = vmatmul.mubr.bf16.gmra.mrb[16].mxu1 %v622_v43 }
  0xe9   : > { %1023 = vmatprep.mubr.bf16.mxu0 %v628_v18  ;;  %1156 = vmatprep.mubr.bf16.mxu1 %v631_v44 }
  0xf0   : > { %1024 = vmatmul.mubr.bf16.gmra.mrb[8].mxu0 %v620_v27  ;;  %1157 = vmatmul.mubr.bf16.gmra.mrb[20].mxu1 %v623_v50  ;;  %v1348_v27 = vld [vmem:[%s5836_s5] sm:$0x1] }
  0xf1   : > { %1033 = vmatprep.mubr.bf16.mxu0 %v629_v28  ;;  %1164 = vmatprep.mubr.bf16.mxu1 %v632_v51  ;;  %v1531_v30 = vmul.f32 %v1348_v27, %v1348_v27 }
  0xf8   : > { %1034 = vmatmul.mubr.bf16.gmra.mrb[12].mxu0 %v621_v35  ;;  %1165 = vmatmul.mubr.bf16.gmra.mrb[24].mxu1 %v624_v55  ;;  %v1715_v35 = vmul.f32 %v1531_v30, %v1531_v30 }
  0xf9   : > { %1043 = vmatprep.mubr.bf16.mxu0 %v630_v36  ;;  %1172 = vmatprep.mubr.bf16.mxu1 %v633_v56 }
  0xfa   : > { %v1899_v42 = vmul.f32 %v1715_v35, %v1715_v35 }
 0x100   : > { %1044 = vmatmul.mubr.bf16.gmra.mrb[16].mxu0 %v622_v43  ;;  %1173 = vmatmul.mubr.bf16.gmra.mrb[28].mxu1 %v625_v57 }
 0x101   : > { %1053 = vmatprep.mubr.bf16.mxu0 %v631_v44 }
 0x108   : > { %1054 = vmatmul.mubr.bf16.gmra.mrb[20].mxu0 %v623_v50  ;;  %v2018_v50 = vmul.f32 %v1899_v42, %v1899_v42 }
 0x109   : > { %1063 = vmatprep.mubr.bf16.mxu0 %v632_v51 }
 0x10a   : > { %v4272_v58 = vmul.f32 %v2018_v50, %v2018_v50 }
 0x10c   : > { %5967 = vst [vmem:[#allocation23_spill] sm:$0xff] %v4272_v58 }
 0x110   : > { %1064 = vmatmul.mubr.bf16.gmra.mrb[24].mxu0 %v624_v55 }
 0x111   : > { %1073 = vmatprep.mubr.bf16.mxu0 %v633_v56 }
 0x118   : > { %1074 = vmatmul.mubr.bf16.gmra.mrb[28].mxu0 %v625_v57  ;;  %v4270_v57 = vrot.slane %v1348_v27, %v4233_v59 }
 0x19b   : > { %v3198_v60 = vpop.f32.mrb[0].mxu1 }
 0x19c   : > { %v3199_v62 = vpop.f32.mrb[1].mxu1 }
 0x19d   : > { %v3200_v63 = vadd.f32 %v3199_v62, %v3198_v60  ;;  %v3201_v0 = vpop.f32.mrb[2].mxu1  ;;  %v4275_v60 = vrot.slane %v1531_v30, %v4233_v59  ;;  %v4278_v62 = vrot.slane %v1715_v35, %v4233_v59 }
 0x19e   : > { %v3202_v20 = vpop.f32.mrb[3].mxu1 }
 0x19f   : > { %v1119_v2 = vadd.f32 %v3200_v63, %v4235_v61  ;;  %v3203_v3 = vadd.f32 %v3202_v20, %v3201_v0  ;;  %v3461_v63 = vld [vmem:[#allocation9 + $0x18] sm:$0xff]  }
 0x1a0   : > { %3268 = vmatprep.subr.bf16.mxu1 %v3461_v63 }
 0x1a1   : > { %v1122_v4 = vadd.f32 %v3203_v3, %v4235_v61  ;;  %v3144_v7 = vmul.f32 -1.442695, %v1119_v2  ;;  %v4283_v2 = vrot.slane %v1899_v42, %v4233_v59  ;;  %3269 = vmatpush3.bf16.msra.mxu1 %v3461_v63 }
 0x1a3   : > { %v3204_v10 = vpop.f32.mrb[4].mxu1  ;;  %v3145_v14 = vmul.f32 -1.442695, %v1122_v4  ;;  %3466 = vpow2.f32 %v3144_v7  ;;  %v4286_v4 = vrot.slane %v2018_v50, %v4233_v59 }
 0x1a4   : > { %v3205_v16 = vpop.f32.mrb[5].mxu1 }
 0x1a5   : > { %v3206_v21 = vadd.f32 %v3205_v16, %v3204_v10  ;;  %v3207_v22 = vpop.f32.mrb[6].mxu1  ;;  %3468 = vpow2.f32 %v3145_v14 }
 0x1a6   : > { %v3208_v23 = vpop.f32.mrb[7].mxu1 }
 0x1a7   : > { %v1127_v28 = vadd.f32 %v3206_v21, %v4235_v61  ;;  %v3209_v29 = vadd.f32 %v3208_v23, %v3207_v22 }
 0x1a9   : > { %v1130_v36 = vadd.f32 %v3209_v29, %v4235_v61  ;;  %v3146_v39 = vmul.f32 -1.442695, %v1127_v28 }
 0x1ab   : > { %v3210_v40 = vpop.f32.mrb[8].mxu1  ;;  %v3147_v51 = vmul.f32 -1.442695, %v1130_v36 }
 0x1ac   : > { %v3211_v43 = vpop.f32.mrb[9].mxu1 }
 0x1ad   : > { %v3212_v47 = vadd.f32 %v3211_v43, %v3210_v40  ;;  %v3213_v48 = vpop.f32.mrb[10].mxu1  ;;  %v3467_v56 = vpop.eup %3466 }
 0x1ae   : > { %v3214_v52 = vpop.f32.mrb[11].mxu1  ;;  %v1300_v10 = vadd.f32 1.0, %v3467_v56 }
 0x1af   : > { %v3215_v55 = vadd.f32 %v3214_v52, %v3213_v48  ;;  %v3469_v0 = vpop.eup %3468  ;;  %v1135_v11 = vadd.f32 %v3212_v47, %v4235_v61  ;;  %v3464_v47 = vld [vmem:[#allocation9 + $0x30] sm:$0xff]  }
 0x1b0   : > { %v1301_v27 = vadd.f32 1.0, %v3469_v0 }
 0x1b1   : > { %v1138_v33 = vadd.f32 %v3215_v55, %v4235_v61 }
 0x1b3   : > { %v1005_v5 = vpop.f32.mrb[0].mxu0  ;;  %v3216_v12 = vpop.f32.mrb[12].mxu1  ;;  %v3149_v52 = vmul.f32 -1.442695, %v1138_v33 }
 0x1b4   : > { %v1006_v8 = vadd.f32 %v1005_v5, %v4238_v1  ;;  %v4248_v9 = vpop.f32.mrb[1].mxu0  ;;  %v3217_v21 = vpop.f32.mrb[13].mxu1 }
 0x1b5   : > { %v1009_v13 = vpop.f32.mrb[2].mxu0  ;;  %v1008_v20 = vadd.f32 %v4248_v9, %v4266_v49  ;;  %v3462_v9 = vld [vmem:[#allocation9 + $0x20] sm:$0xff]   ;;  %v3218_v28 = vadd.f32 %v3217_v21, %v3216_v12  ;;  %v3219_v29 = vpop.f32.mrb[14].mxu1  ;;  %v3465_v21 = vld [vmem:[#allocation9 + $0x38] sm:$0xff]  }
 0x1b6   : > { %v1188_v17 = vadd.f32 %v4245_v6, %v1006_v8  ;;  %v1010_v18 = vadd.f32 %v1009_v13, %v4238_v1  ;;  %v4252_v19 = vpop.f32.mrb[3].mxu0  ;;  %3270 = vmatprep.subr.bf16.mxu1 %v3462_v9 }
 0x1b7   : > { %v1012_v14 = vadd.f32 %v4252_v19, %v4266_v49  ;;  %v3463_v19 = vld [vmem:[#allocation9 + $0x28] sm:$0xff]   ;;  %3271 = vmatpush3.bf16.msra.mxu1 %v3462_v9 }
 0x1b8   : > { %v1204_v24 = vmul.f32 1.442695, %v1188_v17  ;;  %v1189_v26 = vadd.f32 %v4245_v6, %v1010_v18  ;;  %v4300_v18 = vrot.slane %v4272_v58, %v4233_v59  ;;  %3272 = vmatprep.subr.bf16.mxu1 %v3463_v19 }
 0x1ba   : > { %3470 = vpow2.f32 %v1204_v24  ;;  %v1206_v32 = vmul.f32 1.442695, %v1189_v26 }
 0x1bb   : > { %v1015_v34 = vpop.f32.mrb[4].mxu0  ;;  %3273 = vmatpush3.bf16.msra.mxu1 %v3463_v19 }
 0x1bc   : > { %3472 = vpow2.f32 %v1206_v32  ;;  %v1016_v37 = vadd.f32 %v1015_v34, %v4238_v1  ;;  %v1017_v38 = vpop.f32.mrb[5].mxu0  ;;  %v3220_v34 = vpop.f32.mrb[15].mxu1  ;;  %3274 = vmatprep.subr.bf16.mxu1 %v3464_v47 }
 0x1bd   : > { %v1019_v41 = vpop.f32.mrb[6].mxu0  ;;  %3474 = vpow2.f32 %v3146_v39  ;;  %v1018_v16 = vadd.f32 %v1017_v38, %v4266_v49 }
 0x1be   : > { %v1190_v44 = vadd.f32 %v4245_v6, %v1016_v37  ;;  %v1020_v45 = vadd.f32 %v1019_v41, %v4238_v1  ;;  %v4264_v46 = vpop.f32.mrb[7].mxu0  ;;  %v3148_v37 = vmul.f32 -1.442695, %v1135_v11  ;;  %v4319_v41 = vadd.f32 %v3220_v34, %v3219_v29 }
 0x1bf   : > { %v1022_v43 = vadd.f32 %v4264_v46, %v4266_v49  ;;  %3275 = vmatpush3.bf16.msra.mxu1 %v3464_v47 }
 0x1c0   : > { %v1208_v53 = vmul.f32 1.442695, %v1190_v44  ;;  %v1191_v54 = vadd.f32 %v4245_v6, %v1020_v45  ;;  %3276 = vmatprep.subr.bf16.mxu1 %v3465_v21  ;;  %v4388_v47 = vadd.f32 %v4319_v41, %v4235_v61 }
 0x1c2   : > { %3476 = vpow2.f32 %v1208_v53  ;;  %v1210_v25 = vmul.f32 1.442695, %v1191_v54 }
 0x1c3   : > { %v1025_v3 = vpop.f32.mrb[8].mxu0  ;;  %3478 = vpow2.f32 %v3147_v51  ;;  %3277 = vmatpush3.bf16.msra.mxu1 %v3465_v21 }
 0x1c4   : > { %v4288_v5 = vpop.eup %3470  ;;  %3480 = vpow2.f32 %v1210_v25  ;;  %v1026_v7 = vadd.f32 %v1025_v3, %v4238_v1  ;;  %v1027_v8 = vpop.f32.mrb[9].mxu0 }
 0x1c5   : > { %v4293_v13 = vmul.f32 %v4288_v5, %v1008_v20  ;;  %v1029_v17 = vpop.f32.mrb[10].mxu0  ;;  %v5858_v31 = vrot.slane %v4288_v5, 7  ;;  %3482 = vrcp.f32 %v1300_v10  ;;  %v4329_v50 = vadd.f32 %v1027_v8, %v4266_v49  ;;  %v4338_v25 = vpop.f32.mrb[16].mxu1 }
 0x1c6   : > { %v4302_v22 = vpop.eup %3472  ;;  %v1192_v23 = vadd.f32 %v4245_v6, %v1026_v7  ;;  %v1030_v24 = vadd.f32 %v1029_v17, %v4238_v1  ;;  %v1031_v26 = vpop.f32.mrb[11].mxu0 }
 0x1c7   : > { %5968 = vst [vmem:[#allocation24_spill] sm:$0xff] %v4302_v22  ;;  %v4307_v30 = vmul.f32 %v4302_v22, %v1012_v14  ;;  %v1414_v32 = vrot.slane %v4302_v22, 7  ;;  %v5856_v38 = vrot.slane %v4293_v13, 7  ;;  %v3475_v42 = vpop.eup %3474  ;;  %v4344_v8 = vpop.f32.mrb[17].mxu1 }
 0x1c8   : > { %v1212_v35 = vmul.f32 1.442695, %v1192_v23  ;;  %v1193_v36 = vadd.f32 %v4245_v6, %v1030_v24  ;;  %v1302_v7 = vadd.f32 1.0, %v3475_v42  ;;  %v4357_v17 = vpop.f32.mrb[18].mxu1 }
 0x1c9   : > { %5969 = vst [vmem:[#allocation25_spill] sm:$0xff] %v4307_v30  ;;  %v1366_v39 = vrot.slane %v4307_v30, 7  ;;  %v1443_v40 = vsel %vm578_vm0, %v5858_v31, %v1414_v32  ;;  %v4364_v29 = vpop.f32.mrb[19].mxu1 }
 0x1ca   : > { %3484 = vpow2.f32 %v1212_v35  ;;  %v1214_v44 = vmul.f32 1.442695, %v1193_v36  ;;  %v1500_v45 = vmul.f32 %v4270_v57, %v1443_v40 }
 0x1cb   : > { %v1395_v48 = vsel %vm578_vm0, %v5856_v38, %v1366_v39  ;;  %v1035_v51 = vpop.f32.mrb[12].mxu0  ;;  %3486 = vrcp.f32 %v1301_v27  ;;  %v1032_v27 = vadd.f32 %v1031_v26, %v4266_v49 }
 0x1cc   : > { %v4331_v53 = vpop.eup %3476  ;;  %v1468_v46 = vmul.f32 %v4270_v57, %v1395_v48  ;;  %3488 = vpow2.f32 %v1214_v44  ;;  %v1036_v54 = vadd.f32 %v1035_v51, %v4238_v1  ;;  %v1037_v55 = vpop.f32.mrb[13].mxu0  ;;  %v4336_v56 = vadd.f32 %v4302_v22, %v1500_v45 }
 0x1cd   : > { %5970 = vst [vmem:[#allocation26_spill] sm:$0xff] %v4331_v53  ;;  %v3479_v63 = vpop.eup %3478  ;;  %v4341_v0 = vmul.f32 %v4331_v53, %v1018_v16  ;;  %v1039_v20 = vpop.f32.mrb[14].mxu0  ;;  %v5855_v3 = vrot.slane %v4331_v53, 7  ;;  %3490 = vpow2.f32 %v3148_v37  ;;  %v1143_v16 = vadd.f32 %v3218_v28, %v4235_v61 }
 0x1ce   : > { %v4346_v10 = vpop.eup %3480  ;;  %v4349_v11 = vadd.f32 %v1468_v46, %v4307_v30  ;;  %v1194_v12 = vadd.f32 %v4245_v6, %v1036_v54  ;;  %v1040_v9 = vadd.f32 %v1039_v20, %v4238_v1  ;;  %v4354_v14 = vpop.f32.mrb[15].mxu0  ;;  %3492 = vpow2.f32 %v3149_v52 }
 0x1cf   : > { %5971 = vst [vmem:[#allocation27_spill] sm:$0xff] %v4341_v0  ;;  %5972 = vst [vmem:[#allocation28_spill] sm:$0xff] %v4346_v10  ;;  %v1367_v23 = vrot.slane %v4341_v0, 7  ;;  %v4361_v24 = vmul.f32 %v4346_v10, %v1022_v43  ;;  %v1442_v28 = vsel %vm578_vm0, %v1414_v32, %v5855_v3  ;;  %v1303_v34 = vadd.f32 1.0, %v3479_v63  ;;  %v4375_v26 = vpop.eup %3482  ;;  %v4395_v63 = vpop.f32.mrb[20].mxu1 }
 0x1d0   : > { %v1216_v19 = vmul.f32 1.442695, %v1194_v12  ;;  %v1195_v33 = vadd.f32 %v4245_v6, %v1040_v9  ;;  %v1501_v37 = vmul.f32 %v4270_v57, %v1442_v28  ;;  %3494 = vrcp.f32 %v1302_v7  ;;  %5974 = vst [vmem:[#allocation30_spill] sm:$0xff] %v4375_v26  ;;  %v4405_v9 = vpop.f32.mrb[21].mxu1 }
 0x1d1   : > { %5973 = vst [vmem:[#allocation29_spill] sm:$0xff] %v4361_v24  ;;  %v1394_v35 = vsel %vm578_vm0, %v1366_v39, %v1367_v23  ;;  %v1368_v36 = vrot.slane %v4361_v24, 7  ;;  %v4378_v43 = vmul.f32 -1.442695, %v1143_v16  ;;  %v1038_v39 = vadd.f32 %v1037_v55, %v4266_v49 }
 0x1d2   : > { %v1469_v40 = vmul.f32 %v4270_v57, %v1394_v35  ;;  %3496 = vpow2.f32 %v1216_v19  ;;  %v1218_v42 = vmul.f32 1.442695, %v1195_v33  ;;  %v4384_v45 = vadd.f32 %v4331_v53, %v1501_v37 }
 0x1d3   : > { %v1393_v32 = vsel %vm578_vm0, %v1367_v23, %v1368_v36  ;;  %v1045_v44 = vpop.f32.mrb[16].mxu0  ;;  %v5857_v20 = vrot.slane %v4349_v11, 6 }
 0x1d4   : > { %5975 = vst [vmem:[#allocation31_spill] sm:$0xff] %v4384_v45  ;;  %v4390_v48 = vpop.eup %3484  ;;  %v1485_v51 = vadd.f32 %v1469_v40, %v4341_v0  ;;  %v1470_v52 = vmul.f32 %v4270_v57, %v1393_v32  ;;  %3498 = vpow2.f32 %v1218_v42  ;;  %v1046_v46 = vadd.f32 %v1045_v44, %v4238_v1  ;;  %v1047_v54 = vpop.f32.mrb[17].mxu0 }
 0x1d5   : > { %5976 = vst [vmem:[#allocation32_spill] sm:$0xff] %v4390_v48  ;;  %v4397_v55 = vpop.eup %3486  ;;  %v4402_v41 = vmul.f32 %v4390_v48, %v4329_v50  ;;  %v1049_v7 = vpop.f32.mrb[18].mxu0  ;;  %v5859_v12 = vrot.slane %v4384_v45, 6  ;;  %3500 = vrcp.f32 %v1303_v34  ;;  %v5860_v42 = vrot.slane %v4336_v56, 6 }
 0x1d6   : > { %5977 = vst [vmem:[#allocation33_spill] sm:$0xff] %v4397_v55  ;;  %v4407_v16 = vpop.eup %3488  ;;  %v1550_v23 = vrot.slane %v1485_v51, 6  ;;  %v1486_v19 = vadd.f32 %v1470_v52, %v4361_v24  ;;  %v1196_v33 = vadd.f32 %v4245_v6, %v1046_v46  ;;  %v1050_v28 = vadd.f32 %v1049_v7, %v4238_v1  ;;  %v4412_v35 = vpop.f32.mrb[19].mxu0 }
 0x1d7   : > { %5978 = vst [vmem:[#allocation34_spill] sm:$0xff] %v4402_v41  ;;  %5979 = vst [vmem:[#allocation35_spill] sm:$0xff] %v4407_v16  ;;  %v4414_v50 = vpop.f32.mrb[22].mxu1  ;;  %v3491_v37 = vpop.eup %3490  ;;  %v1369_v34 = vrot.slane %v4402_v41, 7  ;;  %v4419_v21 = vmul.f32 %v4407_v16, %v1032_v27 }
 0x1d8   : > { %5980 = vst [vmem:[#allocation36_spill] sm:$0xff] %v4414_v50  ;;  %v4422_v32 = vpop.f32.mrb[23].mxu1  ;;  %v1578_v44 = vsel %vm1564_vm2, %v5857_v20, %v1550_v23  ;;  %v1551_v52 = vrot.slane %v1486_v19, 6  ;;  %v1220_v46 = vmul.f32 1.442695, %v1196_v33  ;;  %v1197_v7 = vadd.f32 %v4245_v6, %v1050_v28  ;;  %v4430_v3 = vpop.eup %3492 }
 0x1d9   : > { %5981 = vst [vmem:[#allocation37_spill] sm:$0xff] %v4419_v21  ;;  %5982 = vst [vmem:[#allocation38_spill] sm:$0xff] %v4422_v32  ;;  %v1653_v27 = vmul.f32 %v4275_v60, %v1578_v44  ;;  %v1392_v40 = vsel %vm578_vm0, %v1368_v36, %v1369_v34  ;;  %v1370_v38 = vrot.slane %v4419_v21, 7  ;;  %v4442_v20 = vsel %vm1564_vm2, %v5860_v42, %v5859_v12 }
 0x1da   : > { %5983 = vst [vmem:[#allocation39_spill] sm:$0xff] %v4442_v20  ;;  %v1577_v33 = vsel %vm1564_vm2, %v1550_v23, %v1551_v52  ;;  %v1471_v28 = vmul.f32 %v4270_v57, %v1392_v40  ;;  %3502 = vpow2.f32 %v1220_v46  ;;  %v1222_v44 = vmul.f32 1.442695, %v1197_v7  ;;  %v4447_v31 = vpop.eup %3494  ;;  %v4461_v7 = vpop.f32.mrb[24].mxu1 }
 0x1db   : > { %5984 = vst [vmem:[#allocation40_spill] sm:$0xff] %v4447_v31  ;;  %v4449_v36 = vadd.f32 %v1653_v27, %v1485_v51  ;;  %v1654_v26 = vmul.f32 %v4275_v60, %v1577_v33  ;;  %v1391_v55 = vsel %vm578_vm0, %v1369_v34, %v1370_v38  ;;  %v1042_v12 = vadd.f32 %v4354_v14, %v4266_v49  ;;  %v1055_v42 = vpop.f32.mrb[20].mxu0  ;;  %v4469_v0 = vpop.f32.mrb[25].mxu1 }
 0x1dc   : > { %v4456_v24 = vpop.eup %3496  ;;  %v1487_v23 = vadd.f32 %v1471_v28, %v4402_v41  ;;  %v1472_v40 = vmul.f32 %v4270_v57, %v1391_v55  ;;  %3504 = vpow2.f32 %v1222_v44  ;;  %v1056_v46 = vadd.f32 %v1055_v42, %v4238_v1  ;;  %v1057_v51 = vpop.f32.mrb[21].mxu0  ;;  %5987 = vst [vmem:[#allocation43_spill] sm:$0xff] %v4461_v7  ;;  %5989 = vst [vmem:[#allocation45_spill] sm:$0xff] %v4469_v0 }
 0x1dd   : > { %5985 = vst [vmem:[#allocation41_spill] sm:$0xff] %v4449_v36  ;;  %5986 = vst [vmem:[#allocation42_spill] sm:$0xff] %v4456_v24  ;;  %v1670_v27 = vadd.f32 %v1654_v26, %v1486_v19  ;;  %v4464_v33 = vmul.f32 %v4456_v24, %v1038_v39  ;;  %v1048_v34 = vadd.f32 %v1047_v54, %v4266_v49  ;;  %v1059_v14 = vpop.f32.mrb[22].mxu0  ;;  %v4467_v31 = vadd.f32 1.0, %v3491_v37  ;;  %v4478_v39 = vpop.f32.mrb[26].mxu1 }
 0x1de   : > { %v4471_v28 = vpop.eup %3498  ;;  %v1552_v55 = vrot.slane %v1487_v23, 6  ;;  %v1488_v44 = vadd.f32 %v1472_v40, %v4419_v21  ;;  %v1198_v42 = vadd.f32 %v4245_v6, %v1056_v46  ;;  %v1060_v41 = vadd.f32 %v1059_v14, %v4238_v1  ;;  %v4476_v26 = vpop.f32.mrb[23].mxu0  ;;  %5991 = vst [vmem:[#allocation47_spill] sm:$0xff] %v4478_v39 }
 0x1df   : > { %5988 = vst [vmem:[#allocation44_spill] sm:$0xff] %v4464_v33  ;;  %5990 = vst [vmem:[#allocation46_spill] sm:$0xff] %v4471_v28  ;;  %v4480_v19 = vpop.eup %3500  ;;  %v5873_v54 = vrot.slane %v4449_v36, 4  ;;  %v1735_v37 = vrot.slane %v1670_v27, 4  ;;  %v1371_v22 = vrot.slane %v4464_v33, 7  ;;  %v4485_v30 = vmul.f32 %v4471_v28, %v1042_v12  ;;  %v4487_v59 = vpop.f32.mrb[27].mxu1 }
 0x1e0   : > { %5992 = vst [vmem:[#allocation48_spill] sm:$0xff] %v4480_v19  ;;  %5994 = vst [vmem:[#allocation50_spill] sm:$0xff] %v4487_v59  ;;  %v1576_v40 = vsel %vm1564_vm2, %v1551_v52, %v1552_v55  ;;  %v1553_v46 = vrot.slane %v1488_v44, 6  ;;  %v1224_v14 = vmul.f32 1.442695, %v1198_v42  ;;  %v1199_v21 = vadd.f32 %v4245_v6, %v1060_v41 }
 0x1e1   : > { %5993 = vst [vmem:[#allocation49_spill] sm:$0xff] %v4485_v30  ;;  %v1761_v19 = vsel %vm1748_vm3, %v5873_v54, %v1735_v37  ;;  %v1655_v58 = vmul.f32 %v4275_v60, %v1576_v40  ;;  %v1390_v12 = vsel %vm578_vm0, %v1370_v38, %v1371_v22  ;;  %v1372_v20 = vrot.slane %v4485_v30, 7 }
 0x1e2   : > { %v1838_v45 = vmul.f32 %v4278_v62, %v1761_v19  ;;  %v1575_v52 = vsel %vm1564_vm2, %v1552_v55, %v1553_v46  ;;  %v1473_v42 = vmul.f32 %v4270_v57, %v1390_v12  ;;  %3506 = vpow2.f32 %v1224_v14 }
 0x1e3   : > { %v1671_v41 = vadd.f32 %v1655_v58, %v1487_v23  ;;  %v1656_v36 = vmul.f32 %v4275_v60, %v1575_v52  ;;  %v1389_v54 = vsel %vm578_vm0, %v1371_v22, %v1372_v20  ;;  %v1226_v40 = vmul.f32 1.442695, %v1199_v21  ;;  %v1065_v53 = vpop.f32.mrb[24].mxu0  ;;  %v4517_v58 = vpop.f32.mrb[28].mxu1 }
 0x1e4   : > { %v4507_v10 = vpop.eup %3502  ;;  %v4509_v38 = vadd.f32 %v1838_v45, %v1670_v27  ;;  %v1489_v19 = vadd.f32 %v1473_v42, %v4464_v33  ;;  %v1474_v28 = vmul.f32 %v4270_v57, %v1389_v54  ;;  %v1052_v55 = vadd.f32 %v4412_v35, %v4266_v49  ;;  %v4515_v14 = vpop.f32.mrb[25].mxu0  ;;  %5997 = vst [vmem:[#allocation53_spill] sm:$0xff] %v4517_v58 }
 0x1e5   : > { %5995 = vst [vmem:[#allocation51_spill] sm:$0xff] %v4507_v10  ;;  %v1736_v23 = vrot.slane %v1671_v41, 4  ;;  %v1672_v12 = vadd.f32 %v1656_v36, %v1488_v44  ;;  %v4520_v22 = vmul.f32 %v4507_v10, %v1048_v34  ;;  %v1066_v21 = vadd.f32 %v1065_v53, %v4238_v1  ;;  %v4523_v45 = vpop.f32.mrb[26].mxu0  ;;  %v4525_v27 = vpop.f32.mrb[29].mxu1 }
 0x1e6   : > { %5996 = vst [vmem:[#allocation52_spill] sm:$0xff] %v4509_v38  ;;  %5999 = vst [vmem:[#allocation55_spill] sm:$0xff] %v4525_v27  ;;  %v4527_v52 = vpop.eup %3504  ;;  %v1554_v54 = vrot.slane %v1489_v19, 6  ;;  %v1490_v35 = vadd.f32 %v1474_v28, %v4485_v30  ;;  %v1058_v42 = vadd.f32 %v1057_v51, %v4266_v49  ;;  %3508 = vpow2.f32 %v1226_v40  ;;  %v4531_v33 = vpop.f32.mrb[27].mxu0 }
 0x1e7   : > { %5998 = vst [vmem:[#allocation54_spill] sm:$0xff] %v4520_v22  ;;  %6000 = vst [vmem:[#allocation56_spill] sm:$0xff] %v4527_v52  ;;  %v4533_v36 = vpop.f32.mrb[30].mxu1  ;;  %v1958_v34 = vmul.f32 %v4283_v2, %v4509_v38  ;;  %v1760_v53 = vsel %vm1748_vm3, %v1735_v37, %v1736_v23  ;;  %v1737_v44 = vrot.slane %v1672_v12, 4  ;;  %v1373_v24 = vrot.slane %v4520_v22, 7 }
 0x1e8   : > { %6001 = vst [vmem:[#allocation57_spill] sm:$0xff] %v4533_v36  ;;  %v4540_v27 = vpop.f32.mrb[31].mxu1  ;;  %v1839_v28 = vmul.f32 %v4278_v62, %v1760_v53  ;;  %v1574_v51 = vsel %vm1564_vm2, %v1553_v46, %v1554_v54  ;;  %v1555_v40 = vrot.slane %v1490_v35, 6  ;;  %v4546_v30 = vmul.f32 %v4527_v52, %v1052_v55 }
 0x1e9   : > { %6002 = vst [vmem:[#allocation58_spill] sm:$0xff] %v4540_v27  ;;  %v1759_v38 = vsel %vm1748_vm3, %v1736_v23, %v1737_v44  ;;  %v1657_v36 = vmul.f32 %v4275_v60, %v1574_v51  ;;  %v1388_v37 = vsel %vm578_vm0, %v1372_v20, %v1373_v24  ;;  %v1200_v58 = vadd.f32 %v4245_v6, %v1066_v21 }
 0x1ea   : > { %6003 = vst [vmem:[#allocation59_spill] sm:$0xff] %v4546_v30  ;;  %v1855_v27 = vadd.f32 %v1839_v28, %v1671_v41  ;;  %v1840_v53 = vmul.f32 %v4278_v62, %v1759_v38  ;;  %v1573_v46 = vsel %vm1564_vm2, %v1554_v54, %v1555_v40  ;;  %v1475_v59 = vmul.f32 %v4270_v57, %v1388_v37 }
 0x1eb   : > { %v1673_v55 = vadd.f32 %v1657_v36, %v1489_v19  ;;  %v1658_v39 = vmul.f32 %v4275_v60, %v1573_v46  ;;  %v1374_v23 = vrot.slane %v4546_v30, 7  ;;  %v1228_v0 = vmul.f32 1.442695, %v1200_v58  ;;  %v4560_v51 = vpop.f32.mrb[28].mxu0 }
 0x1ec   : > { %v4562_v7 = vpop.eup %3506  ;;  %v1959_v20 = vmul.f32 %v4283_v2, %v1855_v27  ;;  %v4565_v41 = vadd.f32 %v1958_v34, %v1855_v27  ;;  %v1856_v38 = vadd.f32 %v1840_v53, %v1672_v12  ;;  %v1491_v21 = vadd.f32 %v1475_v59, %v4520_v22  ;;  %v4568_v54 = vpop.f32.mrb[29].mxu0 }
 0x1ed   : > { %6004 = vst [vmem:[#allocation60_spill] sm:$0xff] %v4562_v7  ;;  %v1738_v28 = vrot.slane %v1673_v55, 4  ;;  %v1674_v19 = vadd.f32 %v1658_v39, %v1490_v35  ;;  %v1387_v36 = vsel %vm578_vm0, %v1373_v24, %v1374_v23  ;;  %v4573_v58 = vmul.f32 %v4562_v7, %v1058_v42  ;;  %v4575_v37 = vpop.f32.mrb[30].mxu0 }
 0x1ee   : > { %v4577_v46 = vadd.f32 %v1959_v20, %v1856_v38  ;;  %v1556_v32 = vrot.slane %v1491_v21, 6  ;;  %v1062_v12 = vadd.f32 %v4476_v26, %v4266_v49  ;;  %v4581_v27 = vpop.f32.mrb[31].mxu0  ;;  %v4584_v59 = vadd.f32 1.0, %v4430_v3 }
 0x1ef   : > { %6005 = vst [vmem:[#allocation61_spill] sm:$0xff] %v4573_v58  ;;  %v1758_v39 = vsel %vm1748_vm3, %v1737_v44, %v1738_v28  ;;  %v1739_v24 = vrot.slane %v1674_v19, 4  ;;  %v1476_v35 = vmul.f32 %v4270_v57, %v1387_v36  ;;  %v1375_v42 = vrot.slane %v4573_v58, 7 }
 0x1f0   : > { %6006 = vst [vmem:[#allocation62_spill] sm:$0xff] %v4577_v46  ;;  %v4590_v34 = vpop.eup %3508  ;;  %v1960_v53 = vmul.f32 %v4283_v2, %v1856_v38  ;;  %v1841_v20 = vmul.f32 %v4278_v62, %v1758_v39  ;;  %v1572_v26 = vsel %vm1564_vm2, %v1555_v40, %v1556_v32  ;;  %3510 = vpow2.f32 %v1228_v0 }
 0x1f1   : > { %6007 = vst [vmem:[#allocation63_spill] sm:$0xff] %v4590_v34  ;;  %v1757_v3 = vsel %vm1748_vm3, %v1738_v28, %v1739_v24  ;;  %v1659_v44 = vmul.f32 %v4275_v60, %v1572_v26  ;;  %v1492_v22 = vadd.f32 %v1476_v35, %v4546_v30  ;;  %v1386_v36 = vsel %vm578_vm0, %v1374_v23, %v1375_v42 }
 0x1f2   : > { %v1857_v7 = vadd.f32 %v1841_v20, %v1673_v55  ;;  %v1842_v50 = vmul.f32 %v4278_v62, %v1757_v3  ;;  %v1477_v38 = vmul.f32 %v4270_v57, %v1386_v36  ;;  %v4605_v39 = vmul.f32 %v4590_v34, %v1062_v12 }
 0x1f3   : > { %v2079_v0 = vmul.f32 %v4286_v4, %v4565_v41  ;;  %v1675_v40 = vadd.f32 %v1659_v44, %v1491_v21  ;;  %v1557_v28 = vrot.slane %v1492_v22, 6  ;;  %v1070_v26 = vadd.f32 %v4523_v45, %v4238_v1 }
 0x1f4   : > { %6008 = vst [vmem:[#allocation64_spill] sm:$0xff] %v4605_v39  ;;  %v1961_v35 = vmul.f32 %v4283_v2, %v1857_v7  ;;  %v1976_v30 = vadd.f32 %v1960_v53, %v1857_v7  ;;  %v1858_v23 = vadd.f32 %v1842_v50, %v1674_v19  ;;  %v1493_v55 = vadd.f32 %v1477_v38, %v4573_v58 }
 0x1f5   : > { %v1740_v20 = vrot.slane %v1675_v40, 4  ;;  %v1571_v3 = vsel %vm1564_vm2, %v1556_v32, %v1557_v28  ;;  %v1376_v12 = vrot.slane %v4605_v39, 7  ;;  %v1201_v36 = vadd.f32 %v4245_v6, %v1070_v26 }
 0x1f6   : > { %v2080_v21 = vmul.f32 %v4286_v4, %v4577_v46  ;;  %v4619_v44 = vadd.f32 %v2079_v0, %v1976_v30  ;;  %v1977_v45 = vadd.f32 %v1961_v35, %v1858_v23  ;;  %3512 = vrcp.f32 %v4467_v31 }
 0x1f7   : > { %v1756_v50 = vsel %vm1748_vm3, %v1739_v24, %v1740_v20  ;;  %v1660_v7 = vmul.f32 %v4275_v60, %v1571_v3  ;;  %v1558_v19 = vrot.slane %v1493_v55, 6  ;;  %v1385_v32 = vsel %vm578_vm0, %v1375_v42, %v1376_v12 }
 0x1f8   : > { %6009 = vst [vmem:[#allocation65_spill] sm:$0xff] %v4619_v44  ;;  %v4627_v53 = vadd.f32 %v2080_v21, %v1977_v45  ;;  %v1843_v38 = vmul.f32 %v4278_v62, %v1756_v50  ;;  %v1068_v0 = vadd.f32 %v4515_v14, %v4266_v49  ;;  %v4633_v26 = vmul.f32 -1.442695, %v4388_v47 }
 0x1f9   : > { %v1676_v31 = vadd.f32 %v1660_v7, %v1492_v22  ;;  %v1570_v24 = vsel %vm1564_vm2, %v1557_v28, %v1558_v19  ;;  %v1478_v35 = vmul.f32 %v4270_v57, %v1385_v32  ;;  %v1230_v3 = vmul.f32 1.442695, %v1201_v36 }
 0x1fa   : > { %v4638_v58 = vpop.eup %3510  ;;  %v1962_v21 = vmul.f32 %v4283_v2, %v1858_v23  ;;  %v1859_v50 = vadd.f32 %v1843_v38, %v1675_v40  ;;  %v1661_v46 = vmul.f32 %v4275_v60, %v1570_v24  ;;  %v2081_v28 = vmul.f32 %v4286_v4, %v1976_v30 }
 0x1fb   : > { %6010 = vst [vmem:[#allocation66_spill] sm:$0xff] %v4638_v58  ;;  %v1741_v47 = vrot.slane %v1676_v31, 4  ;;  %v1494_v22 = vadd.f32 %v1478_v35, %v4605_v39  ;;  %v4646_v7 = vmul.f32 %v4638_v58, %v1068_v0  ;;  %3514 = vpow2.f32 %v1230_v3 }
 0x1fc   : > { %v1978_v36 = vadd.f32 %v1962_v21, %v1859_v50  ;;  %v1677_v32 = vadd.f32 %v1661_v46, %v1493_v55  ;;  %v1076_v38 = vadd.f32 %v4560_v51, %v4238_v1  ;;  %v1963_v24 = vmul.f32 %v4283_v2, %v1859_v50 }
 0x1fd   : > { %6011 = vst [vmem:[#allocation67_spill] sm:$0xff] %v4646_v7  ;;  %v1755_v42 = vsel %vm1748_vm3, %v1740_v20, %v1741_v47  ;;  %v1559_v23 = vrot.slane %v1494_v22, 6  ;;  %v5891_v40 = vrot.slane %v4646_v7, 7  ;;  %3516 = vrcp.f32 %v4584_v59 }
 0x1fe   : > { %v4655_v35 = vadd.f32 %v2081_v28, %v1978_v36  ;;  %v1844_v0 = vmul.f32 %v4278_v62, %v1755_v42  ;;  %v1742_v14 = vrot.slane %v1677_v32, 4  ;;  %v1202_v55 = vadd.f32 %v4245_v6, %v1076_v38 }
 0x1ff   : > { %v1569_v30 = vsel %vm1564_vm2, %v1558_v19, %v1559_v23  ;;  %v1384_v46 = vsel %vm578_vm0, %v1376_v12, %v5891_v40  ;;  %v1080_v12 = vadd.f32 %v4575_v37, %v4238_v1  ;;  %v2082_v59 = vmul.f32 %v4286_v4, %v1977_v45 }
 0x200   : > { %6012 = vst [vmem:[#allocation68_spill] sm:$0xff] %v4655_v35  ;;  %v4666_v51 = vpop.eup %3512  ;;  %v1860_v3 = vadd.f32 %v1844_v0, %v1676_v31  ;;  %v1754_v42 = vsel %vm1748_vm3, %v1741_v47, %v1742_v14  ;;  %v1662_v21 = vmul.f32 %v4275_v60, %v1569_v30  ;;  %v1479_v50 = vmul.f32 %v4270_v57, %v1384_v46 }
 0x201   : > { %6013 = vst [vmem:[#allocation69_spill] sm:$0xff] %v4666_v51  ;;  %v1845_v19 = vmul.f32 %v4278_v62, %v1754_v42  ;;  %v1232_v28 = vmul.f32 1.442695, %v1202_v55  ;;  %v1203_v47 = vadd.f32 %v4245_v6, %v1080_v12  ;;  %v2202_v30 = vmul.f32 %v4300_v18, %v4619_v44 }
 0x202   : > { %v1964_v38 = vmul.f32 %v4283_v2, %v1860_v3  ;;  %v1979_v40 = vadd.f32 %v1963_v24, %v1860_v3  ;;  %v1678_v20 = vadd.f32 %v1662_v21, %v1494_v22  ;;  %v4679_v0 = vadd.f32 %v1479_v50, %v4646_v7 }
 0x203   : > { %v1861_v31 = vadd.f32 %v1845_v19, %v1677_v32  ;;  %3518 = vpow2.f32 %v1232_v28  ;;  %v1072_v1 = vadd.f32 %v4531_v33, %v4266_v49  ;;  %v2083_v37 = vmul.f32 %v4286_v4, %v1978_v36 }
 0x204   : > { %v4684_v46 = vadd.f32 %v2082_v59, %v1979_v40  ;;  %v1743_v55 = vrot.slane %v1678_v20, 4  ;;  %v1560_v22 = vrot.slane %v4679_v0, 6  ;;  %v1234_v32 = vmul.f32 1.442695, %v1203_v47 }
 0x205   : > { %v1980_v45 = vadd.f32 %v1964_v38, %v1861_v31  ;;  %v4690_v24 = vpop.eup %3514  ;;  %v5892_v3 = vrot.slane %v4638_v58, 7  ;;  %3520 = vpow2.f32 %v4378_v43  ;;  %v3224_v42 = vadd.f32 %v4344_v8, %v4338_v25 }
 0x206   : > { %6014 = vst [vmem:[#allocation70_spill] sm:$0xff] %v4684_v46  ;;  %6015 = vst [vmem:[#allocation71_spill] sm:$0xff] %v4690_v24  ;;  %v1753_v6 = vsel %vm1748_vm3, %v1742_v14, %v1743_v55  ;;  %v1965_v33 = vmul.f32 %v4283_v2, %v1861_v31  ;;  %v1568_v19 = vsel %vm1564_vm2, %v1559_v23, %v1560_v22  ;;  %3522 = vpow2.f32 %v1234_v32 }
 0x207   : > { %v2099_v21 = vadd.f32 %v2083_v37, %v1980_v45  ;;  %v1846_v36 = vmul.f32 %v4278_v62, %v1753_v6  ;;  %v1663_v50 = vmul.f32 %v4275_v60, %v1568_v19  ;;  %v4704_v28 = vmul.f32 %v4690_v24, %v1072_v1  ;;  %v4707_v43 = vpop.eup %3516 }
 0x208   : > { %v1426_v14 = vrot.slane %v4690_v24, 7  ;;  %6017 = vst [vmem:[#allocation73_spill] sm:$0xff] %v4707_v43  ;;  %v2203_v25 = vmul.f32 %v4300_v18, %v4627_v53  ;;  %v3227_v47 = vadd.f32 %v4364_v29, %v4357_v17  ;;  %v2084_v1 = vmul.f32 %v4286_v4, %v1979_v40 }
 0x209   : > { %6016 = vst [vmem:[#allocation72_spill] sm:$0xff] %v4704_v28  ;;  %v4712_v12 = vadd.f32 %v2202_v30, %v2099_v21  ;;  %v1862_v59 = vadd.f32 %v1846_v36, %v1678_v20  ;;  %v4715_v23 = vadd.f32 %v1663_v50, %v4679_v0  ;;  %v1378_v38 = vrot.slane %v4704_v28, 7 }
 0x20a   : > { %v1431_v31 = vsel %vm578_vm0, %v5892_v3, %v1426_v14  ;;  %v1078_v30 = vadd.f32 %v4568_v54, %v4266_v49  ;;  %v1151_v20 = vadd.f32 %v3224_v42, %v4235_v61  ;;  %v4730_v0 = vmul.f32 %v4300_v18, %v4655_v35 }
 0x20b   : > { %6018 = vst [vmem:[#allocation74_spill] sm:$0xff] %v4712_v12  ;;  %v1981_v37 = vadd.f32 %v1965_v33, %v1862_v59  ;;  %v1744_v32 = vrot.slane %v4715_v23, 4  ;;  %v6019_v6 = vrot.slane %v4646_v7, 7  ;;  %v4740_v17 = vadd.f32 %v4405_v9, %v4395_v63 }
 0x20c   : > { %v1082_v42 = vadd.f32 %v4581_v27, %v4266_v49  ;;  %v1512_v33 = vmul.f32 %v4270_v57, %v1431_v31  ;;  %3524 = vpow2.f32 %v4633_v26  ;;  %v4761_v27 = vmul.f32 %v4300_v18, %v4684_v46 }
 0x20d   : > { %v1383_v36 = vsel %vm578_vm0, %v6019_v6, %v1378_v38  ;;  %v4742_v29 = vpop.eup %3518  ;;  %v2100_v54 = vadd.f32 %v2084_v1, %v1981_v37  ;;  %v1752_v19 = vsel %vm1748_vm3, %v1743_v55, %v1744_v32  ;;  %v4764_v55 = vmul.f32 %v4286_v4, %v1980_v45 }
 0x20e   : > { %6020 = vst [vmem:[#allocation75_spill] sm:$0xff] %v4742_v29  ;;  %v1480_v40 = vmul.f32 %v4270_v57, %v1383_v36  ;;  %v4751_v50 = vmul.f32 %v4742_v29, %v1078_v30  ;;  %v1427_v6 = vrot.slane %v4742_v29, 7  ;;  %v1847_v9 = vmul.f32 %v4278_v62, %v1752_v19 }
 0x20f   : > { %v4755_v63 = vadd.f32 %v2203_v25, %v2100_v54  ;;  %v3152_v36 = vmul.f32 -1.442695, %v1151_v20  ;;  %v3521_v49 = vpop.eup %3520  ;;  %v4770_v25 = vmul.f32 %v4300_v18, %v2099_v21  ;;  %v4774_v20 = vadd.f32 %v4690_v24, %v1512_v33 }
 0x210   : > { %6021 = vst [vmem:[#allocation76_spill] sm:$0xff] %v4751_v50  ;;  %v1496_v1 = vadd.f32 %v1480_v40, %v4704_v28  ;;  %v1379_v31 = vrot.slane %v4751_v50, 7  ;;  %v1430_v26 = vsel %vm578_vm0, %v1426_v14, %v1427_v6  ;;  %v1863_v30 = vadd.f32 %v1847_v9, %v4715_v23  ;;  %v4776_v19 = vpop.eup %3522 }
 0x211   : > { %6022 = vst [vmem:[#allocation77_spill] sm:$0xff] %v4755_v63  ;;  %6023 = vst [vmem:[#allocation78_spill] sm:$0xff] %v4776_v19  ;;  %v1966_v3 = vmul.f32 %v4283_v2, %v1862_v59  ;;  %v4780_v45 = vmul.f32 %v4286_v4, %v1981_v37  ;;  %v4785_v14 = vadd.f32 %v3227_v47, %v4235_v61  ;;  %3526 = vpow2.f32 %v3152_v36 }
 0x212   : > { %v1561_v40 = vrot.slane %v1496_v1, 6  ;;  %v1382_v8 = vsel %vm578_vm0, %v1378_v38, %v1379_v31  ;;  %v1513_v33 = vmul.f32 %v4270_v57, %v1430_v26  ;;  %v4792_v9 = vmul.f32 %v4300_v18, %v2100_v54 }
 0x213   : > { %v1481_v23 = vmul.f32 %v4270_v57, %v1382_v8  ;;  %v4796_v37 = vmul.f32 %v4776_v19, %v1082_v42  ;;  %v1428_v38 = vrot.slane %v4776_v19, 7  ;;  %v1967_v47 = vmul.f32 %v4283_v2, %v1863_v30 }
 0x214   : > { %v1567_v21 = vsel %vm1564_vm2, %v1560_v22, %v1561_v40  ;;  %v1306_v26 = vadd.f32 1.0, %v3521_v49  ;;  %v6025_v42 = vrot.slane %v4288_v5, 7  ;;  %v1529_v8 = vadd.f32 %v4742_v29, %v1513_v33 }
 0x215   : > { %v1664_v59 = vmul.f32 %v4275_v60, %v1567_v21  ;;  %6024 = vst [vmem:[#allocation79_spill] sm:$0xff] %v4796_v37  ;;  %v1497_v22 = vadd.f32 %v1481_v23, %v4751_v50  ;;  %v1380_v54 = vrot.slane %v4796_v37, 7  ;;  %v1429_v21 = vsel %vm578_vm0, %v1427_v6, %v1428_v38 }
 0x216   : > { %v1444_v28 = vsel %vm578_vm0, %v1428_v38, %v6025_v42  ;;  %v1514_v23 = vmul.f32 %v4270_v57, %v1429_v21  ;;  %v3525_v49 = vpop.eup %3524  ;;  %v6026_v6 = vrot.slane %v4293_v13, 7  ;;  %3528 = vrcp.f32 %v1306_v26 }
 0x217   : > { %v1680_v36 = vadd.f32 %v1664_v59, %v1496_v1  ;;  %v1562_v7 = vrot.slane %v1497_v22, 6  ;;  %v1445_v24 = vsel %vm1349_vm4, %v1444_v28, 0.0  ;;  %v1381_v59 = vsel %vm578_vm0, %v1379_v31, %v1380_v54 }
 0x218   : > { %v1396_v50 = vsel %vm578_vm0, %v1380_v54, %v6026_v6  ;;  %v1499_v38 = vmul.f32 %v4270_v57, %v1445_v24  ;;  %v1482_v33 = vmul.f32 %v4270_v57, %v1381_v59  ;;  %v1530_v21 = vadd.f32 %v4776_v19, %v1514_v23 }
 0x219   : > { %v1745_v1 = vrot.slane %v1680_v36, 4  ;;  %v1566_v42 = vsel %vm1564_vm2, %v1561_v40, %v1562_v7  ;;  %v1397_v28 = vsel %vm1349_vm4, %v1396_v50, 0.0  ;;  %v1611_v6 = vrot.slane %v1529_v8, 6 }
 0x21a   : > { %v1665_v29 = vmul.f32 %v4275_v60, %v1566_v42  ;;  %v1467_v39 = vmul.f32 %v4270_v57, %v1397_v28  ;;  %v1515_v54 = vadd.f32 %v4288_v5, %v1499_v38  ;;  %v1498_v40 = vadd.f32 %v1482_v33, %v4796_v37 }
 0x21b   : > { %v1751_v31 = vsel %vm1748_vm3, %v1744_v32, %v1745_v1  ;;  %v1612_v63 = vrot.slane %v1530_v21, 6  ;;  %v4835_v23 = vadd.f32 1.0, %v3525_v49  ;;  %v4837_v19 = vpop.eup %3526  ;;  %v1982_v32 = vadd.f32 %v1966_v3, %v1863_v30 }
 0x21c   : > { %v1848_v24 = vmul.f32 %v4278_v62, %v1751_v31  ;;  %v1681_v50 = vadd.f32 %v1665_v29, %v1497_v22  ;;  %v1483_v59 = vadd.f32 %v1467_v39, %v4293_v13  ;;  %v1597_v12 = vrot.slane %v1515_v54, 6 }
 0x21d   : > { %v1563_v43 = vrot.slane %v1498_v40, 6  ;;  %v6027_v31 = vrot.slane %v4336_v56, 6  ;;  %v6028_v3 = vrot.slane %v4774_v20, 6  ;;  %v6029_v49 = vrot.slane %v4349_v11, 6 }
 0x21e   : > { %v1864_v42 = vadd.f32 %v1848_v24, %v1680_v36  ;;  %v1746_v28 = vrot.slane %v1681_v50, 4  ;;  %v1548_v38 = vrot.slane %v1483_v59, 6  ;;  %v1628_v29 = vsel %vm1564_vm2, %v1612_v63, %v1597_v12 }
 0x21f   : > { %v1627_v33 = vsel %vm1564_vm2, %v1597_v12, %v6027_v31  ;;  %v1565_v22 = vsel %vm1564_vm2, %v1562_v7, %v1563_v43  ;;  %v1614_v30 = vsel %vm1564_vm2, %v6028_v3, %v1611_v6  ;;  %v1629_v26 = vsel %vm1532_vm5, %v1628_v29, 0.0 }
 0x220   : > { %v4845_v39 = vadd.f32 %v1967_v47, %v1864_v42  ;;  %v1750_v36 = vsel %vm1748_vm3, %v1745_v1, %v1746_v28  ;;  %v1579_v12 = vsel %vm1564_vm2, %v1548_v38, %v6029_v49  ;;  %v1580_v47 = vsel %vm1564_vm2, %v1563_v43, %v1548_v38 }
 0x221   : > { %v1666_v7 = vmul.f32 %v4275_v60, %v1565_v22  ;;  %v1849_v31 = vmul.f32 %v4278_v62, %v1750_v36  ;;  %v1581_v1 = vsel %vm1532_vm5, %v1580_v47, 0.0  ;;  %v1613_v29 = vsel %vm1564_vm2, %v1611_v6, %v1612_v63 }
 0x222   : > { %v2102_v24 = vadd.f32 %v4780_v45, %v4845_v39  ;;  %v1651_v3 = vmul.f32 %v4275_v60, %v1581_v1  ;;  %v1652_v49 = vmul.f32 %v4275_v60, %v1579_v12  ;;  %v1683_v38 = vmul.f32 %v4275_v60, %v1629_v26 }
 0x223   : > { %v1682_v43 = vadd.f32 %v1666_v7, %v1498_v40  ;;  %v1865_v37 = vadd.f32 %v1849_v31, %v1681_v50  ;;  %v1684_v45 = vmul.f32 %v4275_v60, %v1627_v33  ;;  %v1697_v36 = vmul.f32 %v4275_v60, %v1614_v30 }
 0x224   : > { %v4876_v22 = vadd.f32 %v4761_v27, %v2102_v24  ;;  %v1667_v51 = vadd.f32 %v1651_v3, %v1483_v59  ;;  %v4881_v47 = vadd.f32 %v1652_v49, %v4349_v11  ;;  %v1698_v63 = vmul.f32 %v4275_v60, %v1613_v29  ;;  %v4893_v11 = vpop.eup %3528 }
 0x225   : > { %v1699_v6 = vadd.f32 %v1683_v38, %v1515_v54  ;;  %v1968_v12 = vmul.f32 %v4283_v2, %v1864_v42  ;;  %v4886_v40 = vadd.f32 %v1684_v45, %v4336_v56  ;;  %v4888_v26 = vadd.f32 %v1697_v36, %v1529_v8  ;;  %6031 = vst [vmem:[#allocation81_spill] sm:$0xff] %v4893_v11 }
 0x226   : > { %6030 = vst [vmem:[#allocation80_spill] sm:$0xff] %v4876_v22  ;;  %v1159_v27 = vadd.f32 %v4740_v17, %v4235_v61  ;;  %v1714_v50 = vadd.f32 %v1698_v63, %v1530_v21  ;;  %v1732_v33 = vrot.slane %v1667_v51, 4  ;;  %v5905_v59 = vrot.slane %v4881_v47, 4 }
 0x227   : > { %v1747_v30 = vrot.slane %v1682_v43, 4  ;;  %v2101_v7 = vadd.f32 %v4764_v55, %v1982_v32  ;;  %v1984_v54 = vadd.f32 %v1968_v12, %v1865_v37  ;;  %v1781_v24 = vrot.slane %v1699_v6, 4 }
 0x228   : > { %v5903_v42 = vrot.slane %v4886_v40, 4  ;;  %v4903_v17 = vsel %vm1748_vm3, %v1732_v33, %v5905_v59  ;;  %v1796_v21 = vrot.slane %v1714_v50, 4  ;;  %v5904_v31 = vrot.slane %v4888_v26, 4 }
 0x229   : > { %v1749_v56 = vsel %vm1748_vm3, %v1746_v28, %v1747_v30  ;;  %v1764_v8 = vsel %vm1748_vm3, %v1747_v30, %v1732_v33  ;;  %v2087_v29 = vmul.f32 %v4286_v4, %v1982_v32  ;;  %v1969_v3 = vmul.f32 %v4283_v2, %v1865_v37 }
 0x22a   : > { %v1765_v55 = vsel %vm1716_vm6, %v1764_v8, 0.0  ;;  %v1811_v28 = vsel %vm1748_vm3, %v1781_v24, %v5903_v42  ;;  %v1850_v1 = vmul.f32 %v4278_v62, %v1749_v56  ;;  %v1812_v49 = vsel %vm1748_vm3, %v1796_v21, %v1781_v24  ;;  %v6033_v8 = vld [vmem:[#allocation36_spill] sm:$0xff] }
 0x22b   : > { %v1868_v38 = vmul.f32 %v4278_v62, %v1811_v28  ;;  %v1797_v45 = vsel %vm1748_vm3, %v5904_v31, %v1796_v21  ;;  %v1813_v36 = vsel %vm1716_vm6, %v1812_v49, 0.0  ;;  %v1835_v63 = vmul.f32 %v4278_v62, %v1765_v55  ;;  %v6034_v21 = vld [vmem:[#allocation38_spill] sm:$0xff]  ;;  %v6035_v49 = vld [vmem:[#allocation43_spill] sm:$0xff] }
 0x22c   : > { %v1866_v12 = vadd.f32 %v1850_v1, %v1682_v43  ;;  %v1867_v32 = vmul.f32 %v4278_v62, %v1813_v36  ;;  %3530 = vrcp.f32 %v4835_v23  ;;  %v3153_v33 = vmul.f32 -1.442695, %v4785_v14 }
 0x22d   : > { %v1884_v37 = vadd.f32 %v1868_v38, %v4886_v40  ;;  %v4932_v30 = vadd.f32 %v4730_v0, %v2101_v7  ;;  %v2103_v24 = vadd.f32 %v2087_v29, %v1984_v54  ;;  %v1308_v56 = vadd.f32 1.0, %v4837_v19  ;;  %v6036_v38 = vld [vmem:[#allocation45_spill] sm:$0xff]  ;;  %v6037_v7 = vld [vmem:[#allocation47_spill] sm:$0xff]  ;;  %v6038_v54 = vld [vmem:[#allocation50_spill] sm:$0xff] }
 0x22e   : > { %v3233_v28 = vadd.f32 %v6034_v21, %v6033_v8  ;;  %v1882_v55 = vmul.f32 %v4278_v62, %v1797_v45  ;;  %v4938_v43 = vadd.f32 %v1867_v32, %v1699_v6  ;;  %v3154_v1 = vmul.f32 -1.442695, %v1159_v27  ;;  %v6039_v45 = vld [vmem:[#allocation53_spill] sm:$0xff]  ;;  %v6040_v6 = vld [vmem:[#allocation55_spill] sm:$0xff]  ;;  %v6042_v21 = vld [vmem:[#allocation58_spill] sm:$0xff] }
 0x22f   : > { %6032 = vst [vmem:[#allocation82_spill] sm:$0xff] %v4932_v30  ;;  %v3236_v36 = vadd.f32 %v6036_v38, %v6035_v49  ;;  %v4942_v23 = vadd.f32 %v1835_v63, %v1667_v51  ;;  %v1985_v14 = vadd.f32 %v1969_v3, %v1866_v12  ;;  %v3239_v29 = vadd.f32 %v6038_v54, %v6037_v7  ;;  %v6041_v27 = vld [vmem:[#allocation57_spill] sm:$0xff]  ;;  %v6044_v49 = vld [vmem:[#allocation42_spill] sm:$0xff] }
 0x230   : > { %v1162_v0 = vadd.f32 %v3233_v28, %v4235_v61  ;;  %v1987_v19 = vmul.f32 %v4283_v2, %v4938_v43  ;;  %v3242_v32 = vadd.f32 %v6040_v6, %v6039_v45  ;;  %v3245_v42 = vadd.f32 %v6042_v21, %v6041_v27  ;;  %v6045_v7 = vld [vmem:[#allocation46_spill] sm:$0xff]  ;;  %v6046_v45 = vld [vmem:[#allocation60_spill] sm:$0xff] }
 0x231   : > { %v1167_v8 = vadd.f32 %v3236_v36, %v4235_v61  ;;  %v2088_v51 = vmul.f32 %v4286_v4, %v4845_v39  ;;  %v4957_v3 = vadd.f32 %v4770_v25, %v2103_v24  ;;  %3532 = vpow2.f32 %v3153_v33 }
 0x232   : > { %v3155_v63 = vmul.f32 -1.442695, %v1162_v0  ;;  %v4959_v12 = vadd.f32 %v1987_v19, %v1884_v37  ;;  %3534 = vpow2.f32 %v3154_v1  ;;  %v1170_v28 = vadd.f32 %v3239_v29, %v4235_v61 }
 0x233   : > { %6043 = vst [vmem:[#allocation36_spill] sm:$0xff] %v4957_v3  ;;  %v1419_v38 = vrot.slane %v6044_v49, 7  ;;  %v4963_v36 = vadd.f32 %v1882_v55, %v1714_v50  ;;  %3536 = vrcp.f32 %v1308_v56  ;;  %v1420_v54 = vrot.slane %v6045_v7, 7 }
 0x234   : > { %v1423_v6 = vrot.slane %v6046_v45, 7  ;;  %v4969_v25 = vmul.f32 %v4283_v2, %v4942_v23  ;;  %v4972_v39 = vmul.f32 %v4283_v2, %v1884_v37  ;;  %v2104_v33 = vadd.f32 %v2088_v51, %v1985_v14 }
 0x235   : > { %v3156_v24 = vmul.f32 -1.442695, %v1167_v8  ;;  %3538 = vpow2.f32 %v3155_v63  ;;  %v1175_v1 = vadd.f32 %v3242_v32, %v4235_v61  ;;  %v1178_v50 = vadd.f32 %v3245_v42, %v4235_v61 }
 0x236   : > { %v1424_v56 = vrot.slane %v4590_v34, 7  ;;  %v4977_v55 = vpop.eup %3530  ;;  %v3157_v0 = vmul.f32 -1.442695, %v1170_v28  ;;  %v6048_v29 = vrot.slane %v4527_v52, 7  ;;  %v6050_v14 = vrot.slane %v4507_v10, 7 }
 0x237   : > { %6047 = vst [vmem:[#allocation38_spill] sm:$0xff] %v4977_v55  ;;  %v6051_v32 = vrot.slane %v4407_v16, 7  ;;  %v6052_v42 = vrot.slane %v4638_v58, 7  ;;  %v1437_v28 = vsel %vm578_vm0, %v1419_v38, %v1420_v54  ;;  %3540 = vpow2.f32 %v3156_v24 }
 0x238   : > { %v1434_v19 = vsel %vm578_vm0, %v6048_v29, %v1423_v6  ;;  %v6049_v37 = vmov %v6048_v29  ;;  %v1433_v21 = vsel %vm578_vm0, %v1423_v6, %v1424_v56  ;;  %v6053_v51 = vmov %v6050_v14 }
 0x239   : > { %v1435_v8 = vsel %vm578_vm0, %v6050_v14, %v6049_v37  ;;  %v1438_v61 = vsel %vm578_vm0, %v6051_v32, %v1419_v38  ;;  %v1432_v27 = vsel %vm578_vm0, %v1424_v56, %v6052_v42  ;;  %v1436_v63 = vsel %vm578_vm0, %v1420_v54, %v6053_v51  ;;  %v6057_v42 = vld [vmem:[#allocation28_spill] sm:$0xff]  ;;  %v6060_v51 = vld [vmem:[#allocation26_spill] sm:$0xff] }
 0x23a   : > { %v6054_v29 = vmov %v6051_v32  ;;  %v6055_v37 = vrot.slane %v4390_v48, 7  ;;  %v6058_v31 = vrot.slane %v6057_v42, 7  ;;  %v6061_v59 = vrot.slane %v6060_v51, 7 }
 0x23b   : > { %v1505_v54 = vmul.f32 %v4270_v57, %v1438_v61  ;;  %v3158_v22 = vmul.f32 -1.442695, %v1175_v1  ;;  %v1506_v30 = vmul.f32 %v4270_v57, %v1437_v28  ;;  %v3533_v55 = vpop.eup %3532  ;;  %v1509_v11 = vmul.f32 %v4270_v57, %v1434_v19 }
 0x23c   : > { %v1439_v14 = vsel %vm578_vm0, %v6055_v37, %v6054_v29  ;;  %v6056_v32 = vmov %v6055_v37  ;;  %v6059_v56 = vmov %v6058_v31  ;;  %v1511_v24 = vmul.f32 %v4270_v57, %v1432_v27 }
 0x23d   : > { %v1440_v6 = vsel %vm578_vm0, %v6058_v31, %v6056_v32  ;;  %v1441_v38 = vsel %vm578_vm0, %v6061_v59, %v6059_v56  ;;  %v1504_v37 = vmul.f32 %v4270_v57, %v1439_v14  ;;  %v1507_v31 = vmul.f32 %v4270_v57, %v1436_v63  ;;  %v3535_v56 = vpop.eup %3534 }
 0x23e   : > { %v1502_v3 = vmul.f32 %v4270_v57, %v1441_v38  ;;  %v1503_v29 = vmul.f32 %v4270_v57, %v1440_v6  ;;  %v1508_v32 = vmul.f32 %v4270_v57, %v1435_v8  ;;  %v1510_v59 = vmul.f32 %v4270_v57, %v1433_v21  ;;  %v5037_v63 = vpop.eup %3536 }
 0x23f   : > { %v3159_v6 = vmul.f32 -1.442695, %v1178_v50  ;;  %v1520_v1 = vadd.f32 %v4407_v16, %v1504_v37  ;;  %v1521_v28 = vadd.f32 %v6044_v49, %v1505_v54  ;;  %6062 = vst [vmem:[#allocation43_spill] sm:$0xff] %v5037_v63  ;;  %v1522_v8 = vadd.f32 %v6045_v7, %v1506_v30  ;;  %v3539_v38 = vpop.eup %3538 }
 0x240   : > { %v1518_v61 = vadd.f32 %v6057_v42, %v1502_v3  ;;  %v1519_v14 = vadd.f32 %v4390_v48, %v1503_v29  ;;  %v1523_v19 = vadd.f32 %v4507_v10, %v1507_v31  ;;  %v1524_v21 = vadd.f32 %v4527_v52, %v1508_v32  ;;  %v6066_v10 = vld [vmem:[#allocation31_spill] sm:$0xff] }
 0x241   : > { %v1525_v57 = vadd.f32 %v6046_v45, %v1509_v11  ;;  %v1309_v27 = vadd.f32 1.0, %v3533_v55  ;;  %3542 = vpow2.f32 %v3157_v0  ;;  %v1526_v3 = vadd.f32 %v4590_v34, %v1510_v59  ;;  %v5052_v34 = vpop.eup %3540 }
 0x242   : > { %v1527_v50 = vadd.f32 %v4638_v58, %v1511_v24  ;;  %v5047_v54 = vmul.f32 %v4286_v4, %v4959_v12  ;;  %v5050_v29 = vadd.f32 %v4792_v9, %v2104_v33  ;;  %v1310_v30 = vadd.f32 1.0, %v3535_v56  ;;  %6063 = vst [vmem:[#allocation45_spill] sm:$0xff] %v5052_v34 }
 0x243   : > { %3544 = vpow2.f32 %v3158_v22  ;;  %v1601_v37 = vrot.slane %v1519_v14, 6  ;;  %v1602_v31 = vrot.slane %v1520_v1, 6  ;;  %v1605_v11 = vrot.slane %v1523_v19, 6 }
 0x244   : > { %3546 = vpow2.f32 %v3159_v6  ;;  %v1603_v55 = vrot.slane %v1521_v28, 6  ;;  %v1604_v0 = vrot.slane %v1522_v8, 6  ;;  %v1606_v32 = vrot.slane %v1524_v21, 6 }
 0x245   : > { %v1607_v59 = vrot.slane %v1525_v57, 6  ;;  %3548 = vrcp.f32 %v1309_v27  ;;  %v1600_v24 = vrot.slane %v1518_v61, 6  ;;  %v1608_v58 = vrot.slane %v1526_v3, 6 }
 0x246   : > { %v1609_v63 = vrot.slane %v1527_v50, 6  ;;  %3550 = vrcp.f32 %v1310_v30  ;;  %v5054_v45 = vadd.f32 1.0, %v3539_v38  ;;  %v1619_v22 = vsel %vm1564_vm2, %v1605_v11, %v1606_v32 }
 0x247   : > { %v1618_v9 = vsel %vm1564_vm2, %v1606_v32, %v1607_v59  ;;  %v6065_v33 = vrot.slane %v4774_v20, 6  ;;  %v1617_v27 = vsel %vm1564_vm2, %v1607_v59, %v1608_v58  ;;  %v1620_v38 = vsel %vm1564_vm2, %v1604_v0, %v1605_v11  ;;  %v6068_v59 = vld [vmem:[#allocation39_spill] sm:$0xff] }
 0x248   : > { %6064 = vst [vmem:[#allocation47_spill] sm:$0xff] %v5054_v45  ;;  %v1616_v6 = vsel %vm1564_vm2, %v1608_v58, %v1609_v63  ;;  %v1621_v30 = vsel %vm1564_vm2, %v1603_v55, %v1604_v0  ;;  %v1622_v32 = vsel %vm1564_vm2, %v1602_v31, %v1603_v55  ;;  %v1623_v52 = vsel %vm1564_vm2, %v1601_v37, %v1602_v31 }
 0x249   : > { %v1615_v56 = vsel %vm1564_vm2, %v1609_v63, %v6065_v33  ;;  %v1624_v33 = vsel %vm1564_vm2, %v1600_v24, %v1601_v37  ;;  %v6067_v63 = vrot.slane %v6066_v10, 6  ;;  %v1685_v11 = vmul.f32 %v4275_v60, %v6068_v59 }
 0x24a   : > { %v1687_v46 = vmul.f32 %v4275_v60, %v1624_v33  ;;  %v1688_v0 = vmul.f32 %v4275_v60, %v1623_v52  ;;  %v1689_v35 = vmul.f32 %v4275_v60, %v1622_v32  ;;  %v1690_v31 = vmul.f32 %v4275_v60, %v1621_v30 }
 0x24b   : > { %v1625_v58 = vsel %vm1564_vm2, %v6067_v63, %v1600_v24  ;;  %v1691_v37 = vmul.f32 %v4275_v60, %v1620_v38  ;;  %v5090_v7 = vpop.eup %3542  ;;  %v1692_v49 = vmul.f32 %v4275_v60, %v1619_v22  ;;  %v1693_v24 = vmul.f32 %v4275_v60, %v1618_v9 }
 0x24c   : > { %v1686_v55 = vmul.f32 %v4275_v60, %v1625_v58  ;;  %6069 = vst [vmem:[#allocation50_spill] sm:$0xff] %v5090_v7  ;;  %v1694_v63 = vmul.f32 %v4275_v60, %v1617_v27  ;;  %v1695_v33 = vmul.f32 %v4275_v60, %v1616_v6  ;;  %v1696_v52 = vmul.f32 %v4275_v60, %v1615_v56 }
 0x24d   : > { %v5096_v59 = vpop.eup %3544  ;;  %v1701_v32 = vadd.f32 %v1685_v11, %v6066_v10  ;;  %v1703_v30 = vadd.f32 %v1687_v46, %v1519_v14  ;;  %v1704_v38 = vadd.f32 %v1688_v0, %v1520_v1  ;;  %v1705_v7 = vadd.f32 %v1689_v35, %v1521_v28 }
 0x24e   : > { %6070 = vst [vmem:[#allocation53_spill] sm:$0xff] %v5096_v59  ;;  %v1702_v58 = vadd.f32 %v1686_v55, %v1518_v61  ;;  %v5100_v34 = vpop.eup %3546  ;;  %v1706_v45 = vadd.f32 %v1690_v31, %v1522_v8  ;;  %v1707_v22 = vadd.f32 %v1691_v37, %v1523_v19  ;;  %v1708_v16 = vadd.f32 %v1692_v49, %v1524_v21  ;;  %v6073_v59 = vld [vmem:[#allocation41_spill] sm:$0xff] }
 0x24f   : > { %6071 = vst [vmem:[#allocation55_spill] sm:$0xff] %v5100_v34  ;;  %v1709_v9 = vadd.f32 %v1693_v24, %v1525_v57  ;;  %v1710_v48 = vadd.f32 %v1694_v63, %v1526_v3  ;;  %v1711_v27 = vadd.f32 %v1695_v33, %v1527_v50  ;;  %v5102_v44 = vpop.eup %3548  ;;  %v1712_v6 = vadd.f32 %v1696_v52, %v4774_v20 }
 0x250   : > { %6072 = vst [vmem:[#allocation57_spill] sm:$0xff] %v5102_v44  ;;  %v6074_v60 = vrot.slane %v6073_v59, 4  ;;  %v6075_v10 = vrot.slane %v4881_v47, 4  ;;  %v1783_v61 = vrot.slane %v1701_v32, 4  ;;  %v1784_v14 = vrot.slane %v1702_v58, 4  ;;  %v5111_v35 = vpop.eup %3550 }
 0x251   : > { %6076 = vst [vmem:[#allocation58_spill] sm:$0xff] %v5111_v35  ;;  %v1785_v1 = vrot.slane %v1703_v30, 4  ;;  %v1786_v49 = vrot.slane %v1704_v38, 4  ;;  %v1787_v28 = vrot.slane %v1705_v7, 4  ;;  %v1788_v8 = vrot.slane %v1706_v45, 4 }
 0x252   : > { %v1762_v46 = vsel %vm1748_vm3, %v6075_v10, %v6074_v60  ;;  %v1789_v19 = vrot.slane %v1707_v22, 4  ;;  %v1790_v21 = vrot.slane %v1708_v16, 4  ;;  %v1791_v57 = vrot.slane %v1709_v9, 4 }
 0x253   : > { %v1792_v3 = vrot.slane %v1710_v48, 4  ;;  %v1793_v20 = vrot.slane %v1711_v27, 4  ;;  %v1794_v50 = vrot.slane %v1712_v6, 4  ;;  %v1805_v56 = vsel %vm1748_vm3, %v1787_v28, %v1788_v8 }
 0x254   : > { %v1806_v11 = vsel %vm1748_vm3, %v1786_v49, %v1787_v28  ;;  %v1802_v55 = vsel %vm1748_vm3, %v1790_v21, %v1791_v57  ;;  %v1803_v31 = vsel %vm1748_vm3, %v1789_v19, %v1790_v21  ;;  %v1804_v37 = vsel %vm1748_vm3, %v1788_v8, %v1789_v19 }
 0x255   : > { %v1801_v0 = vsel %vm1748_vm3, %v1791_v57, %v1792_v3  ;;  %v6077_v24 = vrot.slane %v4888_v26, 4  ;;  %v1799_v33 = vsel %vm1748_vm3, %v1793_v20, %v1794_v50  ;;  %v1800_v52 = vsel %vm1748_vm3, %v1792_v3, %v1793_v20 }
 0x256   : > { %v1807_v60 = vsel %vm1748_vm3, %v1785_v1, %v1786_v49  ;;  %v1808_v10 = vsel %vm1748_vm3, %v1784_v14, %v1785_v1  ;;  %v1809_v28 = vsel %vm1748_vm3, %v1783_v61, %v1784_v14  ;;  %v6078_v8 = vrot.slane %v4886_v40, 4 }
 0x257   : > { %v1798_v63 = vsel %vm1748_vm3, %v1794_v50, %v6077_v24  ;;  %v1836_v21 = vmul.f32 %v4278_v62, %v4903_v17  ;;  %v1837_v57 = vmul.f32 %v4278_v62, %v1762_v46  ;;  %v1870_v49 = vmul.f32 %v4278_v62, %v1809_v28 }
 0x258   : > { %v1810_v19 = vsel %vm1748_vm3, %v6078_v8, %v1783_v61  ;;  %v1871_v20 = vmul.f32 %v4278_v62, %v1808_v10  ;;  %v1872_v14 = vmul.f32 %v4278_v62, %v1807_v60  ;;  %v1873_v40 = vmul.f32 %v4278_v62, %v1806_v11 }
 0x259   : > { %v1869_v3 = vmul.f32 %v4278_v62, %v1810_v19  ;;  %v1852_v1 = vadd.f32 %v1836_v21, %v4881_v47  ;;  %v1874_v50 = vmul.f32 %v4278_v62, %v1805_v56  ;;  %v1853_v61 = vadd.f32 %v1837_v57, %v6073_v59 }
 0x25a   : > { %v1875_v17 = vmul.f32 %v4278_v62, %v1804_v37  ;;  %v1876_v46 = vmul.f32 %v4278_v62, %v1803_v31  ;;  %v1877_v24 = vmul.f32 %v4278_v62, %v1802_v55  ;;  %v1878_v28 = vmul.f32 %v4278_v62, %v1801_v0 }
 0x25b   : > { %v1879_v10 = vmul.f32 %v4278_v62, %v1800_v52  ;;  %v1880_v47 = vmul.f32 %v4278_v62, %v1799_v33  ;;  %v1881_v60 = vmul.f32 %v4278_v62, %v1798_v63  ;;  %v1885_v8 = vadd.f32 %v1869_v3, %v1701_v32 }
 0x25c   : > { %v5161_v11 = vadd.f32 %v1870_v49, %v1702_v58  ;;  %v5163_v56 = vadd.f32 %v1871_v20, %v1703_v30  ;;  %v5165_v59 = vadd.f32 %v1872_v14, %v1704_v38  ;;  %v5167_v37 = vadd.f32 %v1873_v40, %v1705_v7 }
 0x25d   : > { %v5169_v31 = vadd.f32 %v1874_v50, %v1706_v45  ;;  %v5171_v55 = vadd.f32 %v1875_v17, %v1707_v22  ;;  %v5173_v0 = vadd.f32 %v1876_v46, %v1708_v16  ;;  %v5175_v52 = vadd.f32 %v1877_v24, %v1709_v9 }
 0x25e   : > { %v5177_v33 = vadd.f32 %v1878_v28, %v1710_v48  ;;  %v5179_v62 = vadd.f32 %v1879_v10, %v1711_v27  ;;  %v5181_v32 = vadd.f32 %v1880_v47, %v1712_v6  ;;  %v5184_v58 = vadd.f32 %v1881_v60, %v4888_v26  ;;  %v6085_v27 = vld [vmem:[#allocation52_spill] sm:$0xff] }
 0x25f   : > { %6079 = vst [vmem:[#allocation28_spill] sm:$0xff] %v5173_v0  ;;  %6080 = vst [vmem:[#allocation26_spill] sm:$0xff] %v5175_v52  ;;  %v1954_v7 = vmul.f32 0.0, %v4283_v2  ;;  %v1956_v45 = vmul.f32 %v4283_v2, %v1852_v1  ;;  %v1957_v30 = vmul.f32 %v4283_v2, %v1853_v61  ;;  %v1971_v16 = vadd.f32 %v4969_v25, %v1852_v1 }
 0x260   : > { %6081 = vst [vmem:[#allocation31_spill] sm:$0xff] %v5177_v33  ;;  %6082 = vst [vmem:[#allocation39_spill] sm:$0xff] %v5179_v62  ;;  %v1989_v38 = vmul.f32 %v4283_v2, %v1885_v8  ;;  %v1991_v48 = vmul.f32 %v4283_v2, %v5163_v56  ;;  %v1993_v22 = vmul.f32 %v4283_v2, %v5167_v37  ;;  %v2073_v40 = vmul.f32 0.0, %v4286_v4 }
 0x261   : > { %6083 = vst [vmem:[#allocation41_spill] sm:$0xff] %v5181_v32  ;;  %6084 = vst [vmem:[#allocation83_spill] sm:$0xff] %v5184_v58  ;;  %v1970_v9 = vadd.f32 %v1954_v7, %v4942_v23  ;;  %v5196_v26 = vadd.f32 %v1956_v45, %v1853_v61  ;;  %v5199_v6 = vadd.f32 %v1957_v30, %v6085_v27  ;;  %v2375_v27 = vld [vmem:[#allocation6] sm:$0xff] }
 0x262   : > { %v1995_v63 = vmul.f32 %v4283_v2, %v5171_v55  ;;  %v1997_v25 = vmul.f32 %v4283_v2, %v5175_v52  ;;  %v1999_v19 = vmul.f32 %v4283_v2, %v5179_v62  ;;  %v2001_v21 = vmul.f32 %v4283_v2, %v5184_v58 }
 0x263   : > { %v2002_v57 = vadd.f32 %v1954_v7, %v4938_v43  ;;  %v5211_v23 = vadd.f32 %v4972_v39, %v1885_v8  ;;  %v5214_v3 = vadd.f32 %v1989_v38, %v5161_v11  ;;  %v5217_v49 = vadd.f32 %v1991_v48, %v5165_v59  ;;  %v5252_v7 = vld [vmem:[#allocation12] ss:$0 sm:$0xff] }
 0x264   : > { %v5220_v20 = vadd.f32 %v1993_v22, %v5169_v31  ;;  %v5223_v1 = vadd.f32 %v1995_v63, %v5173_v0  ;;  %v5226_v14 = vadd.f32 %v1997_v25, %v5177_v33  ;;  %v5229_v43 = vadd.f32 %v1999_v19, %v5181_v32  ;;  %v2376_v63 = vld [vmem:[#allocation6 + $0x8] sm:$0xff] }
 0x265   : > { %v2017_v39 = vadd.f32 %v2001_v21, %v4963_v36  ;;  %v2075_v50 = vmul.f32 %v4286_v4, %v1970_v9  ;;  %v2076_v61 = vmul.f32 %v4286_v4, %v1971_v16  ;;  %v2107_v17 = vmul.f32 %v4286_v4, %v2002_v57 }
 0x266   : > { %6086 = vst [vmem:[#allocation52_spill] sm:$0xff] %v5226_v14  ;;  %6087 = vst [vmem:[#allocation84_spill] sm:$0xff] %v5229_v43  ;;  %v2112_v46 = vmul.f32 %v4286_v4, %v5217_v49  ;;  %v2116_v24 = vmul.f32 %v4286_v4, %v5223_v1  ;;  %v2120_v28 = vmul.f32 %v4286_v4, %v5229_v43  ;;  %v2192_v22 = vmul.f32 0.0, %v4300_v18 }
 0x267   : > { %v2124_v36 = vadd.f32 %v5047_v54, %v5214_v3  ;;  %v5244_v10 = vadd.f32 %v2073_v40, %v1970_v9  ;;  %v5246_v47 = vadd.f32 %v2073_v40, %v1971_v16  ;;  %v5249_v60 = vadd.f32 %v2075_v50, %v5196_v26 }
 0x268   : > { %v2092_v8 = vadd.f32 %v2076_v61, %v5199_v6  ;;  %v5254_v45 = vadd.f32 %v2073_v40, %v2002_v57  ;;  %v5257_v30 = vadd.f32 %v2073_v40, %v4959_v12  ;;  %v5260_v38 = vadd.f32 %v2107_v17, %v5211_v23  ;;  %v6090_v12 = vld [vmem:[#allocation23_spill] sm:$0xff]  ;;  %v5275_v40 = vld [vmem:[#allocation14] ss:$0 sm:$0xff] }
 0x269   : > { %v5263_v54 = vadd.f32 %v2112_v46, %v5220_v20  ;;  %v5266_v16 = vadd.f32 %v2116_v24, %v5226_v14  ;;  %v2136_v48 = vadd.f32 %v2120_v28, %v2017_v39  ;;  %v2231_v25 = vmul.f32 %v4300_v18, %v2124_v36 }
 0x26a   : > { %v2199_v9 = vmul.f32 %v4300_v18, %v2092_v8  ;;  %v2256_v19 = vmul.f32 %v6090_v12, %v6090_v12  ;;  %v2494_v21 = vmul.f32 %v5252_v7, %v2375_v27  ;;  %v2495_v57 = vmul.f32 %v5252_v7, %v2376_v63  ;;  %v6095_v12 = vld [vmem:[#allocation22_spill] sm:$0xff] }
 0x26b   : > { %6088 = vst [vmem:[#allocation85_spill] sm:$0xff] %v5263_v54  ;;  %6089 = vst [vmem:[#allocation86_spill] sm:$0xff] %v5266_v16  ;;  %v5278_v50 = vadd.f32 %v2192_v22, %v5244_v10  ;;  %v5281_v39 = vadd.f32 %v2192_v22, %v5246_v47  ;;  %v2239_v17 = vmul.f32 %v4300_v18, %v5266_v16 }
 0x26c   : > { %v5284_v61 = vadd.f32 %v2199_v9, %v4627_v53  ;;  %v5289_v46 = vadd.f32 %v2192_v22, %v5254_v45  ;;  %v5292_v24 = vadd.f32 %v2192_v22, %v5257_v30  ;;  %v5295_v28 = vadd.f32 %v2231_v25, %v5263_v54 }
 0x26d   : > { %6091 = vst [vmem:[#allocation23_spill] sm:$0xff] %v5278_v50  ;;  %6092 = vst [vmem:[#allocation87_spill] sm:$0xff] %v5281_v39  ;;  %v5298_v34 = vrot.slane %v2256_v19, %v6095_v12  ;;  %v2255_v35 = vadd.f32 %v2239_v17, %v2136_v48  ;;  %v2533_v58 = vmul.f32 %v5275_v40, %v2375_v27  ;;  %v2377_v19 = vld [vmem:[#allocation6 + $0x10] sm:$0xff]  ;;  %v2378_v48 = vld [vmem:[#allocation6 + $0x18] sm:$0xff] }
 0x26e   : > { %6093 = vst [vmem:[#allocation88_spill] sm:$0xff] %v5289_v46  ;;  %6094 = vst [vmem:[#allocation89_spill] sm:$0xff] %v5292_v24  ;;  %v2534_v53 = vmul.f32 %v5275_v40, %v2376_v63  ;;  %v5303_v9 = vadd.f32 %v2192_v22, %v5249_v60  ;;  %v5312_v43 = vadd.f32 %v2192_v22, %v2092_v8 }
 0x26f   : > { %6096 = vst [vmem:[#allocation22_spill] sm:$0xff] %v5298_v34  ;;  %v5306_v32 = vmul.f32 0.0, %v5298_v34  ;;  %v2326_v44 = vmul.f32 %v5298_v34, %v5284_v61  ;;  %v2358_v25 = vmul.f32 %v5298_v34, %v5295_v28  ;;  %v5315_v27 = vadd.f32 %v2192_v22, %v5260_v38 }
 0x270   : > { %6097 = vst [vmem:[#allocation90_spill] sm:$0xff] %v5303_v9  ;;  %6098 = vst [vmem:[#allocation91_spill] sm:$0xff] %v5312_v43  ;;  %v5317_v63 = vadd.f32 %v2192_v22, %v2124_v36  ;;  %v2496_v17 = vmul.f32 %v5252_v7, %v2377_v19  ;;  %v2497_v12 = vmul.f32 %v5252_v7, %v2378_v48 }
 0x271   : > { %6099 = vst [vmem:[#allocation92_spill] sm:$0xff] %v5315_v27  ;;  %v2327_v62 = vadd.f32 %v5306_v32, %v5278_v50  ;;  %v2328_v14 = vadd.f32 %v5306_v32, %v5281_v39  ;;  %v5326_v8 = vadd.f32 %v2326_v44, %v5050_v29  ;;  %v2359_v33 = vadd.f32 %v5306_v32, %v5289_v46 }
 0x272   : > { %6100 = vst [vmem:[#allocation93_spill] sm:$0xff] %v5317_v63  ;;  %v2360_v36 = vadd.f32 %v5306_v32, %v5292_v24  ;;  %v5332_v22 = vadd.f32 %v2358_v25, %v2255_v35  ;;  %v2329_v16 = vadd.f32 %v5306_v32, %v5303_v9  ;;  %v5338_v54 = vadd.f32 %v5306_v32, %v5312_v43 }
 0x273   : > { %6101 = vst [vmem:[#allocation94_spill] sm:$0xff] %v5326_v8  ;;  %v2391_v52 = vrot.slane %v2327_v62, 7  ;;  %v2392_v0 = vrot.slane %v2328_v14, 7  ;;  %v5936_v44 = vrot.slane %v5326_v8, 7  ;;  %v2439_v29 = vrot.slane %v2359_v33, 7 }
 0x274   : > { %6102 = vst [vmem:[#allocation95_spill] sm:$0xff] %v5332_v22  ;;  %v2440_v39 = vrot.slane %v2360_v36, 7  ;;  %v2361_v24 = vadd.f32 %v5306_v32, %v5315_v27  ;;  %v5346_v35 = vadd.f32 %v5306_v32, %v5317_v63  ;;  %v2393_v14 = vrot.slane %v2329_v16, 7 }
 0x275   : > { %v2421_v25 = vsel %vm578_vm0, %v2391_v52, %v2392_v0  ;;  %v2422_v62 = vsel %vm578_vm0, %v5936_v44, %v2391_v52  ;;  %v2394_v33 = vrot.slane %v5338_v54, 7  ;;  %v6103_v63 = vrot.slane %v5332_v22, 7  ;;  %v6104_v44 = vld [vmem:[#allocation25_spill] sm:$0xff] }
 0x276   : > { %v2423_v36 = vsel %vm1349_vm4, %v2422_v62, 0.0  ;;  %v2469_v46 = vsel %vm578_vm0, %v2439_v29, %v2440_v39  ;;  %v2511_v43 = vadd.f32 %v2495_v57, %v2421_v25  ;;  %v2420_v22 = vsel %vm578_vm0, %v2392_v0, %v2393_v14  ;;  %v6105_v57 = vld [vmem:[#allocation24_spill] sm:$0xff] }
 0x277   : > { %v2470_v27 = vsel %vm578_vm0, %v6103_v63, %v2439_v29  ;;  %v2510_v9 = vadd.f32 %v2494_v21, %v2423_v36  ;;  %v2550_v52 = vadd.f32 %v2534_v53, %v2469_v46  ;;  %v2419_v16 = vsel %vm578_vm0, %v2393_v14, %v2394_v33  ;;  %v6108_v36 = vld [vmem:[#allocation62_spill] sm:$0xff] }
 0x278   : > { %v2471_v8 = vsel %vm1349_vm4, %v2470_v27, 0.0  ;;  %v2566_v34 = vadd.f32 %v2511_v43, %v6104_v44  ;;  %v2441_v50 = vrot.slane %v2361_v24, 7  ;;  %v2442_v27 = vrot.slane %v5346_v35, 7  ;;  %v6106_v43 = vld [vmem:[#allocation27_spill] sm:$0xff] }
 0x279   : > { %v2549_v62 = vadd.f32 %v2533_v58, %v2471_v8  ;;  %v2565_v63 = vadd.f32 %v2510_v9, %v4293_v13  ;;  %v2582_v29 = vadd.f32 %v6105_v57, %v2550_v52  ;;  %v2512_v21 = vadd.f32 %v2496_v17, %v2420_v22 }
 0x27a   : > { %v2468_v53 = vsel %vm578_vm0, %v2440_v39, %v2441_v50  ;;  %v2513_v25 = vadd.f32 %v2497_v12, %v2419_v16  ;;  %v2535_v58 = vmul.f32 %v5275_v40, %v2377_v19  ;;  %v2467_v0 = vsel %vm578_vm0, %v2441_v50, %v2442_v27 }
 0x27b   : > { %v2581_v46 = vadd.f32 %v4288_v5, %v2549_v62  ;;  %3552 = vrcp.f32 %v2582_v29  ;;  %v2536_v13 = vmul.f32 %v5275_v40, %v2378_v48  ;;  %v5385_v24 = vadd.f32 %v2512_v21, %v6106_v43  ;;  %v6107_v5 = vld [vmem:[#allocation29_spill] sm:$0xff] }
 0x27c   : > { %v2551_v9 = vadd.f32 %v2535_v58, %v2468_v53  ;;  %v5388_v17 = vadd.f32 %v2513_v25, %v6107_v5  ;;  %v1990_v39 = vmul.f32 %v4283_v2, %v5161_v11  ;;  %v2077_v12 = vmul.f32 %v4286_v4, %v5196_v26 }
 0x27d   : > { %3554 = vrcp.f32 %v2581_v46  ;;  %v2552_v19 = vadd.f32 %v2536_v13, %v2467_v0  ;;  %v2078_v50 = vmul.f32 %v4286_v4, %v5199_v6  ;;  %v2109_v48 = vmul.f32 %v4286_v4, %v5211_v23 }
 0x27e   : > { %v2583_v8 = vadd.f32 %v6060_v51, %v2551_v9  ;;  %v2006_v22 = vadd.f32 %v1990_v39, %v5163_v56  ;;  %v2110_v44 = vmul.f32 %v4286_v4, %v5214_v3  ;;  %v2196_v11 = vmul.f32 %v4300_v18, %v5244_v10  ;;  %v2379_v51 = vld [vmem:[#allocation6 + $0x20] sm:$0xff] }
 0x27f   : > { %v2584_v14 = vadd.f32 %v6057_v42, %v2552_v19  ;;  %v5406_v26 = vadd.f32 %v2077_v12, %v4565_v41  ;;  %v5409_v6 = vadd.f32 %v2078_v50, %v6108_v36  ;;  %v2197_v23 = vmul.f32 %v4300_v18, %v5246_v47  ;;  %v2380_v42 = vld [vmem:[#allocation6 + $0x28] sm:$0xff] }
 0x280   : > { %3556 = vrcp.f32 %v2583_v8  ;;  %v5413_v56 = vadd.f32 %v2109_v48, %v2006_v22  ;;  %v5416_v3 = vadd.f32 %v2110_v44, %v5217_v49  ;;  %v2228_v10 = vmul.f32 %v4300_v18, %v5254_v45  ;;  %v6111_v36 = vld [vmem:[#allocation30_spill] sm:$0xff] }
 0x281   : > { %3558 = vrcp.f32 %v2584_v14  ;;  %v5421_v41 = vadd.f32 %v2196_v11, %v5406_v26  ;;  %v5424_v52 = vadd.f32 %v2197_v23, %v5409_v6  ;;  %v2229_v47 = vmul.f32 %v4300_v18, %v5257_v30  ;;  %v6110_v11 = vld [vmem:[#allocation33_spill] sm:$0xff] }
 0x282   : > { %v5429_v16 = vadd.f32 %v2228_v10, %v5413_v56  ;;  %v2498_v49 = vmul.f32 %v5252_v7, %v2379_v51  ;;  %v2499_v62 = vmul.f32 %v5252_v7, %v2380_v42  ;;  %v2537_v45 = vmul.f32 %v5275_v40, %v2379_v51 }
 0x283   : > { %v5435_v57 = vadd.f32 %v2229_v47, %v5416_v3  ;;  %v2331_v29 = vadd.f32 %v5306_v32, %v5421_v41  ;;  %v2332_v21 = vadd.f32 %v5306_v32, %v5424_v52  ;;  %v2538_v30 = vmul.f32 %v5275_v40, %v2380_v42  ;;  %v6112_v42 = vld [vmem:[#allocation34_spill] sm:$0xff] }
 0x284   : > { %v2363_v46 = vadd.f32 %v5306_v32, %v5429_v16  ;;  %v1992_v53 = vmul.f32 %v4283_v2, %v5165_v59  ;;  %v2111_v25 = vmul.f32 %v4286_v4, %v2006_v22  ;;  %v2198_v58 = vmul.f32 %v4300_v18, %v5249_v60  ;;  %v6109_v59 = vld [vmem:[#allocation65_spill] sm:$0xff] }
 0x285   : > { %v3553_v0 = vpop.eup %3552  ;;  %v2364_v13 = vadd.f32 %v5306_v32, %v5435_v57  ;;  %v2395_v43 = vrot.slane %v2331_v29, 7  ;;  %v2396_v9 = vrot.slane %v2332_v21, 7  ;;  %v2230_v5 = vmul.f32 %v4300_v18, %v5260_v38  ;;  %v6113_v29 = vld [vmem:[#allocation37_spill] sm:$0xff] }
 0x286   : > { %v2614_v19 = vmul.f32 %v3553_v0, %v2566_v34  ;;  %v2443_v12 = vrot.slane %v2363_v46, 7  ;;  %v2008_v50 = vadd.f32 %v1992_v53, %v5167_v37  ;;  %v5455_v48 = vadd.f32 %v2198_v58, %v6109_v59  ;;  %v6114_v46 = vld [vmem:[#allocation32_spill] sm:$0xff] }
 0x287   : > { %v3555_v39 = vpop.eup %3554  ;;  %v2417_v60 = vsel %vm578_vm0, %v2395_v43, %v2396_v9  ;;  %v2418_v22 = vsel %vm578_vm0, %v2394_v33, %v2395_v43  ;;  %v2444_v44 = vrot.slane %v2364_v13, 7  ;;  %v5488_v0 = vadd.f32 %v5306_v32, %v5284_v61  ;;  %v6116_v43 = vld [vmem:[#allocation40_spill] sm:$0xff] }
 0x288   : > { %v2613_v8 = vmul.f32 %v3555_v39, %v2565_v63  ;;  %v2630_v38 = vmul.f32 %v6110_v11, %v2614_v19  ;;  %v2466_v34 = vsel %vm578_vm0, %v2442_v27, %v2443_v12  ;;  %v2514_v37 = vadd.f32 %v2498_v49, %v2418_v22  ;;  %v2381_v39 = vld [vmem:[#allocation6 + $0x30] sm:$0xff]  ;;  %v2382_v19 = vld [vmem:[#allocation6 + $0x38] sm:$0xff] }
 0x289   : > { %v2515_v14 = vadd.f32 %v2499_v62, %v2417_v60  ;;  %v2465_v23 = vsel %vm578_vm0, %v2443_v12, %v2444_v44  ;;  %v2553_v51 = vadd.f32 %v2537_v45, %v2466_v34  ;;  %v5471_v54 = vadd.f32 %v2111_v25, %v2008_v50  ;;  %v6117_v12 = vld [vmem:[#allocation48_spill] sm:$0xff] }
 0x28a   : > { %v2629_v63 = vmul.f32 %v6111_v36, %v2613_v8  ;;  %v3557_v10 = vpop.eup %3556  ;;  %v2554_v33 = vadd.f32 %v2538_v30, %v2465_v23  ;;  %v2569_v47 = vadd.f32 %v2514_v37, %v6112_v42  ;;  %v2333_v35 = vadd.f32 %v5306_v32, %v5455_v48  ;;  %v6115_v30 = vld [vmem:[#allocation35_spill] sm:$0xff]  ;;  %v6119_v36 = vld [vmem:[#allocation45_spill] sm:$0xff] }
 0x28b   : > { %v5475_v21 = vadd.f32 %v2515_v14, %v6113_v29  ;;  %v3559_v27 = vpop.eup %3558  ;;  %v2615_v62 = vmul.f32 %v3557_v10, %v5385_v24  ;;  %v2585_v53 = vadd.f32 %v6114_v46, %v2553_v51  ;;  %v5482_v45 = vadd.f32 %v2230_v5, %v5471_v54  ;;  %v6118_v14 = vld [vmem:[#allocation47_spill] sm:$0xff] }
 0x28c   : > { %v2645_v49 = vpack.c.bf16 %v2630_v38, %v2629_v63  ;;  %v2616_v25 = vmul.f32 %v3559_v27, %v5388_v17  ;;  %v2586_v58 = vadd.f32 %v6115_v30, %v2554_v33  ;;  %v5492_v13 = vadd.f32 %v5306_v32, %v5295_v28 }
 0x28d   : > { %v2631_v24 = vmul.f32 %v6116_v43, %v2615_v62  ;;  %3560 = vrcp.f32 %v2585_v53  ;;  %v2365_v5 = vadd.f32 %v5306_v32, %v5482_v45  ;;  %v2397_v17 = vrot.slane %v2333_v35, 7  ;;  %v6120_v62 = vld [vmem:[#allocation42_spill] sm:$0xff] }
 0x28e   : > { %3278 = vmatprep.mubr.bf16.mxu1 %v2645_v49  ;;  %v2632_v59 = vmul.f32 %v6117_v12, %v2616_v25  ;;  %3562 = vrcp.f32 %v2586_v58  ;;  %v2398_v61 = vrot.slane %v5488_v0, 7  ;;  %v2446_v8 = vrot.slane %v5492_v13, 7  ;;  %v6121_v53 = vld [vmem:[#allocation46_spill] sm:$0xff]  ;;  %v6122_v58 = vld [vmem:[#allocation68_spill] sm:$0xff] }
 0x28f   : > { %v2416_v28 = vsel %vm578_vm0, %v2396_v9, %v2397_v17  ;;  %v2445_v60 = vrot.slane %v2365_v5, 7  ;;  %v2500_v22 = vmul.f32 %v5252_v7, %v2381_v39  ;;  %v2501_v11 = vmul.f32 %v5252_v7, %v2382_v19  ;;  %v6123_v43 = vld [vmem:[#allocation70_spill] sm:$0xff]  ;;  %v6127_v12 = vld [vmem:[#allocation88_spill] sm:$0xff] }
 0x290   : > { %v2646_v38 = vpack.c.bf16 %v2632_v59, %v2631_v24  ;;  %v2415_v32 = vsel %vm578_vm0, %v2397_v17, %v2398_v61  ;;  %v2539_v34 = vmul.f32 %v5275_v40, %v2381_v39  ;;  %v2540_v37 = vmul.f32 %v5275_v40, %v2382_v19  ;;  %v6125_v5 = vld [vmem:[#allocation22_spill] sm:$0xff]  ;;  %v6126_v19 = vld [vmem:[#allocation87_spill] sm:$0xff] }
 0x291   : > { %3564 = vrcp.f32 %v6118_v14  ;;  %v5510_v63 = vadd.f32 1.0, %v6119_v36  ;;  %v2463_v9 = vsel %vm578_vm0, %v2445_v60, %v2446_v8  ;;  %v2464_v23 = vsel %vm578_vm0, %v2444_v44, %v2445_v60 }
 0x292   : > { %3279 = vmatmul.mubr.bf16.vlgmr.msra.gmra.mrb[32].mxu1 %v2646_v38  ;;  %v2516_v51 = vadd.f32 %v2500_v22, %v2416_v28  ;;  %v2555_v10 = vadd.f32 %v2539_v34, %v2464_v23  ;;  %v2556_v33 = vadd.f32 %v2540_v37, %v2463_v9  ;;  %v1994_v42 = vmul.f32 %v4283_v2, %v5169_v31  ;;  %v6128_v22 = vld [vmem:[#allocation89_spill] sm:$0xff] }
 0x293   : > { %v2517_v29 = vadd.f32 %v2501_v11, %v2415_v32  ;;  %v2113_v35 = vmul.f32 %v4286_v4, %v2008_v50  ;;  %v2114_v27 = vmul.f32 %v4286_v4, %v5220_v20  ;;  %v2200_v49 = vmul.f32 %v4300_v18, %v5406_v26  ;;  %v2383_v38 = vld [vmem:[#allocation6 + $0x40] sm:$0xff]  ;;  %v2384_v32 = vld [vmem:[#allocation6 + $0x48] sm:$0xff] }
 0x294   : > { %v2587_v46 = vadd.f32 %v6120_v62, %v2555_v10  ;;  %v2588_v44 = vadd.f32 %v6121_v53, %v2556_v33  ;;  %v2010_v25 = vadd.f32 %v1994_v42, %v5171_v55  ;;  %v2201_v30 = vmul.f32 %v4300_v18, %v5409_v6  ;;  %v6124_v55 = vld [vmem:[#allocation23_spill] sm:$0xff]  ;;  %v6129_v9 = vld [vmem:[#allocation69_spill] sm:$0xff] }
 0x295   : > { %v5531_v31 = vadd.f32 %v2114_v27, %v5223_v1  ;;  %v2216_v50 = vadd.f32 %v2200_v49, %v6122_v58  ;;  %v2232_v20 = vmul.f32 %v4300_v18, %v5413_v56  ;;  %v2233_v26 = vmul.f32 %v4300_v18, %v5416_v3 }
 0x296   : > { %3566 = vrcp.f32 %v2587_v46  ;;  %v5538_v0 = vadd.f32 %v2113_v35, %v2010_v25  ;;  %v2217_v24 = vadd.f32 %v2201_v30, %v6123_v43  ;;  %v2319_v39 = vmul.f32 %v6125_v5, %v6124_v55  ;;  %v6130_v35 = vld [vmem:[#allocation73_spill] sm:$0xff]  ;;  %v6131_v30 = vld [vmem:[#allocation28_spill] sm:$0xff] }
 0x297   : > { %v3561_v6 = vpop.eup %3560  ;;  %3568 = vrcp.f32 %v2588_v44  ;;  %v2249_v1 = vadd.f32 %v2233_v26, %v5531_v31  ;;  %v2320_v17 = vmul.f32 %v6125_v5, %v6126_v19  ;;  %v2351_v56 = vmul.f32 %v6125_v5, %v6127_v12  ;;  %v6133_v43 = vld [vmem:[#allocation49_spill] sm:$0xff] }
 0x298   : > { %v3563_v59 = vpop.eup %3562  ;;  %v2617_v3 = vmul.f32 %v3561_v6, %v2569_v47  ;;  %v2248_v28 = vadd.f32 %v2232_v20, %v5538_v0  ;;  %v2335_v60 = vadd.f32 %v2319_v39, %v2216_v50  ;;  %v2352_v11 = vmul.f32 %v6125_v5, %v6128_v22  ;;  %v6132_v20 = vld [vmem:[#allocation44_spill] sm:$0xff]  ;;  %v6134_v6 = vld [vmem:[#allocation26_spill] sm:$0xff] }
 0x299   : > { %v2618_v34 = vmul.f32 %v3563_v59, %v5475_v21  ;;  %v2336_v37 = vadd.f32 %v2320_v17, %v2217_v24  ;;  %v2502_v14 = vmul.f32 %v5252_v7, %v2383_v38  ;;  %v2503_v36 = vmul.f32 %v5252_v7, %v2384_v32 }
 0x29a   : > { %v2633_v23 = vmul.f32 %v6129_v9, %v2617_v3  ;;  %v2367_v10 = vadd.f32 %v2351_v56, %v2248_v28  ;;  %v5555_v33 = vadd.f32 %v2352_v11, %v2249_v1  ;;  %v2399_v47 = vrot.slane %v2335_v60, 7  ;;  %v6135_v28 = vld [vmem:[#allocation85_spill] sm:$0xff]  ;;  %v6136_v60 = vld [vmem:[#allocation90_spill] sm:$0xff] }
 0x29b   : > { %v5557_v42 = vpop.eup %3564  ;;  %v2634_v27 = vmul.f32 %v6130_v35, %v2618_v34  ;;  %v2400_v49 = vrot.slane %v2336_v37, 7  ;;  %v2541_v62 = vmul.f32 %v5275_v40, %v2383_v38  ;;  %v2542_v21 = vmul.f32 %v5275_v40, %v2384_v32  ;;  %v6138_v32 = vld [vmem:[#allocation56_spill] sm:$0xff]  ;;  %v6139_v37 = vld [vmem:[#allocation91_spill] sm:$0xff] }
 0x29c   : > { %v2414_v46 = vsel %vm578_vm0, %v2398_v61, %v2399_v47  ;;  %v2447_v53 = vrot.slane %v2367_v10, 7  ;;  %v2448_v44 = vrot.slane %v5555_v33, 7  ;;  %v1996_v58 = vmul.f32 %v4283_v2, %v6131_v30  ;;  %v6141_v10 = vld [vmem:[#allocation74_spill] sm:$0xff] }
 0x29d   : > { %v2647_v50 = vpack.c.bf16 %v2634_v27, %v2633_v23  ;;  %v2571_v26 = vadd.f32 %v2516_v51, %v6132_v20  ;;  %v2572_v24 = vadd.f32 %v2517_v29, %v6133_v43  ;;  %v2413_v55 = vsel %vm578_vm0, %v2399_v47, %v2400_v49  ;;  %v6140_v23 = vld [vmem:[#allocation86_spill] sm:$0xff]  ;;  %v6142_v47 = vld [vmem:[#allocation81_spill] sm:$0xff] }
 0x29e   : > { %v2461_v39 = vsel %vm578_vm0, %v2447_v53, %v2448_v44  ;;  %v2462_v61 = vsel %vm578_vm0, %v2446_v8, %v2447_v53  ;;  %v2012_v1 = vadd.f32 %v1996_v58, %v6134_v6  ;;  %v2115_v19 = vmul.f32 %v4286_v4, %v2010_v25  ;;  %v6137_v25 = vld [vmem:[#allocation51_spill] sm:$0xff]  ;;  %v6143_v27 = vld [vmem:[#allocation77_spill] sm:$0xff]  ;;  %v6145_v30 = vld [vmem:[#allocation38_spill] sm:$0xff] }
 0x29f   : > { %3282 = vmatprep.mubr.bf16.mxu1 %v2647_v50  ;;  %v2518_v17 = vadd.f32 %v2502_v14, %v2414_v46  ;;  %v2519_v51 = vadd.f32 %v2503_v36, %v2413_v55  ;;  %v2557_v12 = vadd.f32 %v2541_v62, %v2462_v61  ;;  %v2558_v29 = vadd.f32 %v2542_v21, %v2461_v39  ;;  %v6144_v21 = vld [vmem:[#allocation92_spill] sm:$0xff]  ;;  %v6146_v50 = vld [vmem:[#allocation93_spill] sm:$0xff] }
 0x2a0   : > { %v3567_v56 = vpop.eup %3566  ;;  %v5579_v59 = vadd.f32 %v2115_v19, %v2012_v1  ;;  %v2234_v3 = vmul.f32 %v4300_v18, %v5471_v54  ;;  %v2235_v13 = vmul.f32 %v4300_v18, %v6135_v28  ;;  %v2321_v8 = vmul.f32 %v6125_v5, %v6136_v60  ;;  %v2385_v53 = vld [vmem:[#allocation6 + $0x50] sm:$0xff] }
 0x2a1   : > { %v3569_v22 = vpop.eup %3568  ;;  %v2619_v11 = vmul.f32 %v3567_v56, %v2571_v26  ;;  %v2589_v38 = vadd.f32 %v6137_v25, %v2557_v12  ;;  %v2590_v34 = vadd.f32 %v6138_v32, %v2558_v29  ;;  %v2322_v14 = vmul.f32 %v6125_v5, %v6139_v37  ;;  %v2386_v26 = vld [vmem:[#allocation6 + $0x58] sm:$0xff]  ;;  %v6148_v56 = vld [vmem:[#allocation54_spill] sm:$0xff]  ;;  %v6149_v60 = vld [vmem:[#allocation59_spill] sm:$0xff] }
 0x2a2   : > { %v2620_v36 = vmul.f32 %v3569_v22, %v2572_v24  ;;  %v2250_v9 = vadd.f32 %v2234_v3, %v5579_v59  ;;  %v2251_v54 = vadd.f32 %v2235_v13, %v6140_v23  ;;  %v2337_v33 = vadd.f32 %v2321_v8, %v6141_v10  ;;  %v6147_v24 = vld [vmem:[#allocation50_spill] sm:$0xff]  ;;  %v6150_v25 = vld [vmem:[#allocation31_spill] sm:$0xff]  ;;  %v6153_v10 = vld [vmem:[#allocation84_spill] sm:$0xff] }
 0x2a3   : > { %v2635_v35 = vmul.f32 %v6142_v47, %v2619_v11  ;;  %3570 = vrcp.f32 %v2589_v38  ;;  %v5596_v62 = vadd.f32 %v2322_v14, %v6143_v27  ;;  %v2353_v46 = vmul.f32 %v6125_v5, %v6144_v21  ;;  %v6154_v47 = vld [vmem:[#allocation60_spill] sm:$0xff] }
 0x2a4   : > { %v2636_v58 = vmul.f32 %v6145_v30, %v2620_v36  ;;  %3572 = vrcp.f32 %v2590_v34  ;;  %v2354_v20 = vmul.f32 %v6125_v5, %v6146_v50  ;;  %v2401_v43 = vrot.slane %v2337_v33, 7  ;;  %v6151_v34 = vld [vmem:[#allocation52_spill] sm:$0xff]  ;;  %v6152_v36 = vld [vmem:[#allocation39_spill] sm:$0xff] }
 0x2a5   : > { %3574 = vrcp.f32 %v5510_v63  ;;  %v1313_v55 = vadd.f32 1.0, %v6147_v24  ;;  %v2369_v39 = vadd.f32 %v2353_v46, %v2250_v9  ;;  %v2402_v61 = vrot.slane %v5596_v62, 7 }
 0x2a6   : > { %v2648_v6 = vpack.c.bf16 %v2636_v58, %v2635_v35  ;;  %v5606_v19 = vadd.f32 %v2354_v20, %v2251_v54  ;;  %v2412_v12 = vsel %vm578_vm0, %v2400_v49, %v2401_v43  ;;  %v2543_v29 = vmul.f32 %v5275_v40, %v2385_v53  ;;  %v6156_v58 = vld [vmem:[#allocation82_spill] sm:$0xff] }
 0x2a7   : > { %v2573_v3 = vadd.f32 %v2518_v17, %v6148_v56  ;;  %v2411_v28 = vsel %vm578_vm0, %v2401_v43, %v2402_v61  ;;  %v2449_v13 = vrot.slane %v2369_v39, 7  ;;  %v2544_v63 = vmul.f32 %v5275_v40, %v2386_v26  ;;  %v6157_v43 = vld [vmem:[#allocation80_spill] sm:$0xff] }
 0x2a8   : > { %3283 = vmatmul.mubr.bf16.gmra.mrb[36].mxu1 %v2648_v6  ;;  %v2574_v8 = vadd.f32 %v2519_v51, %v6149_v60  ;;  %v2450_v22 = vrot.slane %v5606_v19, 7  ;;  %v2504_v11 = vmul.f32 %v5252_v7, %v2385_v53  ;;  %v1998_v49 = vmul.f32 %v4283_v2, %v6150_v25  ;;  %v2387_v6 = vld [vmem:[#allocation6 + $0x60] sm:$0xff] }
 0x2a9   : > { %v2460_v38 = vsel %vm578_vm0, %v2448_v44, %v2449_v13  ;;  %v2505_v17 = vmul.f32 %v5252_v7, %v2386_v26  ;;  %v2117_v32 = vmul.f32 %v4286_v4, %v2012_v1  ;;  %v2118_v37 = vmul.f32 %v4286_v4, %v6151_v34  ;;  %v6159_v60 = vld [vmem:[#allocation53_spill] sm:$0xff] }
 0x2aa   : > { %v2459_v51 = vsel %vm578_vm0, %v2449_v13, %v2450_v22  ;;  %v2559_v14 = vadd.f32 %v2543_v29, %v2460_v38  ;;  %v2014_v9 = vadd.f32 %v1998_v49, %v6152_v36  ;;  %v2236_v23 = vmul.f32 %v4300_v18, %v5538_v0  ;;  %v6155_v0 = vld [vmem:[#allocation63_spill] sm:$0xff]  ;;  %v6160_v49 = vld [vmem:[#allocation57_spill] sm:$0xff] }
 0x2ab   : > { %v2560_v54 = vadd.f32 %v2544_v63, %v2459_v51  ;;  %v2134_v33 = vadd.f32 %v2118_v37, %v6153_v10  ;;  %v2237_v44 = vmul.f32 %v4300_v18, %v5531_v31  ;;  %v2323_v1 = vmul.f32 %v6125_v5, %v5421_v41  ;;  %v6158_v29 = vld [vmem:[#allocation43_spill] sm:$0xff]  ;;  %v6161_v36 = vld [vmem:[#allocation41_spill] sm:$0xff] }
 0x2ac   : > { %v2591_v35 = vadd.f32 %v6154_v47, %v2559_v14  ;;  %v2133_v27 = vadd.f32 %v2117_v32, %v2014_v9  ;;  %v2324_v62 = vmul.f32 %v6125_v5, %v5424_v52  ;;  %v2355_v21 = vmul.f32 %v6125_v5, %v5429_v16 }
 0x2ad   : > { %v3571_v46 = vpop.eup %3570  ;;  %v2592_v53 = vadd.f32 %v6155_v0, %v2560_v54  ;;  %v2253_v30 = vadd.f32 %v2237_v44, %v2134_v33  ;;  %v2339_v50 = vadd.f32 %v2323_v1, %v6156_v58  ;;  %v2356_v31 = vmul.f32 %v6125_v5, %v5435_v57  ;;  %v2388_v57 = vld [vmem:[#allocation6 + $0x68] sm:$0xff]  ;;  %v6162_v54 = vld [vmem:[#allocation61_spill] sm:$0xff] }
 0x2ae   : > { %v3573_v20 = vpop.eup %3572  ;;  %v2621_v41 = vmul.f32 %v3571_v46, %v2573_v3  ;;  %3576 = vrcp.f32 %v2591_v35  ;;  %v2252_v26 = vadd.f32 %v2236_v23, %v2133_v27  ;;  %v5646_v24 = vadd.f32 %v2324_v62, %v6157_v43  ;;  %v6164_v35 = vld [vmem:[#allocation64_spill] sm:$0xff]  ;;  %v6166_v0 = vld [vmem:[#allocation71_spill] sm:$0xff] }
 0x2af   : > { %v5648_v52 = vpop.eup %3574  ;;  %v2622_v39 = vmul.f32 %v3573_v20, %v2574_v8  ;;  %3578 = vrcp.f32 %v2592_v53  ;;  %v5650_v16 = vadd.f32 %v2356_v31, %v2253_v30  ;;  %v2403_v19 = vrot.slane %v2339_v50, 7  ;;  %v2389_v50 = vld [vmem:[#allocation6 + $0x70] sm:$0xff] }
 0x2b0   : > { %v2637_v56 = vmul.f32 %v6158_v29, %v2621_v41  ;;  %v2520_v13 = vadd.f32 %v2504_v11, %v2412_v12  ;;  %v2371_v63 = vadd.f32 %v2355_v21, %v2252_v26  ;;  %v2404_v3 = vrot.slane %v5646_v24, 7  ;;  %v6167_v20 = vld [vmem:[#allocation36_spill] sm:$0xff] }
 0x2b1   : > { %v5655_v25 = vadd.f32 1.0, %v6159_v60  ;;  %v2638_v38 = vmul.f32 %v6160_v49, %v2622_v39  ;;  %v2410_v8 = vsel %vm578_vm0, %v2402_v61, %v2403_v19  ;;  %v2452_v32 = vrot.slane %v5650_v16, 7 }
 0x2b2   : > { %v2521_v34 = vadd.f32 %v2505_v17, %v2411_v28  ;;  %v2409_v37 = vsel %vm578_vm0, %v2403_v19, %v2404_v3  ;;  %v2451_v51 = vrot.slane %v2371_v63, 7  ;;  %v2545_v12 = vmul.f32 %v5275_v40, %v2387_v6  ;;  %v6169_v63 = vld [vmem:[#allocation94_spill] sm:$0xff] }
 0x2b3   : > { %3580 = vrcp.f32 %v1313_v55  ;;  %v2649_v11 = vpack.c.bf16 %v2638_v38, %v2637_v56  ;;  %v2546_v14 = vmul.f32 %v5275_v40, %v2388_v57  ;;  %v2000_v23 = vmul.f32 %v4283_v2, %v6161_v36  ;;  %v6163_v55 = vld [vmem:[#allocation83_spill] sm:$0xff] }
 0x2b4   : > { %v2575_v10 = vadd.f32 %v2520_v13, %v6162_v54  ;;  %v2457_v61 = vsel %vm578_vm0, %v2451_v51, %v2452_v32  ;;  %v2458_v28 = vsel %vm578_vm0, %v2450_v22, %v2451_v51  ;;  %v2506_v17 = vmul.f32 %v5252_v7, %v2387_v6  ;;  %v6165_v22 = vld [vmem:[#allocation66_spill] sm:$0xff]  ;;  %v6171_v38 = vld [vmem:[#allocation79_spill] sm:$0xff] }
 0x2b5   : > { %3286 = vmatprep.mubr.bf16.mxu1 %v2649_v11  ;;  %v2561_v33 = vadd.f32 %v2545_v12, %v2458_v28  ;;  %v2562_v44 = vadd.f32 %v2546_v14, %v2457_v61  ;;  %v2016_v1 = vadd.f32 %v2000_v23, %v6163_v55  ;;  %v2119_v47 = vmul.f32 %v4286_v4, %v2014_v9  ;;  %v2390_v4 = vld [vmem:[#allocation6 + $0x78] sm:$0xff]  ;;  %v6173_v36 = vld [vmem:[#allocation55_spill] sm:$0xff] }
 0x2b6   : > { %v2576_v27 = vadd.f32 %v2521_v34, %v6164_v35  ;;  %v2507_v2 = vmul.f32 %v5252_v7, %v2388_v57  ;;  %v2238_v62 = vmul.f32 %v4300_v18, %v5579_v59  ;;  %v2325_v21 = vmul.f32 %v6125_v5, %v5455_v48 }
 0x2b7   : > { %v2593_v46 = vadd.f32 %v6165_v22, %v2561_v33  ;;  %v2594_v53 = vadd.f32 %v6166_v0, %v2562_v44  ;;  %v2135_v30 = vadd.f32 %v2119_v47, %v2016_v1  ;;  %v2357_v58 = vmul.f32 %v6125_v5, %v5482_v45  ;;  %v6168_v45 = vld [vmem:[#allocation58_spill] sm:$0xff]  ;;  %v6176_v1 = vld [vmem:[#allocation67_spill] sm:$0xff] }
 0x2b8   : > { %v3577_v9 = vpop.eup %3576  ;;  %v2522_v31 = vadd.f32 %v2506_v17, %v2410_v8  ;;  %v2341_v41 = vadd.f32 %v2325_v21, %v6167_v20  ;;  %v2509_v26 = vmul.f32 %v5252_v7, %v2390_v4  ;;  %v3851_v43 = vmov 1966171168  }
 0x2b9   : > { %v3579_v18 = vpop.eup %3578  ;;  %v2623_v59 = vmul.f32 %v3577_v9, %v2575_v10  ;;  %3582 = vrcp.f32 %v2593_v46  ;;  %v2254_v48 = vadd.f32 %v2238_v62, %v2135_v30  ;;  %v2840_v24 = vunpack.c.l.s4 %v3851_v43  ;;  %v6174_v10 = vld [vmem:[#allocation95_spill] sm:$0xff] }
 0x2ba   : > { %v2624_v39 = vmul.f32 %v3579_v18, %v2576_v27  ;;  %3584 = vrcp.f32 %v2594_v53  ;;  %v2405_v16 = vrot.slane %v2341_v41, 7  ;;  %v2547_v6 = vmul.f32 %v5275_v40, %v2389_v50  ;;  %v6177_v27 = vld [vmem:[#allocation75_spill] sm:$0xff] }
 0x2bb   : > { %v2639_v5 = vmul.f32 %v6168_v45, %v2623_v59  ;;  %v2373_v19 = vadd.f32 %v2357_v58, %v2254_v48  ;;  %v2548_v29 = vmul.f32 %v5275_v40, %v2390_v4  ;;  %v2841_v56 = vunpack.c.0.s8 %v2840_v24  ;;  %v6172_v40 = vld [vmem:[#allocation78_spill] sm:$0xff] }
 0x2bc   : > { %v2640_v13 = vmul.f32 %v5557_v42, %v2624_v39  ;;  %v6170_v57 = vrot.slane %v6169_v63, 7  ;;  %v2408_v49 = vsel %vm578_vm0, %v2404_v3, %v2405_v16  ;;  %v2858_v8 = vcombine.high %v6171_v38, %v6171_v38 }
 0x2bd   : > { %v3581_v34 = vpop.eup %3580  ;;  %v2453_v51 = vrot.slane %v2373_v19, 7  ;;  %v2844_v11 = vsub.s32 %v2841_v56, %v4155_v15  ;;  %v2899_v14 = vcombine.high %v6172_v40, %v6172_v40  ;;  %v1315_v23 = vadd.f32 1.0, %v6173_v36  ;;  %v6178_v15 = vld [vmem:[#allocation72_spill] sm:$0xff] }
 0x2be   : > { %v2407_v60 = vsel %vm578_vm0, %v2405_v16, %v6170_v57  ;;  %v2650_v42 = vpack.c.bf16 %v2640_v13, %v2639_v5  ;;  %v2523_v54 = vadd.f32 %v2507_v2, %v2409_v37  ;;  %v6175_v61 = vrot.slane %v6174_v10, 7  ;;  %v6179_v19 = vld [vmem:[#allocation76_spill] sm:$0xff] }
 0x2bf   : > { %v2525_v12 = vadd.f32 %v2509_v26, %v2407_v60  ;;  %v2456_v28 = vsel %vm578_vm0, %v2452_v32, %v2453_v51  ;;  %v2865_v55 = vrot.slane %v2858_v8, %v2844_v11  ;;  %3586 = vrcp.f32 %v5655_v25 }
 0x2c0   : > { %v2455_v3 = vsel %vm578_vm0, %v2453_v51, %v6175_v61  ;;  %3287 = vmatmul.mubr.bf16.gmra.mrb[40].mxu1 %v2650_v42  ;;  %v2563_v17 = vadd.f32 %v2547_v6, %v2456_v28  ;;  %v2577_v47 = vadd.f32 %v2522_v31, %v6176_v1  ;;  %v2906_v35 = vrot.slane %v2899_v14, %v2844_v11 }
 0x2c1   : > { %v2564_v33 = vadd.f32 %v2548_v29, %v2455_v3  ;;  %v2838_v44 = vcombine.high %v2525_v12, %v2525_v12  ;;  %v2866_v21 = vcombine.high %v2865_v55, %v2865_v55  ;;  %3588 = vrcp.f32 %v1315_v23 }
 0x2c2   : > { %v2595_v37 = vadd.f32 %v6177_v27, %v2563_v17  ;;  %v2578_v32 = vadd.f32 %v2523_v54, %v6178_v15  ;;  %v2508_v30 = vmul.f32 %v5252_v7, %v2389_v50  ;;  %v2907_v9 = vcombine.high %v2906_v35, %v2906_v35  ;;  %v3594_v7 = vld [vmem:[%s5836_s5] sm:$0x1] }
 0x2c3   : > { %v2596_v2 = vadd.f32 %v6172_v40, %v2564_v33  ;;  %v2845_v62 = vrot.slane %v2838_v44, %v2844_v11  ;;  %v3583_v22 = vpop.eup %3582  ;;  %v2879_v46 = vcombine.high %v2564_v33, %v2564_v33  ;;  %v2873_v41 = vrot.slane %v2866_v21, %v2844_v11 }
 0x2c4   : > { %v3585_v0 = vpop.eup %3584  ;;  %v2625_v53 = vmul.f32 %v3583_v22, %v2577_v47  ;;  %3590 = vrcp.f32 %v2595_v37  ;;  %v2524_v43 = vadd.f32 %v2508_v30, %v2408_v49  ;;  %v2914_v39 = vrot.slane %v2907_v9, %v2844_v11 }
 0x2c5   : > { %v2846_v25 = vcombine.high %v2845_v62, %v2845_v62  ;;  %v2626_v58 = vmul.f32 %v3585_v0, %v2578_v32  ;;  %3592 = vrcp.f32 %v2596_v2  ;;  %v2886_v4 = vrot.slane %v2879_v46, %v2844_v11 }
 0x2c6   : > { %v2641_v31 = vmul.f32 %v5648_v52, %v2625_v53  ;;  %v2874_v16 = vcombine.high %v2873_v41, %v2873_v41  ;;  %v2579_v29 = vadd.f32 %v2524_v43, %v6179_v19  ;;  %v2915_v13 = vcombine.high %v2914_v39, %v2914_v39 }
 0x2c7   : > { %v2853_v20 = vrot.slane %v2846_v25, %v2844_v11  ;;  %v2642_v26 = vmul.f32 %v3581_v34, %v2626_v58  ;;  %v2887_v18 = vcombine.high %v2886_v4, %v2886_v4  ;;  %v2580_v57 = vadd.f32 %v2525_v12, %v6171_v38 }
 0x2c9   : > { %v2854_v59 = vcombine.high %v2853_v20, %v2853_v20  ;;  %v2651_v48 = vpack.c.bf16 %v2642_v26, %v2641_v31  ;;  %v2894_v24 = vrot.slane %v2887_v18, %v2844_v11  ;;  %v3587_v6 = vpop.eup %3586 }
 0x2cb   : > { %v2856_v50 = vmul.f32 %v3594_v7, %v2854_v59  ;;  %3290 = vmatprep.mubr.bf16.mxu1 %v2651_v48  ;;  %v2895_v45 = vcombine.high %v2894_v24, %v2894_v24  ;;  %v3589_v52 = vpop.eup %3588 }
 0x2cd   : > { %v2876_v5 = vadd.f32 %v2874_v16, %v2856_v50  ;;  %v2897_v56 = vmul.f32 %v3594_v7, %v2895_v45 }
 0x2ce   : > { %v3591_v63 = vpop.eup %3590 }
 0x2cf   : > { %2877 = vst [vmem:[#allocation12] sm:$0x1] %v2876_v5  ;;  %v3593_v60 = vpop.eup %3592  ;;  %v2627_v49 = vmul.f32 %v3591_v63, %v2579_v29  ;;  %v2917_v8 = vadd.f32 %v2915_v13, %v2897_v56 }
 0x2d0   : > { %v2628_v34 = vmul.f32 %v3593_v60, %v2580_v57 }
 0x2d1   : > { %v2643_v51 = vmul.f32 %v3587_v6, %v2627_v49  ;;  %2918 = vst [vmem:[#allocation14] sm:$0x1] %v2917_v8 }
 0x2d2   : > { %v2644_v11 = vmul.f32 %v3589_v52, %v2628_v34 }
 0x2d4   : > { %v2652_v40 = vpack.c.bf16 %v2644_v11, %v2643_v51 }
 0x2d6   : > { %3291 = vmatmul.mubr.bf16.gmra.mrb[44].mxu1 %v2652_v40 }
 0x2d7   : > { %3722 = shalt.err (!%p3719_p3)
}
 0x2d8   : > { %s6181_s11 = sld [smem:[#allocation99_spill]]  ;;  %p6182_p9 = pmov %p6180_p7 }
 0x2de   : > { %s3723_s25 = scalar_lea.hbm %s6181_s11, 16 }
 0x2df   : > { %p3724_p12 = scmp.ne.s32.totalorder %s6181_s11, %s3723_s25  ;;  %p3729_p8 = scmp.lt.u32.totalorder %s3723_s25, %s6181_s11 }
 0x2e1   : > { %p3725_p0 = pnand %p3724_p12, %p6182_p9 }
 0x2e3   : > { %p3726_p6 = pneg %p3725_p0 }
 0x2e5   : > { %p3731_p11 = pnand %p3729_p8, %p3726_p6 }
 0x2e7   : > { %3734 = shalt.err (!%p3731_p11)
}
 0x2e8   : > { %3310 = dma.vmem_to_hbm [thread:$0]  (%p6180_p7), %s2948_s23, 16, %s6181_s11, [#allocation13]  }
 0x2e9   : > { %s3853_s6 = smov [#allocation14]   ;;  %p6183_p1 = pmov %p6180_p7 }
 0x2ea   : > { %s2958_s15 = sshll.u32 %s3853_s6, 4  ;;  %s2959_s15 = int_to_ptr.vmem [resolvable:$true] %s2958_s15 }
 0x2eb   : > { %s3735_s22 = scalar_lea.vmem %s2959_s15, 16  ;;  %s3741_s21 = scalar_lea.vmem %s2959_s15, 32 }
 0x2ec   : > { %p3736_p13 = scmp.ne.s32.totalorder %s2959_s15, %s3735_s22  ;;  %p3742_p10 = scmp.lt.s32.totalorder %s2959_s15, %s2959_s15 }
 0x2ed   : > { %p3743_p3 = scmp.lt.s32.totalorder %s3741_s21, %s3735_s22 }
 0x2ee   : > { %p3737_p2 = pnand %p3736_p13, %p6183_p1 }
 0x2ef   : > { %p3744_p12 = por %p3743_p3, %p3742_p10 }
 0x2f0   : > { %p3738_p4 = pneg %p3737_p2 }
 0x2f2   : > { %p3745_p9 = pnand %p3744_p12, %p3738_p4 }
 0x2f4   : > { %3748 = shalt.err (!%p3745_p9)
}
 0x2f5   : > { %s6184_s30 = sld [smem:[#allocation100_spill]]  ;;  %p6185_p6 = pmov %p6183_p1 }
 0x2fb   : > { %s3749_s20 = scalar_lea.hbm %s6184_s30, 16 }
 0x2fc   : > { %p3750_p0 = scmp.ne.s32.totalorder %s6184_s30, %s3749_s20  ;;  %p3755_p7 = scmp.lt.u32.totalorder %s3749_s20, %s6184_s30 }
 0x2fe   : > { %p3751_p8 = pnand %p3750_p0, %p6185_p6 }
 0x300   : > { %p3752_p11 = pneg %p3751_p8 }
 0x302   : > { %p3757_p13 = pnand %p3755_p7, %p3752_p11 }
 0x304   : > { %3760 = shalt.err (!%p3757_p13)
}
 0x305   : > { %3312 = dma.vmem_to_hbm [thread:$0]  (%p6183_p1), %s2959_s15, 16, %s6184_s30, [#allocation13]  }
 0x306   : > { %s6186_s12 = sld [smem:[#allocation97_spill]]  ;;  %s3181_s15 = sshll.u32 %s3948_s29, 11 }
 0x307   : > { %s2933_s20 = sshll.u32 %s4142_s16, 4  ;;  %s6187_s18 = sld [smem:[#allocation98_spill]]  ;;  %s5781_s20 = int_to_ptr.vmem [resolvable:$true] %s2933_s20 }
 0x308   : > { %s2920_s6 = scalar_lea.sflag [#allocation5], %s4124_s17  ;;  %s3761_s22 = scalar_lea.vmem %s5781_s20, 2048 }
 0x309   : > { %p3762_p2 = scmp.ne.s32.totalorder %s5781_s20, %s3761_s22  ;;  %s3854_s21 = smov [#allocation11]  }
 0x30a   : > { %s3765_s25 = sshll.u32 %s3854_s21, 4  ;;  %s3766_s25 = int_to_ptr.vmem [resolvable:$false] %s3765_s25 }
 0x30b   : > { %p3763_p4 = pnand %p3762_p2, %p4073_p5  ;;  %p3768_p3 = scmp.lt.s32.totalorder %s5781_s20, %s3766_s25 }
 0x30c   : > { %v3162_v38 = vld [vmem:[%s6186_s12] ss:$0 sm:$0xff]  ;;  %s3767_s12 = scalar_lea.vmem %s3766_s25, 4096 }
 0x30d   : > { %s5778_s14 = scalar_lea.hbm %s6187_s18, %s3181_s15  ;;  %p3764_p10 = pneg %p3763_p4 }
 0x30e   : > { %p3769_p12 = scmp.lt.s32.totalorder %s3767_s12, %s3761_s22 }
 0x310   : > { %p3770_p9 = por %p3769_p12, %p3768_p3 }
 0x312   : > { %p3771_p0 = pnand %p3770_p9, %p3764_p10 }
 0x365   : > { %v3280_v12 = vpop.f32.mrb[32].mxu1 }
 0x366   : > { %v2767_v14 = vadd.f32 %v3280_v12, %v3162_v38  ;;  %v2758_v42 = vpop.f32.mrb[33].mxu1 }
 0x367   : > { %v2759_v36 = vadd.f32 %v3162_v38, %v2758_v42  ;;  %v3281_v23 = vpop.f32.mrb[34].mxu1 }
 0x368   : > { %2823 = vst [vmem:[%s4142_s16 + $0x10] sm:$0xff] %v2767_v14  ;;  %v2770_v54 = vadd.f32 %v3281_v23, %v3162_v38  ;;  %v2761_v10 = vpop.f32.mrb[35].mxu1 }
 0x369   : > { %2821 = vst [vmem:[%s4142_s16] sm:$0xff] %v2759_v36  ;;  %v2762_v61 = vadd.f32 %v3162_v38, %v2761_v10 }
 0x36a   : > { %2824 = vst [vmem:[%s4142_s16 + $0x18] sm:$0xff] %v2770_v54 }
 0x36b   : > { %2822 = vst [vmem:[%s4142_s16 + $0x8] sm:$0xff] %v2762_v61 }
 0x37b   : > { %v3284_v3 = vpop.f32.mrb[36].mxu1 }
 0x37c   : > { %v2783_v28 = vadd.f32 %v3284_v3, %v3162_v38  ;;  %v2774_v17 = vpop.f32.mrb[37].mxu1 }
 0x37d   : > { %v2775_v33 = vadd.f32 %v3162_v38, %v2774_v17  ;;  %v3285_v44 = vpop.f32.mrb[38].mxu1 }
 0x37e   : > { %2827 = vst [vmem:[%s4142_s16 + $0x30] sm:$0xff] %v2783_v28  ;;  %v2786_v55 = vadd.f32 %v3285_v44, %v3162_v38  ;;  %v2777_v1 = vpop.f32.mrb[39].mxu1 }
 0x37f   : > { %2825 = vst [vmem:[%s4142_s16 + $0x20] sm:$0xff] %v2775_v33  ;;  %v2778_v47 = vadd.f32 %v3162_v38, %v2777_v1 }
 0x380   : > { %2828 = vst [vmem:[%s4142_s16 + $0x38] sm:$0xff] %v2786_v55 }
 0x381   : > { %2826 = vst [vmem:[%s4142_s16 + $0x28] sm:$0xff] %v2778_v47 }
 0x393   : > { %v3288_v35 = vpop.f32.mrb[40].mxu1 }
 0x394   : > { %v2799_v27 = vadd.f32 %v3288_v35, %v3162_v38  ;;  %v2790_v37 = vpop.f32.mrb[41].mxu1 }
 0x395   : > { %v2791_v2 = vadd.f32 %v3162_v38, %v2790_v37  ;;  %v3289_v62 = vpop.f32.mrb[42].mxu1 }
 0x396   : > { %2831 = vst [vmem:[%s4142_s16 + $0x50] sm:$0xff] %v2799_v27  ;;  %v2802_v21 = vadd.f32 %v3289_v62, %v3162_v38  ;;  %v2793_v22 = vpop.f32.mrb[43].mxu1 }
 0x397   : > { %2829 = vst [vmem:[%s4142_s16 + $0x40] sm:$0xff] %v2791_v2  ;;  %v2794_v15 = vadd.f32 %v3162_v38, %v2793_v22 }
 0x398   : > { %2832 = vst [vmem:[%s4142_s16 + $0x58] sm:$0xff] %v2802_v21 }
 0x399   : > { %2830 = vst [vmem:[%s4142_s16 + $0x48] sm:$0xff] %v2794_v15 }
 0x3a9   : > { %v3292_v32 = vpop.f32.mrb[44].mxu1 }
 0x3aa   : > { %v2815_v46 = vadd.f32 %v3292_v32, %v3162_v38  ;;  %v2806_v0 = vpop.f32.mrb[45].mxu1 }
 0x3ab   : > { %v2807_v53 = vadd.f32 %v3162_v38, %v2806_v0  ;;  %v3293_v30 = vpop.f32.mrb[46].mxu1 }
 0x3ac   : > { %2835 = vst [vmem:[%s4142_s16 + $0x70] sm:$0xff] %v2815_v46  ;;  %v2818_v25 = vadd.f32 %v3293_v30, %v3162_v38  ;;  %v2809_v58 = vpop.f32.mrb[47].mxu1 }
 0x3ad   : > { %2833 = vst [vmem:[%s4142_s16 + $0x60] sm:$0xff] %v2807_v53  ;;  %v2810_v4 = vadd.f32 %v3162_v38, %v2809_v58 }
 0x3ae   : > { %2836 = vst [vmem:[%s4142_s16 + $0x78] sm:$0xff] %v2818_v25 }
 0x3af   : > { %2834 = vst [vmem:[%s4142_s16 + $0x68] sm:$0xff] %v2810_v4 }
 0x3b0   : > { %3774 = shalt.err (!%p3771_p0)
}
 0x3b1   : > { %s3775_s16 = scalar_lea.hbm %s5778_s14, 2048  ;;  %s3779_s19 = scalar_lea.hbm %s6187_s18, 4096 }
 0x3b2   : > { %p3776_p6 = scmp.ne.s32.totalorder %s5778_s14, %s3775_s16  ;;  %p3780_p7 = scmp.lt.u32.totalorder %s5778_s14, %s6187_s18 }
 0x3b3   : > { %p3781_p13 = scmp.lt.u32.totalorder %s3779_s19, %s3775_s16  ;;  %p3783_p2 = scmp.lt.u32.totalorder %s3775_s16, %s5778_s14 }
 0x3b4   : > { %p3777_p8 = pnand %p3776_p6, %p4073_p5 }
 0x3b5   : > { %p3782_p1 = por %p3781_p13, %p3780_p7 }
 0x3b6   : > { %p3778_p11 = pneg %p3777_p8 }
 0x3b7   : > { %p3784_p4 = por %p3783_p2, %p3782_p1 }
 0x3b9   : > { %p3785_p10 = pnand %p3784_p4, %p3778_p11 }
 0x3bb   : > { %3788 = shalt.err (!%p3785_p10)
}
 0x3bc   : > { %s3855_s22 = smov 128   ;;  %s3856_s12 = smov 8  }
 0x3bd   : > { %3308 = dma.vmem_to_hbm [thread:$0]  (%p4073_p5), %s5781_s20, 2048, %s5778_s14, %s2920_s6, %s3855_s22, %s3855_s22, %s3856_s12  }
 0x3be   : > { %p6188_p3 = scmp.eq.s32.totalorder %s3948_s29, 1 }
 0x3c0   : > { %3818 = dma.done.wait (%p6188_p3), [#allocation13], 32   ;;  %p6189_p12 = pmov %p6188_p3 }
 0x3c2   : > { %3820 = vsyncadd (%p6189_p12), [#allocation13], 4294967264 }
 0x3c3 PF: > { %s6190_s16 = sld [smem:[#allocation20_spill]]  ;;  %s6191_s15 = sld [smem:[#allocation21_spill]] }
 0x3c4   : > { %p6193_p0 = scmp.ge.s32.totalorder %s3839_s28, 2 }
 0x3c9   : > { %s2978_s23 = sand.u32 1, %s6190_s16   ;;  %p6192_p9 = scmp.ne.s32.totalorder %s6191_s15, 0 }
 0x3ca   : > { %s2979_s19 = scalar_lea.sflag [#allocation5], %s2978_s23 }
 0x3cb   : > { %p3333_p6 = pnand %p6193_p0, %p6192_p9 }
 0x3cd   : > { %3822 = dma.done.wait (!%p3333_p6), %s2979_s19, 2048  }
 0x3ce   : > { %3824 = vsyncadd (!%p3333_p6), %s2979_s19, 4294965248  ;;  %p30_p5 = scmp.ge.s32.totalorder %s4059_s10, 4   ;;  %s6194_s25 = smov %s3831_s26 }
 0x3cf   : > { %s6195_s26 = smov %s3835_s27  ;;  %s6196_s27 = smov %s4069_s13 }
 0x3d0   : > { %s6197_s28 = smov %s4059_s10  ;;  %32 = sbr.rel (!%p30_p5) target bundleno = 14 (0xe), region = 141 }
 0x3d7   :  { %2984 = vsyncpa [#allocation4], 1 }
 0x3d8   :  { %2986 = vsyncpa [#allocation4 + $0x1], 1 }
 0x3d9   :  { %2987 = vsyncpa [#allocation7], 1 }
 0x3da   :  { %2988 = vsyncpa [#allocation10], 1 }
 0x3db   :  { %2989 = vsyncpa [#allocation5], 1 }
 0x3dc   :  { %2991 = vsyncpa [#allocation5 + $0x1], 1 }
 0x3dd   :  { %2992 = vsyncpa [#allocation13], 1 }

</bundles_post_ra>
